<compile_context>
chip_gen: v5e
topology: v5e:2x2
jax: 0.10.0
libtpu: 0.0.40
codegen_flags: <defaults>
</compile_context>

<pallas_src>
import numpy as np
import jax
import jax.numpy as jnp
from jax import lax
from jax.experimental import pallas as pl
from jax.experimental.pallas import tpu as pltpu

EPS = 1e-5


def _ibasic_block_kernel(x_ref, c1_ref, w1_ref, b2_ref, alpha_ref,
                         w2_ref, b3_ref, out_ref,
                         pad1_ref, col1_ref, pad2_ref, col2_ref):
    """One batch image per grid step.

    x_ref    : (1, H*W, Cin)   activations, channel-minor, f32
    c1_ref   : (1, Cin)        bn1 bias / bn1 scale (pre-conv add), f32
    w1_ref   : (9*Cin, Cout)   conv1 weight, im2col layout, BN-folded, bf16
    b2_ref   : (1, Cout)       bn2 bias (scale folded into w1), f32
    alpha_ref: (1, Cout)       PReLU per-channel slope, f32
    w2_ref   : (9*Cout, Cout)  conv2 weight, im2col layout, BN-folded, bf16
    b3_ref   : (1, Cout)       bn3 bias (scale folded into w2), f32
    out_ref  : (1, H*W, Cout)  f32
    pad1/2   : (H+2, W+2, C)   f32 zero-padded activation scratch
    col1/2   : (H*W, 9*C)      bf16 im2col scratch (single-matmul operand)
    """
    H = pad1_ref.shape[0] - 2
    W = pad1_ref.shape[1] - 2
    cin = pad1_ref.shape[2]
    cout = pad2_ref.shape[2]

    x = x_ref[0]                                          # (H*W, Cin) f32

    # ---- bn1: scale folded into w1; bias applied pre-conv (padding-safe) ----
    h1 = x + c1_ref[...]                                  # (H*W, Cin) f32

    def conv3x3(pad_ref, col_ref, interior, w_ref, c):
        """3x3 / stride-1 / pad-1 conv as a single im2col MXU matmul."""
        # Re-zero only the 1-pixel halo: the interior is fully overwritten
        # every step, so a full-buffer zero would waste a full-image store
        # pass per grid step.
        pad_ref[0:1, :, :] = jnp.zeros((1, W + 2, c), jnp.float32)
        pad_ref[H + 1:H + 2, :, :] = jnp.zeros((1, W + 2, c), jnp.float32)
        pad_ref[:, 0:1, :] = jnp.zeros((H + 2, 1, c), jnp.float32)
        pad_ref[:, W + 1:W + 2, :] = jnp.zeros((H + 2, 1, c), jnp.float32)
        pad_ref[1:H + 1, 1:W + 1, :] = interior.reshape(H, W, c)
        # im2col: 9 shifted (H, W, C) slabs packed along the lane (K) axis,
        # cast to bf16 as part of the copy.
        for dh in range(3):
            for dw in range(3):
                t = dh * 3 + dw
                col_ref[:, t * c:(t + 1) * c] = (
                    pad_ref[dh:dh + H, dw:dw + W, :]
                    .reshape(H * W, c).astype(jnp.bfloat16))
        # Single matmul, K = 9*C, bf16 x bf16 -> f32 accumulate on the MXU.
        return jnp.dot(col_ref[...], w_ref[...],
                       preferred_element_type=jnp.float32)   # (H*W, Cout) f32

    acc1 = conv3x3(pad1_ref, col1_ref, h1, w1_ref, cin)

    # ---- bn2 bias + PReLU (all f32 on the VPU) ----
    y = acc1 + b2_ref[...]
    y = jnp.where(y > 0, y, alpha_ref[...] * y)

    acc2 = conv3x3(pad2_ref, col2_ref, y, w2_ref, cout)

    # ---- bn3 bias + identity residual ----
    out_ref[0] = (acc2 + b3_ref[...] + x).astype(out_ref.dtype)


def ibasic_block(x_nchw, p):
    """IBasicBlock forward (stride=1, downsample=None). NCHW in / NCHW out."""
    N, C, H, W = x_nchw.shape
    planes = p["w1"].shape[3]

    # Channels on the lane axis, pixels on the sublane axis.
    x_2d = jnp.transpose(x_nchw, (0, 2, 3, 1)).reshape(N, H * W, C)

    # ---- fold BatchNorm scales into the conv weights (one-time, wrapper) ----
    s1, b1 = p["s1"][0], p["b1"][0]             # (C,)
    s2 = p["s2"][0]                             # (planes,)
    s3 = p["s3"][0]                             # (planes,)
    # bn1(x) = s1 * (x + b1/s1): the scale goes into w1's input channels
    # (padding-safe: 0*s1 == 0), the bias becomes a pre-conv per-channel add.
    # (Only the scale fold is padding-safe; b1 itself must stay pre-conv.)
    c1 = (b1 / s1).reshape(1, C).astype(jnp.float32)
    w1f = p["w1"] * s1[None, None, :, None] * s2[None, None, None, :]
    w2f = p["w2"] * s3[None, None, None, :]
    # im2col weight layout: row index = (dh*3 + dw)*Cin + cin_index.
    w1_flat = w1f.reshape(9 * C, planes).astype(jnp.bfloat16)
    w2_flat = w2f.reshape(9 * planes, planes).astype(jnp.bfloat16)

    def full(shape):
        return pl.BlockSpec(shape, lambda n, _r=len(shape): (0,) * _r)

    out_2d = pl.pallas_call(
        _ibasic_block_kernel,
        out_shape=jax.ShapeDtypeStruct((N, H * W, planes), jnp.float32),
        grid=(N,),
        in_specs=[
            pl.BlockSpec((1, H * W, C), lambda n: (n, 0, 0)),     # x
            full((1, C)),                                         # c1 = b1/s1
            full((9 * C, planes)),                                # w1 (im2col)
            full((1, planes)),                                    # b2
            full((1, planes)),                                    # prelu alpha
            full((9 * planes, planes)),                           # w2 (im2col)
            full((1, planes)),                                    # b3
        ],
        out_specs=pl.BlockSpec((1, H * W, planes), lambda n: (n, 0, 0)),
        scratch_shapes=[
            pltpu.VMEM((H + 2, W + 2, C), jnp.float32),       # pad1
            pltpu.VMEM((H * W, 9 * C), jnp.bfloat16),         # col1
            pltpu.VMEM((H + 2, W + 2, planes), jnp.float32),  # pad2
            pltpu.VMEM((H * W, 9 * planes), jnp.bfloat16),    # col2
        ],
        compiler_params=pltpu.CompilerParams(
            dimension_semantics=("parallel",)),   # batch is independent (v7x 2 TCs)
    )(x_2d, c1, w1_flat, p["b2"], p["alpha"], w2_flat, p["b3"])

    return jnp.transpose(out_2d.reshape(N, H, W, planes), (0, 3, 1, 2))


def make_params(key, inplanes, planes):
    """Deterministic synthetic parameters matching IBasicBlock.__init__ shapes."""
    ks = jax.random.split(key, 16)

    def bn_params(k0, k1, k2, k3, c):
        gamma = 1.0 + 0.1 * jax.random.normal(k0, (c,), jnp.float32)
        beta = 0.1 * jax.random.normal(k1, (c,), jnp.float32)
        mean = 0.1 * jax.random.normal(k2, (c,), jnp.float32)
        var = jnp.abs(jax.random.normal(k3, (c,), jnp.float32)) + 0.5
        return gamma, beta, mean, var

    bn1 = bn_params(ks[0], ks[1], ks[2], ks[3], inplanes)
    bn2 = bn_params(ks[4], ks[5], ks[6], ks[7], planes)
    bn3 = bn_params(ks[8], ks[9], ks[10], ks[11], planes)

    w1 = 0.1 * jax.random.normal(ks[12], (3, 3, inplanes, planes), jnp.float32)
    w2 = 0.1 * jax.random.normal(ks[13], (3, 3, planes, planes), jnp.float32)
    alpha = 0.25 + 0.1 * jax.random.normal(ks[14], (planes,), jnp.float32)

    def fold(bn):
        g, b, m, v = bn
        scale = g / jnp.sqrt(v + EPS)
        bias = b - m * scale
        return scale.reshape(1, -1), bias.reshape(1, -1)

    s1, b1 = fold(bn1)
    s2, b2 = fold(bn2)
    s3, b3 = fold(bn3)

    return {
        "w1": w1, "w2": w2, "alpha": alpha.reshape(1, -1),
        "s1": s1, "b1": b1, "s2": s2, "b2": b2, "s3": s3, "b3": b3,
        "bn1": bn1, "bn2": bn2, "bn3": bn3,   # raw params for the reference
    }


def reference(x, p):
    """Pure-JAX f32 reference mirroring the PyTorch forward (eval-mode BN)."""
    def bn(h, params):
        g, b, m, v = params
        sh = (1, -1, 1, 1)
        return (h - m.reshape(sh)) / jnp.sqrt(v.reshape(sh) + EPS) \
            * g.reshape(sh) + b.reshape(sh)

    def conv(h, w_hwio):
        return lax.conv_general_dilated(
            h, w_hwio, window_strides=(1, 1), padding=((1, 1), (1, 1)),
            dimension_numbers=("NCHW", "HWIO", "NCHW"))

    out = bn(x, p["bn1"])
    out = conv(out, p["w1"])
    out = bn(out, p["bn2"])
    a = p["alpha"].reshape(1, -1, 1, 1)
    out = jnp.where(out > 0, out, a * out)
    out = conv(out, p["w2"])
    out = bn(out, p["bn3"])
    return out + x   # identity path (downsample is None)


if __name__ == "__main__":
    key = jax.random.PRNGKey(0)
    N, C, H, W = 2, 8, 16, 16     # inplanes == planes so the residual add is valid
    planes = 8

    kx, kp = jax.random.split(key)
    x = jax.random.normal(kx, (N, C, H, W), jnp.float32)
    params = make_params(kp, C, planes)

    out = jax.block_until_ready(ibasic_block(x, params))
    ref = jax.block_until_ready(reference(x, params))

    assert out.shape == ref.shape == (N, planes, H, W)
    # bf16 MXU feeds -> compare against the f32 reference at bf16-level tolerance.
    np.testing.assert_allclose(np.asarray(out), np.asarray(ref),
                               rtol=3e-2, atol=3e-2)
    print("KERNEL_OK")
</pallas_src>

<mosaic_0001>
module attributes {stable_mosaic.version = 11 : i64} {
  func.func @_ibasic_block_kernel(%arg0: i32, %arg1: memref<1x256x8xf32, #tpu.memory_space<vmem>>, %arg2: memref<1x8xf32, #tpu.memory_space<vmem>>, %arg3: memref<72x8xbf16, #tpu.memory_space<vmem>>, %arg4: memref<1x8xf32, #tpu.memory_space<vmem>>, %arg5: memref<1x8xf32, #tpu.memory_space<vmem>>, %arg6: memref<72x8xbf16, #tpu.memory_space<vmem>>, %arg7: memref<1x8xf32, #tpu.memory_space<vmem>>, %arg8: memref<1x256x8xf32, #tpu.memory_space<vmem>>, %arg9: memref<18x18x8xf32, #tpu.memory_space<vmem>>, %arg10: memref<256x72xbf16, #tpu.memory_space<vmem>>, %arg11: memref<18x18x8xf32, #tpu.memory_space<vmem>>, %arg12: memref<256x72xbf16, #tpu.memory_space<vmem>>) attributes {dimension_semantics = [#tpu.dimension_semantics<parallel>], iteration_bounds = array<i64: 2>, scalar_prefetch = 0 : i64, scratch_operands = 4 : i64, tpu.core_type = #tpu.core_type<tc>, window_params = [{transform_indices = @transform_0, window_bounds = array<i64: 1, 256, 8>}, {pipeline_mode = #tpu.pipeline_mode<synchronous>, transform_indices = @transform_1, window_bounds = array<i64: 1, 8>}, {pipeline_mode = #tpu.pipeline_mode<synchronous>, transform_indices = @transform_2, window_bounds = array<i64: 72, 8>}, {pipeline_mode = #tpu.pipeline_mode<synchronous>, transform_indices = @transform_3, window_bounds = array<i64: 1, 8>}, {pipeline_mode = #tpu.pipeline_mode<synchronous>, transform_indices = @transform_4, window_bounds = array<i64: 1, 8>}, {pipeline_mode = #tpu.pipeline_mode<synchronous>, transform_indices = @transform_5, window_bounds = array<i64: 72, 8>}, {pipeline_mode = #tpu.pipeline_mode<synchronous>, transform_indices = @transform_6, window_bounds = array<i64: 1, 8>}, {transform_indices = @transform_7, window_bounds = array<i64: 1, 256, 8>}]} {
    %c0 = arith.constant 0 : index
    %c0_0 = arith.constant 0 : index
    %c0_1 = arith.constant 0 : index
    %0 = vector.load %arg1[%c0, %c0_0, %c0_1] : memref<1x256x8xf32, #tpu.memory_space<vmem>>, vector<1x256x8xf32>
    %1 = vector.shape_cast %0 : vector<1x256x8xf32> to vector<256x8xf32>
    %c0_2 = arith.constant 0 : index
    %c0_3 = arith.constant 0 : index
    %2 = vector.load %arg2[%c0_2, %c0_3] : memref<1x8xf32, #tpu.memory_space<vmem>>, vector<1x8xf32>
    %3 = vector.broadcast %2 : vector<1x8xf32> to vector<256x8xf32>
    %4 = arith.addf %1, %3 : vector<256x8xf32>
    %cst = arith.constant 0.000000e+00 : f32
    %5 = vector.broadcast %cst : f32 to vector<1x18x8xf32>
    %c0_4 = arith.constant 0 : index
    %c0_5 = arith.constant 0 : index
    %c0_6 = arith.constant 0 : index
    %6 = vector.load %arg9[%c0_4, %c0_5, %c0_6] : memref<18x18x8xf32, #tpu.memory_space<vmem>>, vector<1x18x8xf32>
    tpu.vector_store %arg9[%c0_4, %c0_5, %c0_6], %5 {strides = array<i32>} : memref<18x18x8xf32, #tpu.memory_space<vmem>>, vector<1x18x8xf32>,
    %cst_7 = arith.constant 0.000000e+00 : f32
    %7 = vector.broadcast %cst_7 : f32 to vector<1x18x8xf32>
    %c17 = arith.constant 17 : index
    %c0_8 = arith.constant 0 : index
    %c0_9 = arith.constant 0 : index
    %8 = vector.load %arg9[%c17, %c0_8, %c0_9] : memref<18x18x8xf32, #tpu.memory_space<vmem>>, vector<1x18x8xf32>
    tpu.vector_store %arg9[%c17, %c0_8, %c0_9], %7 {strides = array<i32>} : memref<18x18x8xf32, #tpu.memory_space<vmem>>, vector<1x18x8xf32>,
    %cst_10 = arith.constant 0.000000e+00 : f32
    %9 = vector.broadcast %cst_10 : f32 to vector<18x1x8xf32>
    %c0_11 = arith.constant 0 : index
    %c0_12 = arith.constant 0 : index
    %c0_13 = arith.constant 0 : index
    %10 = vector.load %arg9[%c0_11, %c0_12, %c0_13] : memref<18x18x8xf32, #tpu.memory_space<vmem>>, vector<18x1x8xf32>
    tpu.vector_store %arg9[%c0_11, %c0_12, %c0_13], %9 {strides = array<i32>} : memref<18x18x8xf32, #tpu.memory_space<vmem>>, vector<18x1x8xf32>,
    %cst_14 = arith.constant 0.000000e+00 : f32
    %11 = vector.broadcast %cst_14 : f32 to vector<18x1x8xf32>
    %c0_15 = arith.constant 0 : index
    %c17_16 = arith.constant 17 : index
    %c0_17 = arith.constant 0 : index
    %12 = vector.load %arg9[%c0_15, %c17_16, %c0_17] : memref<18x18x8xf32, #tpu.memory_space<vmem>>, vector<18x1x8xf32>
    tpu.vector_store %arg9[%c0_15, %c17_16, %c0_17], %11 {strides = array<i32>} : memref<18x18x8xf32, #tpu.memory_space<vmem>>, vector<18x1x8xf32>,
    %13 = vector.shape_cast %4 : vector<256x8xf32> to vector<16x16x8xf32>
    %c1 = arith.constant 1 : index
    %c1_18 = arith.constant 1 : index
    %c0_19 = arith.constant 0 : index
    %14 = vector.load %arg9[%c1, %c1_18, %c0_19] : memref<18x18x8xf32, #tpu.memory_space<vmem>>, vector<16x16x8xf32>
    tpu.vector_store %arg9[%c1, %c1_18, %c0_19], %13 {strides = array<i32>} : memref<18x18x8xf32, #tpu.memory_space<vmem>>, vector<16x16x8xf32>,
    %c0_20 = arith.constant 0 : index
    %c0_21 = arith.constant 0 : index
    %c0_22 = arith.constant 0 : index
    %15 = vector.load %arg9[%c0_20, %c0_21, %c0_22] : memref<18x18x8xf32, #tpu.memory_space<vmem>>, vector<16x16x8xf32>
    %16 = vector.shape_cast %15 : vector<16x16x8xf32> to vector<256x8xf32>
    %17 = arith.truncf %16 : vector<256x8xf32> to vector<256x8xbf16>
    %c0_23 = arith.constant 0 : index
    %c0_24 = arith.constant 0 : index
    %18 = vector.load %arg10[%c0_23, %c0_24] : memref<256x72xbf16, #tpu.memory_space<vmem>>, vector<256x8xbf16>
    tpu.vector_store %arg10[%c0_23, %c0_24], %17 {strides = array<i32>} : memref<256x72xbf16, #tpu.memory_space<vmem>>, vector<256x8xbf16>,
    %c0_25 = arith.constant 0 : index
    %c1_26 = arith.constant 1 : index
    %c0_27 = arith.constant 0 : index
    %19 = vector.load %arg9[%c0_25, %c1_26, %c0_27] : memref<18x18x8xf32, #tpu.memory_space<vmem>>, vector<16x16x8xf32>
    %20 = vector.shape_cast %19 : vector<16x16x8xf32> to vector<256x8xf32>
    %21 = arith.truncf %20 : vector<256x8xf32> to vector<256x8xbf16>
    %c0_28 = arith.constant 0 : index
    %c8 = arith.constant 8 : index
    %22 = vector.load %arg10[%c0_28, %c8] : memref<256x72xbf16, #tpu.memory_space<vmem>>, vector<256x8xbf16>
    tpu.vector_store %arg10[%c0_28, %c8], %21 {strides = array<i32>} : memref<256x72xbf16, #tpu.memory_space<vmem>>, vector<256x8xbf16>,
    %c0_29 = arith.constant 0 : index
    %c2 = arith.constant 2 : index
    %c0_30 = arith.constant 0 : index
    %23 = vector.load %arg9[%c0_29, %c2, %c0_30] : memref<18x18x8xf32, #tpu.memory_space<vmem>>, vector<16x16x8xf32>
    %24 = vector.shape_cast %23 : vector<16x16x8xf32> to vector<256x8xf32>
    %25 = arith.truncf %24 : vector<256x8xf32> to vector<256x8xbf16>
    %c0_31 = arith.constant 0 : index
    %c16 = arith.constant 16 : index
    %26 = vector.load %arg10[%c0_31, %c16] : memref<256x72xbf16, #tpu.memory_space<vmem>>, vector<256x8xbf16>
    tpu.vector_store %arg10[%c0_31, %c16], %25 {strides = array<i32>} : memref<256x72xbf16, #tpu.memory_space<vmem>>, vector<256x8xbf16>,
    %c1_32 = arith.constant 1 : index
    %c0_33 = arith.constant 0 : index
    %c0_34 = arith.constant 0 : index
    %27 = vector.load %arg9[%c1_32, %c0_33, %c0_34] : memref<18x18x8xf32, #tpu.memory_space<vmem>>, vector<16x16x8xf32>
    %28 = vector.shape_cast %27 : vector<16x16x8xf32> to vector<256x8xf32>
    %29 = arith.truncf %28 : vector<256x8xf32> to vector<256x8xbf16>
    %c0_35 = arith.constant 0 : index
    %c24 = arith.constant 24 : index
    %30 = vector.load %arg10[%c0_35, %c24] : memref<256x72xbf16, #tpu.memory_space<vmem>>, vector<256x8xbf16>
    tpu.vector_store %arg10[%c0_35, %c24], %29 {strides = array<i32>} : memref<256x72xbf16, #tpu.memory_space<vmem>>, vector<256x8xbf16>,
    %c1_36 = arith.constant 1 : index
    %c1_37 = arith.constant 1 : index
    %c0_38 = arith.constant 0 : index
    %31 = vector.load %arg9[%c1_36, %c1_37, %c0_38] : memref<18x18x8xf32, #tpu.memory_space<vmem>>, vector<16x16x8xf32>
    %32 = vector.shape_cast %31 : vector<16x16x8xf32> to vector<256x8xf32>
    %33 = arith.truncf %32 : vector<256x8xf32> to vector<256x8xbf16>
    %c0_39 = arith.constant 0 : index
    %c32 = arith.constant 32 : index
    %34 = vector.load %arg10[%c0_39, %c32] : memref<256x72xbf16, #tpu.memory_space<vmem>>, vector<256x8xbf16>
    tpu.vector_store %arg10[%c0_39, %c32], %33 {strides = array<i32>} : memref<256x72xbf16, #tpu.memory_space<vmem>>, vector<256x8xbf16>,
    %c1_40 = arith.constant 1 : index
    %c2_41 = arith.constant 2 : index
    %c0_42 = arith.constant 0 : index
    %35 = vector.load %arg9[%c1_40, %c2_41, %c0_42] : memref<18x18x8xf32, #tpu.memory_space<vmem>>, vector<16x16x8xf32>
    %36 = vector.shape_cast %35 : vector<16x16x8xf32> to vector<256x8xf32>
    %37 = arith.truncf %36 : vector<256x8xf32> to vector<256x8xbf16>
    %c0_43 = arith.constant 0 : index
    %c40 = arith.constant 40 : index
    %38 = vector.load %arg10[%c0_43, %c40] : memref<256x72xbf16, #tpu.memory_space<vmem>>, vector<256x8xbf16>
    tpu.vector_store %arg10[%c0_43, %c40], %37 {strides = array<i32>} : memref<256x72xbf16, #tpu.memory_space<vmem>>, vector<256x8xbf16>,
    %c2_44 = arith.constant 2 : index
    %c0_45 = arith.constant 0 : index
    %c0_46 = arith.constant 0 : index
    %39 = vector.load %arg9[%c2_44, %c0_45, %c0_46] : memref<18x18x8xf32, #tpu.memory_space<vmem>>, vector<16x16x8xf32>
    %40 = vector.shape_cast %39 : vector<16x16x8xf32> to vector<256x8xf32>
    %41 = arith.truncf %40 : vector<256x8xf32> to vector<256x8xbf16>
    %c0_47 = arith.constant 0 : index
    %c48 = arith.constant 48 : index
    %42 = vector.load %arg10[%c0_47, %c48] : memref<256x72xbf16, #tpu.memory_space<vmem>>, vector<256x8xbf16>
    tpu.vector_store %arg10[%c0_47, %c48], %41 {strides = array<i32>} : memref<256x72xbf16, #tpu.memory_space<vmem>>, vector<256x8xbf16>,
    %c2_48 = arith.constant 2 : index
    %c1_49 = arith.constant 1 : index
    %c0_50 = arith.constant 0 : index
    %43 = vector.load %arg9[%c2_48, %c1_49, %c0_50] : memref<18x18x8xf32, #tpu.memory_space<vmem>>, vector<16x16x8xf32>
    %44 = vector.shape_cast %43 : vector<16x16x8xf32> to vector<256x8xf32>
    %45 = arith.truncf %44 : vector<256x8xf32> to vector<256x8xbf16>
    %c0_51 = arith.constant 0 : index
    %c56 = arith.constant 56 : index
    %46 = vector.load %arg10[%c0_51, %c56] : memref<256x72xbf16, #tpu.memory_space<vmem>>, vector<256x8xbf16>
    tpu.vector_store %arg10[%c0_51, %c56], %45 {strides = array<i32>} : memref<256x72xbf16, #tpu.memory_space<vmem>>, vector<256x8xbf16>,
    %c2_52 = arith.constant 2 : index
    %c2_53 = arith.constant 2 : index
    %c0_54 = arith.constant 0 : index
    %47 = vector.load %arg9[%c2_52, %c2_53, %c0_54] : memref<18x18x8xf32, #tpu.memory_space<vmem>>, vector<16x16x8xf32>
    %48 = vector.shape_cast %47 : vector<16x16x8xf32> to vector<256x8xf32>
    %49 = arith.truncf %48 : vector<256x8xf32> to vector<256x8xbf16>
    %c0_55 = arith.constant 0 : index
    %c64 = arith.constant 64 : index
    %50 = vector.load %arg10[%c0_55, %c64] : memref<256x72xbf16, #tpu.memory_space<vmem>>, vector<256x8xbf16>
    tpu.vector_store %arg10[%c0_55, %c64], %49 {strides = array<i32>} : memref<256x72xbf16, #tpu.memory_space<vmem>>, vector<256x8xbf16>,
    %c0_56 = arith.constant 0 : index
    %c0_57 = arith.constant 0 : index
    %51 = vector.load %arg10[%c0_56, %c0_57] : memref<256x72xbf16, #tpu.memory_space<vmem>>, vector<256x72xbf16>
    %c0_58 = arith.constant 0 : index
    %c0_59 = arith.constant 0 : index
    %52 = vector.load %arg3[%c0_58, %c0_59] : memref<72x8xbf16, #tpu.memory_space<vmem>>, vector<72x8xbf16>
    %cst_60 = arith.constant dense<0.000000e+00> : vector<256x8xf32>
    %53 = tpu.matmul %51, %52, %cst_60 {dimension_numbers = #tpu.dot_dimension_numbers<[1], [0], [0], [1], [0, 0, 1, 1], [], []>} : vector<256x72xbf16>, vector<72x8xbf16>, vector<256x8xf32> -> vector<256x8xf32>
    %c0_61 = arith.constant 0 : index
    %c0_62 = arith.constant 0 : index
    %54 = vector.load %arg4[%c0_61, %c0_62] : memref<1x8xf32, #tpu.memory_space<vmem>>, vector<1x8xf32>
    %55 = vector.broadcast %54 : vector<1x8xf32> to vector<256x8xf32>
    %56 = arith.addf %53, %55 : vector<256x8xf32>
    %cst_63 = arith.constant 0.000000e+00 : f32
    %57 = vector.broadcast %cst_63 : f32 to vector<256x8xf32>
    %58 = arith.cmpf ogt, %56, %57 : vector<256x8xf32>
    %c0_64 = arith.constant 0 : index
    %c0_65 = arith.constant 0 : index
    %59 = vector.load %arg5[%c0_64, %c0_65] : memref<1x8xf32, #tpu.memory_space<vmem>>, vector<1x8xf32>
    %60 = vector.broadcast %59 : vector<1x8xf32> to vector<256x8xf32>
    %61 = arith.mulf %60, %56 : vector<256x8xf32>
    %62 = arith.select %58, %56, %61 : vector<256x8xi1>, vector<256x8xf32>
    %cst_66 = arith.constant 0.000000e+00 : f32
    %63 = vector.broadcast %cst_66 : f32 to vector<1x18x8xf32>
    %c0_67 = arith.constant 0 : index
    %c0_68 = arith.constant 0 : index
    %c0_69 = arith.constant 0 : index
    %64 = vector.load %arg11[%c0_67, %c0_68, %c0_69] : memref<18x18x8xf32, #tpu.memory_space<vmem>>, vector<1x18x8xf32>
    tpu.vector_store %arg11[%c0_67, %c0_68, %c0_69], %63 {strides = array<i32>} : memref<18x18x8xf32, #tpu.memory_space<vmem>>, vector<1x18x8xf32>,
    %cst_70 = arith.constant 0.000000e+00 : f32
    %65 = vector.broadcast %cst_70 : f32 to vector<1x18x8xf32>
    %c17_71 = arith.constant 17 : index
    %c0_72 = arith.constant 0 : index
    %c0_73 = arith.constant 0 : index
    %66 = vector.load %arg11[%c17_71, %c0_72, %c0_73] : memref<18x18x8xf32, #tpu.memory_space<vmem>>, vector<1x18x8xf32>
    tpu.vector_store %arg11[%c17_71, %c0_72, %c0_73], %65 {strides = array<i32>} : memref<18x18x8xf32, #tpu.memory_space<vmem>>, vector<1x18x8xf32>,
    %cst_74 = arith.constant 0.000000e+00 : f32
    %67 = vector.broadcast %cst_74 : f32 to vector<18x1x8xf32>
    %c0_75 = arith.constant 0 : index
    %c0_76 = arith.constant 0 : index
    %c0_77 = arith.constant 0 : index
    %68 = vector.load %arg11[%c0_75, %c0_76, %c0_77] : memref<18x18x8xf32, #tpu.memory_space<vmem>>, vector<18x1x8xf32>
    tpu.vector_store %arg11[%c0_75, %c0_76, %c0_77], %67 {strides = array<i32>} : memref<18x18x8xf32, #tpu.memory_space<vmem>>, vector<18x1x8xf32>,
    %cst_78 = arith.constant 0.000000e+00 : f32
    %69 = vector.broadcast %cst_78 : f32 to vector<18x1x8xf32>
    %c0_79 = arith.constant 0 : index
    %c17_80 = arith.constant 17 : index
    %c0_81 = arith.constant 0 : index
    %70 = vector.load %arg11[%c0_79, %c17_80, %c0_81] : memref<18x18x8xf32, #tpu.memory_space<vmem>>, vector<18x1x8xf32>
    tpu.vector_store %arg11[%c0_79, %c17_80, %c0_81], %69 {strides = array<i32>} : memref<18x18x8xf32, #tpu.memory_space<vmem>>, vector<18x1x8xf32>,
    %71 = vector.shape_cast %62 : vector<256x8xf32> to vector<16x16x8xf32>
    %c1_82 = arith.constant 1 : index
    %c1_83 = arith.constant 1 : index
    %c0_84 = arith.constant 0 : index
    %72 = vector.load %arg11[%c1_82, %c1_83, %c0_84] : memref<18x18x8xf32, #tpu.memory_space<vmem>>, vector<16x16x8xf32>
    tpu.vector_store %arg11[%c1_82, %c1_83, %c0_84], %71 {strides = array<i32>} : memref<18x18x8xf32, #tpu.memory_space<vmem>>, vector<16x16x8xf32>,
    %c0_85 = arith.constant 0 : index
    %c0_86 = arith.constant 0 : index
    %c0_87 = arith.constant 0 : index
    %73 = vector.load %arg11[%c0_85, %c0_86, %c0_87] : memref<18x18x8xf32, #tpu.memory_space<vmem>>, vector<16x16x8xf32>
    %74 = vector.shape_cast %73 : vector<16x16x8xf32> to vector<256x8xf32>
    %75 = arith.truncf %74 : vector<256x8xf32> to vector<256x8xbf16>
    %c0_88 = arith.constant 0 : index
    %c0_89 = arith.constant 0 : index
    %76 = vector.load %arg12[%c0_88, %c0_89] : memref<256x72xbf16, #tpu.memory_space<vmem>>, vector<256x8xbf16>
    tpu.vector_store %arg12[%c0_88, %c0_89], %75 {strides = array<i32>} : memref<256x72xbf16, #tpu.memory_space<vmem>>, vector<256x8xbf16>,
    %c0_90 = arith.constant 0 : index
    %c1_91 = arith.constant 1 : index
    %c0_92 = arith.constant 0 : index
    %77 = vector.load %arg11[%c0_90, %c1_91, %c0_92] : memref<18x18x8xf32, #tpu.memory_space<vmem>>, vector<16x16x8xf32>
    %78 = vector.shape_cast %77 : vector<16x16x8xf32> to vector<256x8xf32>
    %79 = arith.truncf %78 : vector<256x8xf32> to vector<256x8xbf16>
    %c0_93 = arith.constant 0 : index
    %c8_94 = arith.constant 8 : index
    %80 = vector.load %arg12[%c0_93, %c8_94] : memref<256x72xbf16, #tpu.memory_space<vmem>>, vector<256x8xbf16>
    tpu.vector_store %arg12[%c0_93, %c8_94], %79 {strides = array<i32>} : memref<256x72xbf16, #tpu.memory_space<vmem>>, vector<256x8xbf16>,
    %c0_95 = arith.constant 0 : index
    %c2_96 = arith.constant 2 : index
    %c0_97 = arith.constant 0 : index
    %81 = vector.load %arg11[%c0_95, %c2_96, %c0_97] : memref<18x18x8xf32, #tpu.memory_space<vmem>>, vector<16x16x8xf32>
    %82 = vector.shape_cast %81 : vector<16x16x8xf32> to vector<256x8xf32>
    %83 = arith.truncf %82 : vector<256x8xf32> to vector<256x8xbf16>
    %c0_98 = arith.constant 0 : index
    %c16_99 = arith.constant 16 : index
    %84 = vector.load %arg12[%c0_98, %c16_99] : memref<256x72xbf16, #tpu.memory_space<vmem>>, vector<256x8xbf16>
    tpu.vector_store %arg12[%c0_98, %c16_99], %83 {strides = array<i32>} : memref<256x72xbf16, #tpu.memory_space<vmem>>, vector<256x8xbf16>,
    %c1_100 = arith.constant 1 : index
    %c0_101 = arith.constant 0 : index
    %c0_102 = arith.constant 0 : index
    %85 = vector.load %arg11[%c1_100, %c0_101, %c0_102] : memref<18x18x8xf32, #tpu.memory_space<vmem>>, vector<16x16x8xf32>
    %86 = vector.shape_cast %85 : vector<16x16x8xf32> to vector<256x8xf32>
    %87 = arith.truncf %86 : vector<256x8xf32> to vector<256x8xbf16>
    %c0_103 = arith.constant 0 : index
    %c24_104 = arith.constant 24 : index
    %88 = vector.load %arg12[%c0_103, %c24_104] : memref<256x72xbf16, #tpu.memory_space<vmem>>, vector<256x8xbf16>
    tpu.vector_store %arg12[%c0_103, %c24_104], %87 {strides = array<i32>} : memref<256x72xbf16, #tpu.memory_space<vmem>>, vector<256x8xbf16>,
    %c1_105 = arith.constant 1 : index
    %c1_106 = arith.constant 1 : index
    %c0_107 = arith.constant 0 : index
    %89 = vector.load %arg11[%c1_105, %c1_106, %c0_107] : memref<18x18x8xf32, #tpu.memory_space<vmem>>, vector<16x16x8xf32>
    %90 = vector.shape_cast %89 : vector<16x16x8xf32> to vector<256x8xf32>
    %91 = arith.truncf %90 : vector<256x8xf32> to vector<256x8xbf16>
    %c0_108 = arith.constant 0 : index
    %c32_109 = arith.constant 32 : index
    %92 = vector.load %arg12[%c0_108, %c32_109] : memref<256x72xbf16, #tpu.memory_space<vmem>>, vector<256x8xbf16>
    tpu.vector_store %arg12[%c0_108, %c32_109], %91 {strides = array<i32>} : memref<256x72xbf16, #tpu.memory_space<vmem>>, vector<256x8xbf16>,
    %c1_110 = arith.constant 1 : index
    %c2_111 = arith.constant 2 : index
    %c0_112 = arith.constant 0 : index
    %93 = vector.load %arg11[%c1_110, %c2_111, %c0_112] : memref<18x18x8xf32, #tpu.memory_space<vmem>>, vector<16x16x8xf32>
    %94 = vector.shape_cast %93 : vector<16x16x8xf32> to vector<256x8xf32>
    %95 = arith.truncf %94 : vector<256x8xf32> to vector<256x8xbf16>
    %c0_113 = arith.constant 0 : index
    %c40_114 = arith.constant 40 : index
    %96 = vector.load %arg12[%c0_113, %c40_114] : memref<256x72xbf16, #tpu.memory_space<vmem>>, vector<256x8xbf16>
    tpu.vector_store %arg12[%c0_113, %c40_114], %95 {strides = array<i32>} : memref<256x72xbf16, #tpu.memory_space<vmem>>, vector<256x8xbf16>,
    %c2_115 = arith.constant 2 : index
    %c0_116 = arith.constant 0 : index
    %c0_117 = arith.constant 0 : index
    %97 = vector.load %arg11[%c2_115, %c0_116, %c0_117] : memref<18x18x8xf32, #tpu.memory_space<vmem>>, vector<16x16x8xf32>
    %98 = vector.shape_cast %97 : vector<16x16x8xf32> to vector<256x8xf32>
    %99 = arith.truncf %98 : vector<256x8xf32> to vector<256x8xbf16>
    %c0_118 = arith.constant 0 : index
    %c48_119 = arith.constant 48 : index
    %100 = vector.load %arg12[%c0_118, %c48_119] : memref<256x72xbf16, #tpu.memory_space<vmem>>, vector<256x8xbf16>
    tpu.vector_store %arg12[%c0_118, %c48_119], %99 {strides = array<i32>} : memref<256x72xbf16, #tpu.memory_space<vmem>>, vector<256x8xbf16>,
    %c2_120 = arith.constant 2 : index
    %c1_121 = arith.constant 1 : index
    %c0_122 = arith.constant 0 : index
    %101 = vector.load %arg11[%c2_120, %c1_121, %c0_122] : memref<18x18x8xf32, #tpu.memory_space<vmem>>, vector<16x16x8xf32>
    %102 = vector.shape_cast %101 : vector<16x16x8xf32> to vector<256x8xf32>
    %103 = arith.truncf %102 : vector<256x8xf32> to vector<256x8xbf16>
    %c0_123 = arith.constant 0 : index
    %c56_124 = arith.constant 56 : index
    %104 = vector.load %arg12[%c0_123, %c56_124] : memref<256x72xbf16, #tpu.memory_space<vmem>>, vector<256x8xbf16>
    tpu.vector_store %arg12[%c0_123, %c56_124], %103 {strides = array<i32>} : memref<256x72xbf16, #tpu.memory_space<vmem>>, vector<256x8xbf16>,
    %c2_125 = arith.constant 2 : index
    %c2_126 = arith.constant 2 : index
    %c0_127 = arith.constant 0 : index
    %105 = vector.load %arg11[%c2_125, %c2_126, %c0_127] : memref<18x18x8xf32, #tpu.memory_space<vmem>>, vector<16x16x8xf32>
    %106 = vector.shape_cast %105 : vector<16x16x8xf32> to vector<256x8xf32>
    %107 = arith.truncf %106 : vector<256x8xf32> to vector<256x8xbf16>
    %c0_128 = arith.constant 0 : index
    %c64_129 = arith.constant 64 : index
    %108 = vector.load %arg12[%c0_128, %c64_129] : memref<256x72xbf16, #tpu.memory_space<vmem>>, vector<256x8xbf16>
    tpu.vector_store %arg12[%c0_128, %c64_129], %107 {strides = array<i32>} : memref<256x72xbf16, #tpu.memory_space<vmem>>, vector<256x8xbf16>,
    %c0_130 = arith.constant 0 : index
    %c0_131 = arith.constant 0 : index
    %109 = vector.load %arg12[%c0_130, %c0_131] : memref<256x72xbf16, #tpu.memory_space<vmem>>, vector<256x72xbf16>
    %c0_132 = arith.constant 0 : index
    %c0_133 = arith.constant 0 : index
    %110 = vector.load %arg6[%c0_132, %c0_133] : memref<72x8xbf16, #tpu.memory_space<vmem>>, vector<72x8xbf16>
    %cst_134 = arith.constant dense<0.000000e+00> : vector<256x8xf32>
    %111 = tpu.matmul %109, %110, %cst_134 {dimension_numbers = #tpu.dot_dimension_numbers<[1], [0], [0], [1], [0, 0, 1, 1], [], []>} : vector<256x72xbf16>, vector<72x8xbf16>, vector<256x8xf32> -> vector<256x8xf32>
    %c0_135 = arith.constant 0 : index
    %c0_136 = arith.constant 0 : index
    %112 = vector.load %arg7[%c0_135, %c0_136] : memref<1x8xf32, #tpu.memory_space<vmem>>, vector<1x8xf32>
    %113 = vector.broadcast %112 : vector<1x8xf32> to vector<256x8xf32>
    %114 = arith.addf %111, %113 : vector<256x8xf32>
    %115 = arith.addf %114, %1 : vector<256x8xf32>
    %c0_137 = arith.constant 0 : index
    %c0_138 = arith.constant 0 : index
    %c0_139 = arith.constant 0 : index
    %116 = vector.load %arg8[%c0_137, %c0_138, %c0_139] : memref<1x256x8xf32, #tpu.memory_space<vmem>>, vector<1x256x8xf32>
    %117 = vector.shape_cast %116 : vector<1x256x8xf32> to vector<256x8xf32>
    %118 = vector.shape_cast %115 : vector<256x8xf32> to vector<1x256x8xf32>
    tpu.vector_store %arg8[%c0_137, %c0_138, %c0_139], %118 {strides = array<i32>} : memref<1x256x8xf32, #tpu.memory_space<vmem>>, vector<1x256x8xf32>,
    return
  }
  func.func @transform_0(%arg0: i32) -> (i32, i32, i32) {
    %c0_i32 = arith.constant 0 : i32
    %c0_i32_0 = arith.constant 0 : i32
    %c0_i32_1 = arith.constant 0 : i32
    return %arg0, %c0_i32, %c0_i32_0 : i32, i32, i32
  }
  func.func @transform_1(%arg0: i32) -> (i32, i32) {
    %c0_i32 = arith.constant 0 : i32
    %c0_i32_0 = arith.constant 0 : i32
    %c0_i32_1 = arith.constant 0 : i32
    return %c0_i32, %c0_i32_0 : i32, i32
  }
  func.func @transform_2(%arg0: i32) -> (i32, i32) {
    %c0_i32 = arith.constant 0 : i32
    %c0_i32_0 = arith.constant 0 : i32
    %c0_i32_1 = arith.constant 0 : i32
    return %c0_i32, %c0_i32_0 : i32, i32
  }
  func.func @transform_3(%arg0: i32) -> (i32, i32) {
    %c0_i32 = arith.constant 0 : i32
    %c0_i32_0 = arith.constant 0 : i32
    %c0_i32_1 = arith.constant 0 : i32
    return %c0_i32, %c0_i32_0 : i32, i32
  }
  func.func @transform_4(%arg0: i32) -> (i32, i32) {
    %c0_i32 = arith.constant 0 : i32
    %c0_i32_0 = arith.constant 0 : i32
    %c0_i32_1 = arith.constant 0 : i32
    return %c0_i32, %c0_i32_0 : i32, i32
  }
  func.func @transform_5(%arg0: i32) -> (i32, i32) {
    %c0_i32 = arith.constant 0 : i32
    %c0_i32_0 = arith.constant 0 : i32
    %c0_i32_1 = arith.constant 0 : i32
    return %c0_i32, %c0_i32_0 : i32, i32
  }
  func.func @transform_6(%arg0: i32) -> (i32, i32) {
    %c0_i32 = arith.constant 0 : i32
    %c0_i32_0 = arith.constant 0 : i32
    %c0_i32_1 = arith.constant 0 : i32
    return %c0_i32, %c0_i32_0 : i32, i32
  }
  func.func @transform_7(%arg0: i32) -> (i32, i32, i32) {
    %c0_i32 = arith.constant 0 : i32
    %c0_i32_0 = arith.constant 0 : i32
    %c0_i32_1 = arith.constant 0 : i32
    return %arg0, %c0_i32, %c0_i32_0 : i32, i32, i32
  }
}

</mosaic_0001>

<bundles_post_ra>
// kernel: tpu_custom_call.1
= control target key start
LH: loop header
LB: loop body
LE: loop exit
PB: predicated region body
PF: predicated region fallthrough
CT: control target
= control target key end

     0   :  { %s5463_s24 = smov 0   ;;  %s7736_s0 = inlined_call_operand.vmem [shape: f32[2,256,8], index: 0, kind: input, shape index: {}]   ;;  %s7737_s1 = inlined_call_operand.vmem [shape: f32[1,8], index: 1, kind: input, shape index: {}]   ;;  %s7738_s2 = inlined_call_operand.vmem [shape: bf16[72,8], index: 2, kind: input, shape index: {}]   ;;  %s7739_s3 = inlined_call_operand.vmem [shape: f32[1,8], index: 3, kind: input, shape index: {}]   ;;  %s7740_s4 = inlined_call_operand.vmem [shape: f32[1,8], index: 4, kind: input, shape index: {}]   ;;  %s7741_s5 = inlined_call_operand.vmem [shape: bf16[72,8], index: 5, kind: input, shape index: {}]   ;;  %s7742_s6 = inlined_call_operand.vmem [shape: f32[1,8], index: 6, kind: input, shape index: {}]   ;;  %s7743_s7 = inlined_call_operand.vmem [shape: f32[2,256,8], index: 7, kind: output, shape index: {}]  }
   0x1 LB: > { %s5095_s25 = sadd.s32 4294967295, %s5412_s24   ;;  %p5099_p0 = scmp.ge.s32.totalorder %s5412_s24, 1  ;;  %s5412_s24 = sphi %s5463_s24, %s17_s24  }
   0x2   : > { %p237_p1 = scmp.lt.s32.totalorder %s5412_s24, 3 }
   0x4   : > { %p238_p2 = pnand %p5099_p0, %p237_p1 }
   0x5   : > { %s5415_s26 = smov (!%p238_p2), 8   ;;  %p269_p3 = scmp.lt.s32.totalorder (!%p238_p2), %s5095_s25, 1 }
   0x6   : > { %241 = sbr.rel (%p238_p2) target bundleno = 1971 (0x7b3), region = 48  ;;  %s5416_s10 = smov (!%p238_p2), 16  }
   0x7   : > { %s5417_s11 = smov (!%p238_p2), 24   ;;  %s5418_s14 = smov (!%p238_p2), 32  }
   0x8   : > { %s5419_s15 = smov (!%p238_p2), 40   ;;  %s5420_s16 = smov (!%p238_p2), 48  }
   0x9   : > { %s5421_s17 = smov (!%p238_p2), 56   ;;  %s5422_s18 = smov (!%p238_p2), 64  }
   0xb   : > { %vm348_vm0 = vcmask 64512   ;;  %v5414_v0 = vmov 0.0   ;;  %vm357_vm1 = vcmask 57344   ;;  %s7745_s25 = smov (!%p269_p3, %s5095_s25), 1  ;;  %vm351_vm2 = vcmask 58368  }
   0xc   : > { %349 = vst.msk [vmem:[#allocation2] sm:$0xff] %vm348_vm0, %v5414_v0  ;;  %s5298_s27 = sshll.u32 %s7745_s25, 8  ;;  %v5636_v3 = vld [vmem:[%s7737_s1] ss:$0 sm:$0xff]  ;;  %vm491_vm3 = vcmask 60416   ;;  %vm716_vm4 = vcmask 126016  }
   0xd   : > { %350 = vst.msk [vmem:[#allocation2 + $0x8] sm:$0xff] %vm348_vm0, %v5414_v0  ;;  %s5628_s30 = scalar_lea.vmem %s7736_s0, %s5298_s27  ;;  %vm941_vm5 = vcmask 191616   ;;  %vm1166_vm6 = vcmask 257216   ;;  %vm1391_vm7 = vcmask 322816   ;;  %vm1616_vm8 = vcmask 388416  }
   0xe   : > { %358 = vst.msk [vmem:[#allocation2] sm:$0x1] %vm357_vm1, %v5414_v0  ;;  %v280_v4 = vld [vmem:[%s5628_s30] sm:$0xff]  ;;  %v281_v7 = vld [vmem:[%s5628_s30 + $0x8] sm:$0xff]  ;;  %v287_v9 = vld [vmem:[%s5628_s30 + $0x38] sm:$0xff]  ;;  %vm1842_vm9 = vcmask 454016  }
   0xf   : > { %354 = vst.msk [vmem:[#allocation2 + $0x198] sm:$0xff] %vm348_vm0, %v5414_v0  ;;  %v316_v5 = vadd.f32 %v5636_v3, %v280_v4  ;;  %v284_v6 = vld [vmem:[%s5628_s30 + $0x20] sm:$0xff]  ;;  %v285_v12 = vld [vmem:[%s5628_s30 + $0x28] sm:$0xff]  ;;  %v317_v13 = vadd.f32 %v5636_v3, %v281_v7  ;;  %v290_v14 = vld [vmem:[%s5628_s30 + $0x50] sm:$0xff]  ;;  %v323_v15 = vadd.f32 %v5636_v3, %v287_v9  ;;  %vm2067_vm10 = vcmask 519616  }
  0x10   : > { %355 = vst.msk [vmem:[#allocation2 + $0x1a0] sm:$0xff] %vm348_vm0, %v5414_v0  ;;  %v320_v11 = vadd.f32 %v5636_v3, %v284_v6  ;;  %v282_v16 = vld [vmem:[%s5628_s30 + $0x10] sm:$0xff]  ;;  %v321_v17 = vadd.f32 %v5636_v3, %v285_v12  ;;  %v288_v18 = vld [vmem:[%s5628_s30 + $0x40] sm:$0xff]  ;;  %v326_v19 = vadd.f32 %v5636_v3, %v290_v14  ;;  %v293_v20 = vld [vmem:[%s5628_s30 + $0x68] sm:$0xff]  ;;  %vm2526_vm11 = vcmask 1043456  }
  0x11   : > { %359 = vst.msk [vmem:[#allocation2 + $0x18] sm:$0x1] %vm357_vm1, %v5414_v0  ;;  %v318_v21 = vadd.f32 %v5636_v3, %v282_v16  ;;  %v283_v22 = vld [vmem:[%s5628_s30 + $0x18] sm:$0xff]  ;;  %v324_v23 = vadd.f32 %v5636_v3, %v288_v18  ;;  %v329_v26 = vadd.f32 %v5636_v3, %v293_v20  ;;  %v296_v27 = vld [vmem:[%s5628_s30 + $0x80] sm:$0xff]  ;;  %v286_v30 = vld [vmem:[%s5628_s30 + $0x30] sm:$0xff]  ;;  %vm2292_vm12 = vcmask 585216  }
  0x12   : > { %360 = vst.msk [vmem:[#allocation2 + $0x30] sm:$0x1] %vm357_vm1, %v5414_v0  ;;  %v291_v24 = vld [vmem:[%s5628_s30 + $0x58] sm:$0xff]  ;;  %v319_v29 = vadd.f32 %v5636_v3, %v283_v22  ;;  %v294_v32 = vld [vmem:[%s5628_s30 + $0x70] sm:$0xff]  ;;  %v332_v33 = vadd.f32 %v5636_v3, %v296_v27  ;;  %v322_v35 = vadd.f32 %v5636_v3, %v286_v30  ;;  %v289_v40 = vld [vmem:[%s5628_s30 + $0x48] sm:$0xff]  ;;  %vm2477_vm13 = vcmask 588800  }
  0x13   : > { %361 = vst.msk [vmem:[#allocation2 + $0x48] sm:$0x1] %vm357_vm1, %v5414_v0  ;;  %v327_v31 = vadd.f32 %v5636_v3, %v291_v24  ;;  %v330_v38 = vadd.f32 %v5636_v3, %v294_v32  ;;  %v299_v39 = vld [vmem:[%s5628_s30 + $0x98] sm:$0xff]  ;;  %v325_v43 = vadd.f32 %v5636_v3, %v289_v40  ;;  %v297_v44 = vld [vmem:[%s5628_s30 + $0x88] sm:$0xff]  ;;  %v302_v52 = vld [vmem:[%s5628_s30 + $0xb0] sm:$0xff] }
  0x14   : > { %v524_v1 = vld [vmem:[#allocation2 + $0x1] sm:$0xff]  ;;  %362 = vst.msk [vmem:[#allocation2 + $0x60] sm:$0x1] %vm357_vm1, %v5414_v0  ;;  %v335_v42 = vadd.f32 %v5636_v3, %v299_v39  ;;  %v333_v46 = vadd.f32 %v5636_v3, %v297_v44  ;;  %v338_v55 = vadd.f32 %v5636_v3, %v302_v52  ;;  %v298_v14 = vld [vmem:[%s5628_s30 + $0x90] sm:$0xff] }
  0x15   : > { %v556_v2 = vpack.c.bf16 %v524_v1, %v524_v1  ;;  %363 = vst.msk [vmem:[#allocation2 + $0x78] sm:$0x1] %vm357_vm1, %v5414_v0  ;;  %v292_v53 = vld [vmem:[%s5628_s30 + $0x60] sm:$0xff]  ;;  %v295_v1 = vld [vmem:[%s5628_s30 + $0x78] sm:$0xff]  ;;  %v334_v18 = vadd.f32 %v5636_v3, %v298_v14 }
  0x16   : > { %364 = vst.msk [vmem:[#allocation2 + $0x90] sm:$0x1] %vm357_vm1, %v5414_v0  ;;  %v328_v56 = vadd.f32 %v5636_v3, %v292_v53  ;;  %v300_v57 = vld [vmem:[%s5628_s30 + $0xa0] sm:$0xff]  ;;  %v331_v6 = vadd.f32 %v5636_v3, %v295_v1 }
  0x17   : > { %620 = vrot.lane.b32.xlu0 %v556_v2, %s5415_s26  ;;  %365 = vst.msk [vmem:[#allocation2 + $0xa8] sm:$0x1] %vm357_vm1, %v5414_v0  ;;  %v336_v60 = vadd.f32 %v5636_v3, %v300_v57  ;;  %v303_v2 = vld [vmem:[%s5628_s30 + $0xb8] sm:$0xff] }
  0x18   : > { %366 = vst.msk [vmem:[#allocation2 + $0xc0] sm:$0x1] %vm357_vm1, %v5414_v0  ;;  %v339_v7 = vadd.f32 %v5636_v3, %v303_v2 }
  0x19   : > { %367 = vst.msk [vmem:[#allocation2 + $0xd8] sm:$0x1] %vm357_vm1, %v5414_v0 }
  0x1a   : > { %368 = vst.msk [vmem:[#allocation2 + $0xf0] sm:$0x1] %vm357_vm1, %v5414_v0 }
  0x1b   : > { %369 = vst.msk [vmem:[#allocation2 + $0x108] sm:$0x1] %vm357_vm1, %v5414_v0 }
  0x1c   : > { %370 = vst.msk [vmem:[#allocation2 + $0x120] sm:$0x1] %vm357_vm1, %v5414_v0 }
  0x1d   : > { %371 = vst.msk [vmem:[#allocation2 + $0x138] sm:$0x1] %vm357_vm1, %v5414_v0 }
  0x1e   : > { %372 = vst.msk [vmem:[#allocation2 + $0x150] sm:$0x1] %vm357_vm1, %v5414_v0 }
  0x1f   : > { %373 = vst.msk [vmem:[#allocation2 + $0x168] sm:$0x1] %vm357_vm1, %v5414_v0 }
  0x20   : > { %374 = vst.msk [vmem:[#allocation2 + $0x180] sm:$0x1] %vm357_vm1, %v5414_v0 }
  0x21   : > { %377 = vst.msk [vmem:[#allocation2 + $0x29] sm:$0x1] %vm357_vm1, %v5414_v0 }
  0x22   : > { %378 = vst.msk [vmem:[#allocation2 + $0x41] sm:$0x1] %vm357_vm1, %v5414_v0 }
  0x23   : > { %379 = vst.msk [vmem:[#allocation2 + $0x59] sm:$0x1] %vm357_vm1, %v5414_v0 }
  0x24   : > { %380 = vst.msk [vmem:[#allocation2 + $0x71] sm:$0x1] %vm357_vm1, %v5414_v0 }
  0x25   : > { %381 = vst.msk [vmem:[#allocation2 + $0x89] sm:$0x1] %vm357_vm1, %v5414_v0 }
  0x26   : > { %382 = vst.msk [vmem:[#allocation2 + $0xa1] sm:$0x1] %vm357_vm1, %v5414_v0 }
  0x27   : > { %383 = vst.msk [vmem:[#allocation2 + $0xb9] sm:$0x1] %vm357_vm1, %v5414_v0 }
  0x28   : > { %384 = vst.msk [vmem:[#allocation2 + $0xd1] sm:$0x1] %vm357_vm1, %v5414_v0 }
  0x29   : > { %385 = vst.msk [vmem:[#allocation2 + $0xe9] sm:$0x1] %vm357_vm1, %v5414_v0 }
  0x2a   : > { %386 = vst.msk [vmem:[#allocation2 + $0x101] sm:$0x1] %vm357_vm1, %v5414_v0 }
  0x2b   : > { %387 = vst.msk [vmem:[#allocation2 + $0x119] sm:$0x1] %vm357_vm1, %v5414_v0 }
  0x2c   : > { %388 = vst.msk [vmem:[#allocation2 + $0x131] sm:$0x1] %vm357_vm1, %v5414_v0 }
  0x2d   : > { %389 = vst.msk [vmem:[#allocation2 + $0x149] sm:$0x1] %vm357_vm1, %v5414_v0 }
  0x2e   : > { %390 = vst.msk [vmem:[#allocation2 + $0x161] sm:$0x1] %vm357_vm1, %v5414_v0 }
  0x2f   : > { %391 = vst.msk [vmem:[#allocation2 + $0x179] sm:$0x1] %vm357_vm1, %v5414_v0 }
  0x30   : > { %392 = vst.msk [vmem:[#allocation2 + $0x191] sm:$0x1] %vm357_vm1, %v5414_v0 }
  0x31   : > { %2719 = vst.msk [vmem:[#allocation4] sm:$0xff] %vm348_vm0, %v5414_v0 }
  0x32   : > { %2720 = vst.msk [vmem:[#allocation4 + $0x8] sm:$0xff] %vm348_vm0, %v5414_v0 }
  0x33   : > { %2723 = vst.msk [vmem:[#allocation4 + $0x198] sm:$0xff] %vm348_vm0, %v5414_v0 }
  0x34   : > { %2724 = vst.msk [vmem:[#allocation4 + $0x1a0] sm:$0xff] %vm348_vm0, %v5414_v0 }
  0x35   : > { %2727 = vst.msk [vmem:[#allocation4 + $0x18] sm:$0x1] %vm357_vm1, %v5414_v0 }
  0x36   : > { %2728 = vst.msk [vmem:[#allocation4 + $0x30] sm:$0x1] %vm357_vm1, %v5414_v0 }
  0x37   : > { %2729 = vst.msk [vmem:[#allocation4 + $0x48] sm:$0x1] %vm357_vm1, %v5414_v0 }
  0x38   : > { %2730 = vst.msk [vmem:[#allocation4 + $0x60] sm:$0x1] %vm357_vm1, %v5414_v0 }
  0x39   : > { %2731 = vst.msk [vmem:[#allocation4 + $0x78] sm:$0x1] %vm357_vm1, %v5414_v0 }
  0x3a   : > { %2732 = vst.msk [vmem:[#allocation4 + $0x90] sm:$0x1] %vm357_vm1, %v5414_v0 }
  0x3b   : > { %2733 = vst.msk [vmem:[#allocation4 + $0xa8] sm:$0x1] %vm357_vm1, %v5414_v0 }
  0x3c   : > { %2734 = vst.msk [vmem:[#allocation4 + $0xc0] sm:$0x1] %vm357_vm1, %v5414_v0 }
  0x3d   : > { %2735 = vst.msk [vmem:[#allocation4 + $0xd8] sm:$0x1] %vm357_vm1, %v5414_v0 }
  0x3e   : > { %2736 = vst.msk [vmem:[#allocation4 + $0xf0] sm:$0x1] %vm357_vm1, %v5414_v0 }
  0x3f   : > { %2737 = vst.msk [vmem:[#allocation4 + $0x108] sm:$0x1] %vm357_vm1, %v5414_v0 }
  0x40   : > { %2738 = vst.msk [vmem:[#allocation4 + $0x120] sm:$0x1] %vm357_vm1, %v5414_v0 }
  0x41   : > { %2739 = vst.msk [vmem:[#allocation4 + $0x138] sm:$0x1] %vm357_vm1, %v5414_v0 }
  0x42   : > { %2740 = vst.msk [vmem:[#allocation4 + $0x150] sm:$0x1] %vm357_vm1, %v5414_v0 }
  0x43   : > { %2741 = vst.msk [vmem:[#allocation4 + $0x168] sm:$0x1] %vm357_vm1, %v5414_v0 }
  0x44   : > { %2742 = vst.msk [vmem:[#allocation4 + $0x180] sm:$0x1] %vm357_vm1, %v5414_v0 }
  0x45   : > { %2745 = vst.msk [vmem:[#allocation4 + $0x29] sm:$0x1] %vm357_vm1, %v5414_v0 }
  0x46   : > { %2746 = vst.msk [vmem:[#allocation4 + $0x41] sm:$0x1] %vm357_vm1, %v5414_v0 }
  0x47   : > { %2747 = vst.msk [vmem:[#allocation4 + $0x59] sm:$0x1] %vm357_vm1, %v5414_v0 }
  0x48   : > { %2748 = vst.msk [vmem:[#allocation4 + $0x71] sm:$0x1] %vm357_vm1, %v5414_v0 }
  0x49   : > { %2749 = vst.msk [vmem:[#allocation4 + $0x89] sm:$0x1] %vm357_vm1, %v5414_v0 }
  0x4a   : > { %2750 = vst.msk [vmem:[#allocation4 + $0xa1] sm:$0x1] %vm357_vm1, %v5414_v0 }
  0x4b   : > { %2751 = vst.msk [vmem:[#allocation4 + $0xb9] sm:$0x1] %vm357_vm1, %v5414_v0 }
  0x4c   : > { %2752 = vst.msk [vmem:[#allocation4 + $0xd1] sm:$0x1] %vm357_vm1, %v5414_v0 }
  0x4d   : > { %2753 = vst.msk [vmem:[#allocation4 + $0xe9] sm:$0x1] %vm357_vm1, %v5414_v0 }
  0x4e   : > { %2754 = vst.msk [vmem:[#allocation4 + $0x101] sm:$0x1] %vm357_vm1, %v5414_v0 }
  0x4f   : > { %2755 = vst.msk [vmem:[#allocation4 + $0x119] sm:$0x1] %vm357_vm1, %v5414_v0 }
  0x50   : > { %2756 = vst.msk [vmem:[#allocation4 + $0x131] sm:$0x1] %vm357_vm1, %v5414_v0 }
  0x51   : > { %2757 = vst.msk [vmem:[#allocation4 + $0x149] sm:$0x1] %vm357_vm1, %v5414_v0 }
  0x52   : > { %2758 = vst.msk [vmem:[#allocation4 + $0x161] sm:$0x1] %vm357_vm1, %v5414_v0 }
  0x53   : > { %2759 = vst.msk [vmem:[#allocation4 + $0x179] sm:$0x1] %vm357_vm1, %v5414_v0 }
  0x54   : > { %2760 = vst.msk [vmem:[#allocation4 + $0x191] sm:$0x1] %vm357_vm1, %v5414_v0 }
  0x55   : > { %352 = vst.msk [vmem:[#allocation2 + $0x10] sm:$0x3] %vm351_vm2, %v5414_v0 }
  0x56   : > { %356 = vst.msk [vmem:[#allocation2 + $0x1a8] sm:$0x3] %vm351_vm2, %v5414_v0 }
  0x57   : > { %375 = vst.msk [vmem:[#allocation2 + $0x198] sm:$0x1] %vm357_vm1, %v5414_v0 }
  0x58   : > { %376 = vst.msk [vmem:[#allocation2 + $0x11] sm:$0x1] %vm357_vm1, %v5414_v0 }
  0x59   : > { %2721 = vst.msk [vmem:[#allocation4 + $0x10] sm:$0x3] %vm351_vm2, %v5414_v0 }
  0x5a   : > { %2725 = vst.msk [vmem:[#allocation4 + $0x1a8] sm:$0x3] %vm351_vm2, %v5414_v0 }
  0x5b   : > { %2726 = vst.msk [vmem:[#allocation4] sm:$0x1] %vm357_vm1, %v5414_v0 }
  0x5c   : > { %v525_v8 = vld [vmem:[#allocation2 + $0x9] sm:$0xff]  ;;  %2743 = vst.msk [vmem:[#allocation4 + $0x198] sm:$0x1] %vm357_vm1, %v5414_v0 }
  0x5d   : > { %v557_v10 = vpack.c.bf16 %v525_v8, %v525_v8  ;;  %395 = vst.msk [vmem:[#allocation2 + $0x19] sm:$0xff] %vm348_vm0, %v316_v5 }
  0x5e   : > { %393 = vst.msk [vmem:[#allocation2 + $0x1a9] sm:$0x1] %vm357_vm1, %v5414_v0 }
  0x5f   : > { %622 = vrot.lane.b32.xlu0 %v557_v10, %s5415_s26  ;;  %2744 = vst.msk [vmem:[#allocation4 + $0x11] sm:$0x1] %vm357_vm1, %v5414_v0 }
  0x60   : > { %2761 = vst.msk [vmem:[#allocation4 + $0x1a9] sm:$0x1] %vm357_vm1, %v5414_v0  ;;  %v305_v0 = vld [vmem:[%s5628_s30 + $0xc8] sm:$0xff] }
  0x61   : > { %399 = vst.msk [vmem:[#allocation2 + $0x49] sm:$0xff] %vm348_vm0, %v320_v11  ;;  %v341_v5 = vadd.f32 %v5636_v3, %v305_v0 }
  0x62   : > { %396 = vst.msk [vmem:[#allocation2 + $0x21] sm:$0xff] %vm348_vm0, %v317_v13  ;;  %v308_v13 = vld [vmem:[%s5628_s30 + $0xe0] sm:$0xff] }
  0x63   : > { %402 = vst.msk [vmem:[#allocation2 + $0x69] sm:$0xff] %vm348_vm0, %v323_v15  ;;  %v306_v15 = vld [vmem:[%s5628_s30 + $0xd0] sm:$0xff] }
  0x64   : > { %v526_v25 = vld [vmem:[#allocation2 + $0x19] sm:$0xff]  ;;  %400 = vst.msk [vmem:[#allocation2 + $0x51] sm:$0xff] %vm348_vm0, %v321_v17  ;;  %v344_v17 = vadd.f32 %v5636_v3, %v308_v13  ;;  %v749_v13 = vld [vmem:[#allocation2 + $0x2] sm:$0xff] }
  0x65   : > { %v558_v28 = vpack.c.bf16 %v526_v25, %v526_v25  ;;  %405 = vst.msk [vmem:[#allocation2 + $0x91] sm:$0xff] %vm348_vm0, %v326_v19  ;;  %v342_v19 = vadd.f32 %v5636_v3, %v306_v15  ;;  %v301_v25 = vld [vmem:[%s5628_s30 + $0xa8] sm:$0xff] }
  0x66   : > { %397 = vst.msk [vmem:[#allocation2 + $0x31] sm:$0xff] %vm348_vm0, %v318_v21 }
  0x67   : > { %624 = vrot.lane.b32.xlu1 %v558_v28, %s5415_s26  ;;  %403 = vst.msk [vmem:[#allocation2 + $0x79] sm:$0xff] %vm348_vm0, %v324_v23  ;;  %v337_v28 = vadd.f32 %v5636_v3, %v301_v25 }
  0x68   : > { %v530_v34 = vld [vmem:[#allocation2 + $0x49] sm:$0xff]  ;;  %408 = vst.msk [vmem:[#allocation2 + $0xb1] sm:$0xff] %vm348_vm0, %v329_v26 }
  0x69   : > { %v562_v36 = vpack.c.bf16 %v530_v34, %v530_v34  ;;  %v527_v37 = vld [vmem:[#allocation2 + $0x21] sm:$0xff]  ;;  %398 = vst.msk [vmem:[#allocation2 + $0x39] sm:$0xff] %vm348_vm0, %v319_v29 }
  0x6a   : > { %406 = vst.msk [vmem:[#allocation2 + $0x99] sm:$0xff] %vm348_vm0, %v327_v31  ;;  %v559_v41 = vpack.c.bf16 %v527_v37, %v527_v37  ;;  %v533_v45 = vld [vmem:[#allocation2 + $0x69] sm:$0xff] }
  0x6b   : > { %632 = vrot.lane.b32.xlu0 %v562_v36, %s5415_s26  ;;  %411 = vst.msk [vmem:[#allocation2 + $0xd9] sm:$0xff] %vm348_vm0, %v332_v33  ;;  %v565_v49 = vpack.c.bf16 %v533_v45, %v533_v45  ;;  %v531_v50 = vld [vmem:[#allocation2 + $0x51] sm:$0xff]  ;;  %v309_v26 = vld [vmem:[%s5628_s30 + $0xe8] sm:$0xff] }
  0x6c   : > { %401 = vst.msk [vmem:[#allocation2 + $0x61] sm:$0xff] %vm348_vm0, %v322_v35  ;;  %v563_v54 = vpack.c.bf16 %v531_v50, %v531_v50  ;;  %v536_v58 = vld [vmem:[#allocation2 + $0x91] sm:$0xff]  ;;  %v345_v29 = vadd.f32 %v5636_v3, %v309_v26  ;;  %v304_v35 = vld [vmem:[%s5628_s30 + $0xc0] sm:$0xff] }
  0x6d   : > { %v528_v47 = vld [vmem:[#allocation2 + $0x31] sm:$0xff]  ;;  %409 = vst.msk [vmem:[#allocation2 + $0xc1] sm:$0xff] %vm348_vm0, %v330_v38  ;;  %v568_v61 = vpack.c.bf16 %v536_v58, %v536_v58  ;;  %v340_v37 = vadd.f32 %v5636_v3, %v304_v35  ;;  %v752_v25 = vld [vmem:[#allocation2 + $0x22] sm:$0xff] }
  0x6e   : > { %v560_v48 = vpack.c.bf16 %v528_v47, %v528_v47  ;;  %414 = vst.msk [vmem:[#allocation2 + $0xf9] sm:$0xff] %vm348_vm0, %v335_v42  ;;  %v534_v62 = vld [vmem:[#allocation2 + $0x79] sm:$0xff]  ;;  %v750_v58 = vld [vmem:[#allocation2 + $0xa] sm:$0xff] }
  0x6f   : > { %626 = vrot.lane.b32.xlu1 %v559_v41, %s5415_s26  ;;  %404 = vst.msk [vmem:[#allocation2 + $0x81] sm:$0xff] %vm348_vm0, %v325_v43  ;;  %v566_v4 = vpack.c.bf16 %v534_v62, %v534_v62  ;;  %v539_v8 = vld [vmem:[#allocation2 + $0xb1] sm:$0xff] }
  0x70   : > { %628 = vrot.lane.b32.xlu2 %v560_v48, %s5415_s26  ;;  %412 = vst.msk [vmem:[#allocation2 + $0xe1] sm:$0xff] %vm348_vm0, %v333_v46  ;;  %v529_v51 = vld [vmem:[#allocation2 + $0x39] sm:$0xff]  ;;  %v571_v10 = vpack.c.bf16 %v539_v8, %v539_v8  ;;  %v434_v35 = vld [vmem:[#allocation2 + $0x50] sm:$0xff] }
  0x71   : > { %v561_v59 = vpack.c.bf16 %v529_v51, %v529_v51  ;;  %417 = vst.msk [vmem:[#allocation2 + $0x121] sm:$0xff] %vm348_vm0, %v338_v55  ;;  %v537_v11 = vld [vmem:[#allocation2 + $0x99] sm:$0xff] }
  0x72   : > { %407 = vst.msk [vmem:[#allocation2 + $0xa9] sm:$0xff] %vm348_vm0, %v328_v56  ;;  %v569_v16 = vpack.c.bf16 %v537_v11, %v537_v11  ;;  %v542_v20 = vld [vmem:[#allocation2 + $0xd9] sm:$0xff] }
  0x73   : > { %638 = vrot.lane.b32.xlu0 %v565_v49, %s5415_s26  ;;  %415 = vst.msk [vmem:[#allocation2 + $0x109] sm:$0xff] %vm348_vm0, %v336_v60  ;;  %v532_v63 = vld [vmem:[#allocation2 + $0x61] sm:$0xff]  ;;  %v574_v22 = vpack.c.bf16 %v542_v20, %v542_v20  ;;  %v307_v43 = vld [vmem:[%s5628_s30 + $0xd8] sm:$0xff] }
  0x74   : > { %v564_v9 = vpack.c.bf16 %v532_v63, %v532_v63  ;;  %420 = vst.msk [vmem:[#allocation2 + $0x141] sm:$0xff] %vm348_vm0, %v341_v5  ;;  %v540_v23 = vld [vmem:[#allocation2 + $0xc1] sm:$0xff]  ;;  %v343_v45 = vadd.f32 %v5636_v3, %v307_v43  ;;  %v439_v43 = vld [vmem:[#allocation2 + $0x90] sm:$0xff] }
  0x75   : > { %410 = vst.msk [vmem:[#allocation2 + $0xc9] sm:$0xff] %vm348_vm0, %v331_v6  ;;  %v572_v27 = vpack.c.bf16 %v540_v23, %v540_v23  ;;  %v545_v30 = vld [vmem:[#allocation2 + $0xf9] sm:$0xff]  ;;  %v428_v6 = vld [vmem:[#allocation2 + $0x8] sm:$0xff] }
  0x76   : > { %418 = vst.msk [vmem:[#allocation2 + $0x129] sm:$0xff] %vm348_vm0, %v339_v7  ;;  %v535_v12 = vld [vmem:[#allocation2 + $0x81] sm:$0xff]  ;;  %v577_v32 = vpack.c.bf16 %v545_v30, %v545_v30  ;;  %v431_v7 = vld [vmem:[#allocation2 + $0x30] sm:$0xff] }
  0x77   : > { %634 = vrot.lane.b32.xlu1 %v563_v54, %s5415_s26  ;;  %v567_v21 = vpack.c.bf16 %v535_v12, %v535_v12  ;;  %423 = vst.msk [vmem:[#allocation2 + $0x169] sm:$0xff] %vm348_vm0, %v344_v17  ;;  %v543_v33 = vld [vmem:[#allocation2 + $0xe1] sm:$0xff]  ;;  %v429_v12 = vld [vmem:[#allocation2 + $0x18] sm:$0xff]  ;;  %v781_v17 = vpack.c.bf16 %v749_v13, %v749_v13 }
  0x78   : > { %630 = vrot.lane.b32.xlu2 %v561_v59, %s5415_s26  ;;  %413 = vst.msk [vmem:[#allocation2 + $0xf1] sm:$0xff] %vm348_vm0, %v334_v18  ;;  %v575_v36 = vpack.c.bf16 %v543_v33, %v543_v33  ;;  %v548_v38 = vld [vmem:[#allocation2 + $0x121] sm:$0xff]  ;;  %v5788_v14 = vpack.c.bf16 %v429_v12, %v429_v12  ;;  %v445_v12 = vld [vmem:[#allocation2 + $0xd8] sm:$0xff] }
  0x79   : > { %421 = vst.msk [vmem:[#allocation2 + $0x151] sm:$0xff] %vm348_vm0, %v342_v19  ;;  %v538_v24 = vld [vmem:[#allocation2 + $0xa9] sm:$0xff]  ;;  %v580_v40 = vpack.c.bf16 %v548_v38, %v548_v38  ;;  %v427_v60 = vld [vmem:[#allocation2] sm:$0xff]  ;;  %v432_v19 = vld [vmem:[#allocation2 + $0x38] sm:$0xff] }
  0x7a   : > { %v570_v31 = vpack.c.bf16 %v538_v24, %v538_v24  ;;  %416 = vst.msk [vmem:[#allocation2 + $0x111] sm:$0xff] %vm348_vm0, %v337_v28  ;;  %v546_v41 = vld [vmem:[#allocation2 + $0x109] sm:$0xff]  ;;  %v459_v63 = vpack.c.bf16 %v427_v60, %v427_v60  ;;  %v751_v11 = vld [vmem:[#allocation2 + $0x1a] sm:$0xff] }
  0x7b   : > { %644 = vrot.lane.b32.xlu0 %v568_v61, %s5415_s26  ;;  %424 = vst.msk [vmem:[#allocation2 + $0x171] sm:$0xff] %vm348_vm0, %v345_v29  ;;  %v578_v44 = vpack.c.bf16 %v546_v41, %v546_v41  ;;  %v551_v46 = vld [vmem:[#allocation2 + $0x141] sm:$0xff]  ;;  %v782_v61 = vpack.c.bf16 %v750_v58, %v750_v58  ;;  %v783_v15 = vpack.c.bf16 %v751_v11, %v751_v11  ;;  %v755_v38 = vld [vmem:[#allocation2 + $0x4a] sm:$0xff] }
  0x7c   : > { %v541_v34 = vld [vmem:[#allocation2 + $0xc9] sm:$0xff]  ;;  %419 = vst.msk [vmem:[#allocation2 + $0x139] sm:$0xff] %vm348_vm0, %v340_v37  ;;  %v583_v48 = vpack.c.bf16 %v551_v46, %v551_v46  ;;  %v754_v23 = vld [vmem:[#allocation2 + $0x3a] sm:$0xff]  ;;  %v784_v29 = vpack.c.bf16 %v752_v25, %v752_v25  ;;  %v5816_v37 = vpack.c.bf16 %v434_v35, %v434_v35  ;;  %v5829_v46 = vpack.c.bf16 %v439_v43, %v439_v43 }
  0x7d   : > { %v573_v39 = vpack.c.bf16 %v541_v34, %v541_v34  ;;  %422 = vst.msk [vmem:[#allocation2 + $0x159] sm:$0xff] %vm348_vm0, %v343_v45  ;;  %v549_v49 = vld [vmem:[#allocation2 + $0x129] sm:$0xff]  ;;  %v430_v24 = vld [vmem:[#allocation2 + $0x20] sm:$0xff] }
  0x7e   : > { %v581_v51 = vpack.c.bf16 %v549_v49, %v549_v49  ;;  %v554_v52 = vld [vmem:[#allocation2 + $0x169] sm:$0xff]  ;;  %492 = vst.msk [vmem:[#allocation3] sm:$0xf] %vm491_vm3, %v459_v63  ;;  %v5803_v26 = vpack.c.bf16 %v430_v24, %v430_v24  ;;  %v759_v28 = vld [vmem:[#allocation2 + $0x7a] sm:$0xff] }
  0x7f   : > { %640 = vrot.lane.b32.xlu1 %v566_v4, %s5415_s26  ;;  %v544_v42 = vld [vmem:[#allocation2 + $0xf1] sm:$0xff]  ;;  %v586_v54 = vpack.c.bf16 %v554_v52, %v554_v52  ;;  %494 = vst.msk [vmem:[#allocation3 + $0x8] sm:$0xf] %vm491_vm3, %v5788_v14  ;;  %v433_v18 = vld [vmem:[#allocation2 + $0x48] sm:$0xff]  ;;  %v762_v41 = vld [vmem:[#allocation2 + $0x9a] sm:$0xff] }
  0x80   : > { %636 = vrot.lane.b32.xlu2 %v564_v9, %s5415_s26  ;;  %v576_v47 = vpack.c.bf16 %v544_v42, %v544_v42  ;;  %v552_v55 = vld [vmem:[#allocation2 + $0x151] sm:$0xff]  ;;  %v460_v9 = vpack.c.bf16 %v428_v6, %v428_v6  ;;  %495 = vst.msk [vmem:[#allocation3 + $0xc] sm:$0xf] %vm491_vm3, %v5803_v26  ;;  %v436_v30 = vld [vmem:[#allocation2 + $0x68] sm:$0xff]  ;;  %v5824_v42 = vpack.c.bf16 %v755_v38, %v755_v38  ;;  %v446_v38 = vld [vmem:[#allocation2 + $0xe0] sm:$0xff] }
  0x81   : > { %v547_v50 = vld [vmem:[#allocation2 + $0x111] sm:$0xff]  ;;  %v584_v57 = vpack.c.bf16 %v552_v55, %v552_v55  ;;  %v5811_v33 = vpack.c.bf16 %v436_v30, %v436_v30  ;;  %499 = vst.msk [vmem:[#allocation3 + $0x1c] sm:$0xf] %vm491_vm3, %v5816_v37  ;;  %v794_v45 = vpack.c.bf16 %v762_v41, %v762_v41  ;;  %v441_v60 = vld [vmem:[#allocation2 + $0xa8] sm:$0xff]  ;;  %v767_v43 = vld [vmem:[#allocation2 + $0xda] sm:$0xff] }
  0x82   : > { %v5769_v53 = vpack.c.bf16 %v547_v50, %v547_v50  ;;  %v555_v0 = vld [vmem:[#allocation2 + $0x171] sm:$0xff]  ;;  %493 = vst.msk [vmem:[#allocation3 + $0x4] sm:$0xf] %vm491_vm3, %v460_v9  ;;  %v444_v13 = vld [vmem:[#allocation2 + $0xc8] sm:$0xff] }
  0x83   : > { %650 = vrot.lane.b32.xlu0 %v571_v10, %s5415_s26  ;;  %v550_v56 = vld [vmem:[#allocation2 + $0x139] sm:$0xff]  ;;  %v587_v2 = vpack.c.bf16 %v555_v0, %v555_v0  ;;  %v5784_v10 = vpack.c.bf16 %v431_v7, %v431_v7  ;;  %501 = vst.msk [vmem:[#allocation3 + $0x24] sm:$0xf] %vm491_vm3, %v5811_v33  ;;  %v442_v58 = vld [vmem:[#allocation2 + $0xb0] sm:$0xff] }
  0x84   : > { %v5775_v59 = vpack.c.bf16 %v550_v56, %v550_v56  ;;  %v553_v1 = vld [vmem:[#allocation2 + $0x159] sm:$0xff]  ;;  %504 = vst.msk [vmem:[#allocation3 + $0x30] sm:$0xf] %vm491_vm3, %v5829_v46  ;;  %v765_v56 = vld [vmem:[#allocation2 + $0xc2] sm:$0xff]  ;;  %v763_v0 = vld [vmem:[#allocation2 + $0xaa] sm:$0xff] }
  0x85   : > { %v753_v4 = vld [vmem:[#allocation2 + $0x32] sm:$0xff]  ;;  %v585_v5 = vpack.c.bf16 %v553_v1, %v553_v1  ;;  %496 = vst.msk [vmem:[#allocation3 + $0x10] sm:$0xf] %vm491_vm3, %v5784_v10  ;;  %v5853_v1 = vpack.c.bf16 %v441_v60, %v441_v60  ;;  %v795_v7 = vpack.c.bf16 %v763_v0, %v763_v0  ;;  %v449_v60 = vld [vmem:[#allocation2 + $0x108] sm:$0xff] }
  0x86   : > { %v785_v8 = vpack.c.bf16 %v753_v4, %v753_v4  ;;  %v440_v63 = vld [vmem:[#allocation2 + $0x98] sm:$0xff] }
  0x87   : > { %646 = vrot.lane.b32.xlu1 %v569_v16, %s5415_s26  ;;  %v756_v16 = vld [vmem:[#allocation2 + $0x52] sm:$0xff]  ;;  %506 = vst.msk [vmem:[#allocation3 + $0x38] sm:$0xf] %vm491_vm3, %v5853_v1 }
  0x88   : > { %642 = vrot.lane.b32.xlu2 %v567_v21, %s5415_s26  ;;  %v788_v20 = vpack.c.bf16 %v756_v16, %v756_v16  ;;  %v5796_v21 = vpack.c.bf16 %v433_v18, %v433_v18  ;;  %v761_v4 = vld [vmem:[#allocation2 + $0x92] sm:$0xff]  ;;  %v5870_v16 = vpack.c.bf16 %v445_v12, %v445_v12  ;;  %v766_v18 = vld [vmem:[#allocation2 + $0xca] sm:$0xff] }
  0x89   : > { %v621_v62 = vpop.permute.xlu0 %620  ;;  %v5862_v9 = vpack.c.bf16 %v761_v4, %v761_v4  ;;  %v5920_v4 = vpack.c.bf16 %v449_v60, %v449_v60 }
  0x8a   : > { %717 = vst.msk [vmem:[#allocation3] sm:$0xf] %vm716_vm4, %v621_v62  ;;  %v5849_v62 = vpack.c.bf16 %v442_v58, %v442_v58 }
  0x8b   : > { %656 = vrot.lane.b32.xlu0 %v574_v22, %s5415_s26  ;;  %v5798_v22 = vpack.c.bf16 %v432_v19, %v432_v19  ;;  %498 = vst.msk [vmem:[#allocation3 + $0x18] sm:$0xf] %vm491_vm3, %v5796_v21  ;;  %v5874_v19 = vpack.c.bf16 %v444_v13, %v444_v13  ;;  %v454_v13 = vld [vmem:[#allocation2 + $0x140] sm:$0xff] }
  0x8c   : > { %507 = vst.msk [vmem:[#allocation3 + $0x3c] sm:$0xf] %vm491_vm3, %v5849_v62 }
  0x8d   : > { %497 = vst.msk [vmem:[#allocation3 + $0x14] sm:$0xf] %vm491_vm3, %v5798_v22 }
  0x8e   : > { %510 = vst.msk [vmem:[#allocation3 + $0x48] sm:$0xf] %vm491_vm3, %v5870_v16 }
  0x8f   : > { %652 = vrot.lane.b32.xlu1 %v572_v27, %s5415_s26  ;;  %v786_v27 = vpack.c.bf16 %v754_v23, %v754_v23  ;;  %v764_v23 = vld [vmem:[#allocation2 + $0xb2] sm:$0xff]  ;;  %509 = vst.msk [vmem:[#allocation3 + $0x44] sm:$0xf] %vm491_vm3, %v5874_v19 }
  0x90   : > { %648 = vrot.lane.b32.xlu2 %v570_v31, %s5415_s26  ;;  %v435_v31 = vld [vmem:[#allocation2 + $0x60] sm:$0xff]  ;;  %514 = vst.msk [vmem:[#allocation3 + $0x58] sm:$0xf] %vm491_vm3, %v5920_v4 }
  0x91   : > { %v5813_v34 = vpack.c.bf16 %v435_v31, %v435_v31  ;;  %v448_v31 = vld [vmem:[#allocation2 + $0xf8] sm:$0xff] }
  0x93   : > { %662 = vrot.lane.b32.xlu0 %v577_v32, %s5415_s26  ;;  %v791_v32 = vpack.c.bf16 %v759_v28, %v759_v28  ;;  %500 = vst.msk [vmem:[#allocation3 + $0x20] sm:$0xf] %vm491_vm3, %v5813_v34  ;;  %v771_v28 = vld [vmem:[#allocation2 + $0x10a] sm:$0xff] }
  0x94   : > { %v803_v35 = vpack.c.bf16 %v771_v28, %v771_v28  ;;  %v773_v28 = vld [vmem:[#allocation2 + $0x122] sm:$0xff] }
  0x97   : > { %658 = vrot.lane.b32.xlu1 %v575_v36, %s5415_s26  ;;  %v757_v36 = vld [vmem:[#allocation2 + $0x62] sm:$0xff] }
  0x98   : > { %654 = vrot.lane.b32.xlu2 %v573_v39, %s5415_s26 }
  0x9b   : > { %668 = vrot.lane.b32.xlu0 %v580_v40, %s5415_s26  ;;  %v789_v40 = vpack.c.bf16 %v757_v36, %v757_v36  ;;  %v5891_v36 = vpack.c.bf16 %v448_v31, %v448_v31 }
  0x9d   : > { %513 = vst.msk [vmem:[#allocation3 + $0x54] sm:$0xf] %vm491_vm3, %v5891_v36 }
  0x9f   : > { %664 = vrot.lane.b32.xlu1 %v578_v44, %s5415_s26  ;;  %v438_v44 = vld [vmem:[#allocation2 + $0x80] sm:$0xff] }
  0xa0   : > { %660 = vrot.lane.b32.xlu2 %v576_v47, %s5415_s26  ;;  %v437_v47 = vld [vmem:[#allocation2 + $0x78] sm:$0xff]  ;;  %v5833_v49 = vpack.c.bf16 %v438_v44, %v438_v44  ;;  %v5899_v44 = vpack.c.bf16 %v446_v38, %v446_v38  ;;  %v5946_v38 = vpack.c.bf16 %v773_v28, %v773_v28 }
  0xa1   : > { %v5837_v52 = vpack.c.bf16 %v437_v47, %v437_v47 }
  0xa2   : > { %503 = vst.msk [vmem:[#allocation3 + $0x2c] sm:$0xf] %vm491_vm3, %v5833_v49 }
  0xa3   : > { %674 = vrot.lane.b32.xlu0 %v583_v48, %s5415_s26  ;;  %v760_v48 = vld [vmem:[#allocation2 + $0x82] sm:$0xff]  ;;  %502 = vst.msk [vmem:[#allocation3 + $0x28] sm:$0xf] %vm491_vm3, %v5837_v52 }
  0xa4   : > { %v792_v55 = vpack.c.bf16 %v760_v48, %v760_v48  ;;  %v774_v48 = vld [vmem:[#allocation2 + $0x12a] sm:$0xff]  ;;  %511 = vst.msk [vmem:[#allocation3 + $0x4c] sm:$0xf] %vm491_vm3, %v5899_v44 }
  0xa7   : > { %670 = vrot.lane.b32.xlu1 %v581_v51, %s5415_s26  ;;  %v758_v51 = vld [vmem:[#allocation2 + $0x6a] sm:$0xff] }
  0xa8   : > { %666 = vrot.lane.b32.xlu2 %v5769_v53, %s5415_s26 }
  0xab   : > { %680 = vrot.lane.b32.xlu0 %v586_v54, %s5415_s26 }
  0xaf   : > { %676 = vrot.lane.b32.xlu1 %v584_v57, %s5415_s26  ;;  %v5842_v57 = vpack.c.bf16 %v758_v51, %v758_v51 }
  0xb0   : > { %672 = vrot.lane.b32.xlu2 %v5775_v59, %s5415_s26 }
  0xb3   : > { %847 = vrot.lane.b32.xlu0 %v782_v61, %s5416_s10  ;;  %v797_v61 = vpack.c.bf16 %v765_v56, %v765_v56  ;;  %v806_v56 = vpack.c.bf16 %v774_v48, %v774_v48  ;;  %v455_v48 = vld [vmem:[#allocation2 + $0x150] sm:$0xff] }
  0xb4   : > { %v5962_v60 = vpack.c.bf16 %v455_v48, %v455_v48 }
  0xb6   : > { %520 = vst.msk [vmem:[#allocation3 + $0x70] sm:$0xf] %vm491_vm3, %v5962_v60 }
  0xb7   : > { %682 = vrot.lane.b32.xlu1 %v587_v2, %s5415_s26 }
  0xb8   : > { %678 = vrot.lane.b32.xlu2 %v585_v5, %s5415_s26  ;;  %v5857_v5 = vpack.c.bf16 %v440_v63, %v440_v63 }
  0xba   : > { %505 = vst.msk [vmem:[#allocation3 + $0x34] sm:$0xf] %vm491_vm3, %v5857_v5 }
  0xbb   : > { %853 = vrot.lane.b32.xlu0 %v785_v8, %s5416_s10  ;;  %v768_v8 = vld [vmem:[#allocation2 + $0xe2] sm:$0xff] }
  0xbf   : > { %849 = vrot.lane.b32.xlu1 %v783_v15, %s5416_s10  ;;  %v800_v15 = vpack.c.bf16 %v768_v8, %v768_v8  ;;  %v777_v8 = vld [vmem:[#allocation2 + $0x152] sm:$0xff] }
  0xc0   : > { %845 = vrot.lane.b32.xlu2 %v781_v17, %s5416_s10  ;;  %v443_v17 = vld [vmem:[#allocation2 + $0xc0] sm:$0xff] }
  0xc1   : > { %v5878_v24 = vpack.c.bf16 %v443_v17, %v443_v17  ;;  %v809_v17 = vpack.c.bf16 %v777_v8, %v777_v8 }
  0xc3   : > { %859 = vrot.lane.b32.xlu0 %v788_v20, %s5416_s10  ;;  %508 = vst.msk [vmem:[#allocation3 + $0x40] sm:$0xf] %vm491_vm3, %v5878_v24 }
  0xc7   : > { %855 = vrot.lane.b32.xlu1 %v786_v27, %s5416_s10  ;;  %v798_v27 = vpack.c.bf16 %v766_v18, %v766_v18  ;;  %v5933_v18 = vpack.c.bf16 %v454_v13, %v454_v13  ;;  %v779_v13 = vld [vmem:[#allocation2 + $0x16a] sm:$0xff] }
  0xc8   : > { %851 = vrot.lane.b32.xlu2 %v784_v29, %s5416_s10  ;;  %v5883_v29 = vpack.c.bf16 %v764_v23, %v764_v23  ;;  %v775_v23 = vld [vmem:[#allocation2 + $0x13a] sm:$0xff] }
  0xc9   : > { %519 = vst.msk [vmem:[#allocation3 + $0x6c] sm:$0xf] %vm491_vm3, %v5933_v18 }
  0xca   : > { %v629_v39 = vpop.permute.xlu2 %628 }
  0xcb   : > { %865 = vrot.lane.b32.xlu0 %v791_v32, %s5416_s10  ;;  %721 = vst.msk [vmem:[#allocation3 + $0x10] sm:$0xf] %vm716_vm4, %v629_v39  ;;  %v447_v32 = vld [vmem:[#allocation2 + $0xf0] sm:$0xff] }
  0xcc   : > { %v769_v39 = vld [vmem:[#allocation2 + $0xf2] sm:$0xff] }
  0xcd   : > { %v801_v47 = vpack.c.bf16 %v769_v39, %v769_v39 }
  0xcf   : > { %861 = vrot.lane.b32.xlu1 %v789_v40, %s5416_s10  ;;  %v5895_v40 = vpack.c.bf16 %v447_v32, %v447_v32  ;;  %v807_v32 = vpack.c.bf16 %v775_v23, %v775_v23 }
  0xd0   : > { %857 = vrot.lane.b32.xlu2 %v5824_v42, %s5416_s10 }
  0xd1   : > { %v623_v50 = vpop.permute.xlu0 %622  ;;  %512 = vst.msk [vmem:[#allocation3 + $0x50] sm:$0xf] %vm491_vm3, %v5895_v40 }
  0xd2   : > { %718 = vst.msk [vmem:[#allocation3 + $0x4] sm:$0xf] %vm716_vm4, %v623_v50  ;;  %v631_v54 = vpop.permute.xlu2 %630  ;;  %v5904_v50 = vpack.c.bf16 %v767_v43, %v767_v43  ;;  %v456_v43 = vld [vmem:[#allocation2 + $0x158] sm:$0xff] }
  0xd3   : > { %871 = vrot.lane.b32.xlu0 %v794_v45, %s5416_s10  ;;  %722 = vst.msk [vmem:[#allocation3 + $0x14] sm:$0xf] %vm716_vm4, %v631_v54  ;;  %v451_v54 = vld [vmem:[#allocation2 + $0x120] sm:$0xff] }
  0xd4   : > { %v5912_v58 = vpack.c.bf16 %v451_v54, %v451_v54  ;;  %v5958_v54 = vpack.c.bf16 %v456_v43, %v456_v43 }
  0xd6   : > { %516 = vst.msk [vmem:[#allocation3 + $0x60] sm:$0xf] %vm491_vm3, %v5912_v58 }
  0xd7   : > { %867 = vrot.lane.b32.xlu1 %v792_v55, %s5416_s10  ;;  %v450_v55 = vld [vmem:[#allocation2 + $0x110] sm:$0xff]  ;;  %521 = vst.msk [vmem:[#allocation3 + $0x74] sm:$0xf] %vm491_vm3, %v5958_v54 }
  0xd8   : > { %863 = vrot.lane.b32.xlu2 %v5842_v57, %s5416_s10  ;;  %v5916_v63 = vpack.c.bf16 %v450_v55, %v450_v55 }
  0xd9   : > { %v625_v2 = vpop.permute.xlu1 %624 }
  0xda   : > { %719 = vst.msk [vmem:[#allocation3 + $0x8] sm:$0xf] %vm716_vm4, %v625_v2  ;;  %v637_v6 = vpop.permute.xlu2 %636  ;;  %v770_v2 = vld [vmem:[#allocation2 + $0xfa] sm:$0xff] }
  0xdb   : > { %877 = vrot.lane.b32.xlu0 %v797_v61, %s5416_s10  ;;  %725 = vst.msk [vmem:[#allocation3 + $0x20] sm:$0xf] %vm716_vm4, %v637_v6  ;;  %v772_v61 = vld [vmem:[#allocation2 + $0x112] sm:$0xff] }
  0xdc   : > { %515 = vst.msk [vmem:[#allocation3 + $0x5c] sm:$0xf] %vm491_vm3, %v5916_v63 }
  0xdd   : > { %v633_v11 = vpop.permute.xlu0 %632 }
  0xde   : > { %723 = vst.msk [vmem:[#allocation3 + $0x18] sm:$0xf] %vm716_vm4, %v633_v11  ;;  %v5925_v11 = vpack.c.bf16 %v770_v2, %v770_v2 }
  0xdf   : > { %873 = vrot.lane.b32.xlu1 %v795_v7, %s5416_s10  ;;  %v804_v7 = vpack.c.bf16 %v772_v61, %v772_v61 }
  0xe0   : > { %869 = vrot.lane.b32.xlu2 %v5862_v9, %s5416_s10 }
  0xe1   : > { %v627_v20 = vpop.permute.xlu1 %626 }
  0xe2   : > { %720 = vst.msk [vmem:[#allocation3 + $0xc] sm:$0xf] %vm716_vm4, %v627_v20  ;;  %v643_v25 = vpop.permute.xlu2 %642  ;;  %v452_v20 = vld [vmem:[#allocation2 + $0x128] sm:$0xff] }
  0xe3   : > { %883 = vrot.lane.b32.xlu0 %v800_v15, %s5416_s10  ;;  %728 = vst.msk [vmem:[#allocation3 + $0x2c] sm:$0xf] %vm716_vm4, %v643_v25  ;;  %v453_v15 = vld [vmem:[#allocation2 + $0x138] sm:$0xff] }
  0xe4   : > { %v5937_v25 = vpack.c.bf16 %v453_v15, %v453_v15 }
  0xe5   : > { %v639_v30 = vpop.permute.xlu0 %638 }
  0xe6   : > { %726 = vst.msk [vmem:[#allocation3 + $0x24] sm:$0xf] %vm716_vm4, %v639_v30  ;;  %v5941_v30 = vpack.c.bf16 %v452_v20, %v452_v20 }
  0xe7   : > { %879 = vrot.lane.b32.xlu1 %v798_v27, %s5416_s10  ;;  %518 = vst.msk [vmem:[#allocation3 + $0x68] sm:$0xf] %vm491_vm3, %v5937_v25 }
  0xe8   : > { %875 = vrot.lane.b32.xlu2 %v5883_v29, %s5416_s10  ;;  %517 = vst.msk [vmem:[#allocation3 + $0x64] sm:$0xf] %vm491_vm3, %v5941_v30 }
  0xe9   : > { %v635_v41 = vpop.permute.xlu1 %634 }
  0xea   : > { %724 = vst.msk [vmem:[#allocation3 + $0x1c] sm:$0xf] %vm716_vm4, %v635_v41  ;;  %v649_v45 = vpop.permute.xlu2 %648  ;;  %v457_v41 = vld [vmem:[#allocation2 + $0x168] sm:$0xff] }
  0xeb   : > { %889 = vrot.lane.b32.xlu0 %v803_v35, %s5416_s10  ;;  %731 = vst.msk [vmem:[#allocation3 + $0x38] sm:$0xf] %vm716_vm4, %v649_v45  ;;  %v780_v35 = vld [vmem:[#allocation2 + $0x172] sm:$0xff] }
  0xec   : > { %v812_v45 = vpack.c.bf16 %v780_v35, %v780_v35 }
  0xed   : > { %v645_v51 = vpop.permute.xlu0 %644 }
  0xee   : > { %729 = vst.msk [vmem:[#allocation3 + $0x30] sm:$0xf] %vm716_vm4, %v645_v51  ;;  %v778_v51 = vld [vmem:[#allocation2 + $0x15a] sm:$0xff] }
  0xef   : > { %885 = vrot.lane.b32.xlu1 %v801_v47, %s5416_s10  ;;  %v5954_v47 = vpack.c.bf16 %v457_v41, %v457_v41  ;;  %v1199_v41 = vld [vmem:[#allocation2 + $0x19] sm:$0xff] }
  0xf0   : > { %881 = vrot.lane.b32.xlu2 %v5904_v50, %s5416_s10 }
  0xf1   : > { %v641_v0 = vpop.permute.xlu1 %640  ;;  %522 = vst.msk [vmem:[#allocation3 + $0x78] sm:$0xf] %vm491_vm3, %v5954_v47 }
  0xf2   : > { %727 = vst.msk [vmem:[#allocation3 + $0x28] sm:$0xf] %vm716_vm4, %v641_v0  ;;  %v655_v6 = vpop.permute.xlu2 %654  ;;  %v810_v0 = vpack.c.bf16 %v778_v51, %v778_v51 }
  0xf3   : > { %895 = vrot.lane.b32.xlu0 %v806_v56, %s5416_s10  ;;  %734 = vst.msk [vmem:[#allocation3 + $0x44] sm:$0xf] %vm716_vm4, %v655_v6  ;;  %v776_v56 = vld [vmem:[#allocation2 + $0x142] sm:$0xff] }
  0xf4   : > { %v5967_v2 = vpack.c.bf16 %v776_v56, %v776_v56 }
  0xf5   : > { %v651_v12 = vpop.permute.xlu0 %650 }
  0xf6   : > { %732 = vst.msk [vmem:[#allocation3 + $0x3c] sm:$0xf] %vm716_vm4, %v651_v12 }
  0xf7   : > { %891 = vrot.lane.b32.xlu1 %v804_v7, %s5416_s10  ;;  %v458_v7 = vld [vmem:[#allocation2 + $0x170] sm:$0xff] }
  0xf8   : > { %887 = vrot.lane.b32.xlu2 %v5925_v11, %s5416_s10  ;;  %v5977_v8 = vpack.c.bf16 %v458_v7, %v458_v7  ;;  %v1205_v7 = vld [vmem:[#allocation2 + $0x61] sm:$0xff] }
  0xf9   : > { %v647_v27 = vpop.permute.xlu1 %646 }
  0xfa   : > { %730 = vst.msk [vmem:[#allocation3 + $0x34] sm:$0xf] %vm716_vm4, %v647_v27  ;;  %v661_v31 = vpop.permute.xlu2 %660 }
  0xfb   : > { %901 = vrot.lane.b32.xlu0 %v809_v17, %s5416_s10  ;;  %737 = vst.msk [vmem:[#allocation3 + $0x50] sm:$0xf] %vm716_vm4, %v661_v31  ;;  %v5983_v17 = vpack.c.bf16 %v779_v13, %v779_v13  ;;  %v310_v31 = vld [vmem:[%s5628_s30 + $0xf0] sm:$0xff] }
  0xfc   : > { %523 = vst.msk [vmem:[#allocation3 + $0x7c] sm:$0xf] %vm491_vm3, %v5977_v8  ;;  %v1203_v13 = vld [vmem:[#allocation2 + $0x49] sm:$0xff] }
  0xfd   : > { %v657_v39 = vpop.permute.xlu0 %656 }
  0xfe   : > { %735 = vst.msk [vmem:[#allocation3 + $0x48] sm:$0xf] %vm716_vm4, %v657_v39 }
  0xff   : > { %897 = vrot.lane.b32.xlu1 %v807_v32, %s5416_s10 }
 0x100   : > { %893 = vrot.lane.b32.xlu2 %v5946_v38, %s5416_s10 }
 0x101   : > { %v653_v55 = vpop.permute.xlu1 %652 }
 0x102   : > { %733 = vst.msk [vmem:[#allocation3 + $0x40] sm:$0xf] %vm716_vm4, %v653_v55  ;;  %v667_v61 = vpop.permute.xlu2 %666  ;;  %v1202_v55 = vld [vmem:[#allocation2 + $0x39] sm:$0xff] }
 0x103   : > { %907 = vrot.lane.b32.xlu0 %v812_v45, %s5416_s10  ;;  %740 = vst.msk [vmem:[#allocation3 + $0x5c] sm:$0xf] %vm716_vm4, %v667_v61 }
 0x105   : > { %v663_v6 = vpop.permute.xlu0 %662 }
 0x106   : > { %738 = vst.msk [vmem:[#allocation3 + $0x54] sm:$0xf] %vm716_vm4, %v663_v6 }
 0x107   : > { %903 = vrot.lane.b32.xlu1 %v810_v0, %s5416_s10 }
 0x108   : > { %899 = vrot.lane.b32.xlu2 %v5967_v2, %s5416_s10 }
 0x109   : > { %v659_v12 = vpop.permute.xlu1 %658 }
 0x10a   : > { %736 = vst.msk [vmem:[#allocation3 + $0x4c] sm:$0xf] %vm716_vm4, %v659_v12  ;;  %v673_v15 = vpop.permute.xlu2 %672 }
 0x10b   : > { %1074 = vrot.lane.b32.xlu0 %v5784_v10, %s5417_s11  ;;  %743 = vst.msk [vmem:[#allocation3 + $0x68] sm:$0xf] %vm716_vm4, %v673_v15 }
 0x10d   : > { %v669_v20 = vpop.permute.xlu0 %668 }
 0x10e   : > { %741 = vst.msk [vmem:[#allocation3 + $0x60] sm:$0xf] %vm716_vm4, %v669_v20  ;;  %v1201_v20 = vld [vmem:[#allocation2 + $0x31] sm:$0xff] }
 0x10f   : > { %1070 = vrot.lane.b32.xlu1 %v5788_v14, %s5417_s11 }
 0x110   : > { %905 = vrot.lane.b32.xlu2 %v5983_v17, %s5416_s10 }
 0x111   : > { %v665_v23 = vpop.permute.xlu1 %664 }
 0x112   : > { %739 = vst.msk [vmem:[#allocation3 + $0x58] sm:$0xf] %vm716_vm4, %v665_v23  ;;  %v679_v10 = vpop.permute.xlu2 %678 }
 0x113   : > { %1080 = vrot.lane.b32.xlu0 %v5816_v37, %s5417_s11  ;;  %746 = vst.msk [vmem:[#allocation3 + $0x74] sm:$0xf] %vm716_vm4, %v679_v10  ;;  %v1235_v10 = vpack.c.bf16 %v1203_v13, %v1203_v13  ;;  %v1221_v13 = vld [vmem:[#allocation2 + $0x121] sm:$0xff] }
 0x115   : > { %v675_v27 = vpop.permute.xlu0 %674 }
 0x116   : > { %744 = vst.msk [vmem:[#allocation3 + $0x6c] sm:$0xf] %vm716_vm4, %v675_v27  ;;  %v1208_v27 = vld [vmem:[#allocation2 + $0x81] sm:$0xff] }
 0x117   : > { %1076 = vrot.lane.b32.xlu1 %v5798_v22, %s5417_s11 }
 0x118   : > { %1072 = vrot.lane.b32.xlu2 %v5803_v26, %s5417_s11 }
 0x119   : > { %v671_v14 = vpop.permute.xlu1 %670 }
 0x11a   : > { %742 = vst.msk [vmem:[#allocation3 + $0x64] sm:$0xf] %vm716_vm4, %v671_v14  ;;  %v846_v28 = vpop.permute.xlu2 %845  ;;  %v6106_v14 = vpack.c.bf16 %v1201_v20, %v1201_v20  ;;  %v1219_v20 = vld [vmem:[#allocation2 + $0x109] sm:$0xff] }
 0x11b   : > { %1086 = vrot.lane.b32.xlu0 %v5837_v52, %s5417_s11  ;;  %942 = vst.msk [vmem:[#allocation3] sm:$0xf] %vm941_vm5, %v846_v28 }
 0x11d   : > { %v681_v37 = vpop.permute.xlu0 %680 }
 0x11e   : > { %747 = vst.msk [vmem:[#allocation3 + $0x78] sm:$0xf] %vm716_vm4, %v681_v37  ;;  %v6110_v37 = vpack.c.bf16 %v1208_v27, %v1208_v27  ;;  %v6174_v27 = vpack.c.bf16 %v1219_v20, %v1219_v20 }
 0x11f   : > { %1082 = vrot.lane.b32.xlu1 %v5813_v34, %s5417_s11 }
 0x120   : > { %1078 = vrot.lane.b32.xlu2 %v5796_v21, %s5417_s11 }
 0x121   : > { %v677_v22 = vpop.permute.xlu1 %676 }
 0x122   : > { %745 = vst.msk [vmem:[#allocation3 + $0x70] sm:$0xf] %vm716_vm4, %v677_v22  ;;  %v852_v26 = vpop.permute.xlu2 %851  ;;  %v1206_v22 = vld [vmem:[#allocation2 + $0x69] sm:$0xff] }
 0x123   : > { %1092 = vrot.lane.b32.xlu0 %v5857_v5, %s5417_s11  ;;  %945 = vst.msk [vmem:[#allocation3 + $0xc] sm:$0xf] %vm941_vm5, %v852_v26 }
 0x125   : > { %v848_v52 = vpop.permute.xlu0 %847 }
 0x126   : > { %943 = vst.msk [vmem:[#allocation3 + $0x4] sm:$0xf] %vm941_vm5, %v848_v52  ;;  %v1204_v52 = vld [vmem:[#allocation2 + $0x51] sm:$0xff] }
 0x127   : > { %1088 = vrot.lane.b32.xlu1 %v5833_v49, %s5417_s11 }
 0x128   : > { %1084 = vrot.lane.b32.xlu2 %v5811_v33, %s5417_s11 }
 0x129   : > { %v683_v21 = vpop.permute.xlu1 %682 }
 0x12a   : > { %748 = vst.msk [vmem:[#allocation3 + $0x7c] sm:$0xf] %vm716_vm4, %v683_v21  ;;  %v858_v34 = vpop.permute.xlu2 %857 }
 0x12b   : > { %1098 = vrot.lane.b32.xlu0 %v5878_v24, %s5417_s11  ;;  %948 = vst.msk [vmem:[#allocation3 + $0x18] sm:$0xf] %vm941_vm5, %v858_v34  ;;  %v346_v24 = vadd.f32 %v5636_v3, %v310_v31  ;;  %v1238_v34 = vpack.c.bf16 %v1206_v22, %v1206_v22 }
 0x12d   : > { %v854_v5 = vpop.permute.xlu0 %853  ;;  %425 = vst.msk [vmem:[#allocation2 + $0x181] sm:$0xff] %vm348_vm0, %v346_v24  ;;  %v1209_v24 = vld [vmem:[#allocation2 + $0x91] sm:$0xff] }
 0x12e   : > { %946 = vst.msk [vmem:[#allocation3 + $0x10] sm:$0xf] %vm941_vm5, %v854_v5  ;;  %v1211_v5 = vld [vmem:[#allocation2 + $0xa9] sm:$0xff] }
 0x12f   : > { %1094 = vrot.lane.b32.xlu1 %v5853_v1, %s5417_s11  ;;  %v6122_v31 = vpack.c.bf16 %v1211_v5, %v1211_v5 }
 0x130   : > { %1090 = vrot.lane.b32.xlu2 %v5829_v46, %s5417_s11 }
 0x131   : > { %v850_v49 = vpop.permute.xlu1 %849 }
 0x132   : > { %944 = vst.msk [vmem:[#allocation3 + $0x8] sm:$0xf] %vm941_vm5, %v850_v49  ;;  %v864_v33 = vpop.permute.xlu2 %863  ;;  %v6118_v49 = vpack.c.bf16 %v1204_v52, %v1204_v52 }
 0x133   : > { %1104 = vrot.lane.b32.xlu0 %v5899_v44, %s5417_s11  ;;  %951 = vst.msk [vmem:[#allocation3 + $0x24] sm:$0xf] %vm941_vm5, %v864_v33 }
 0x134   : > { %v1004_v45 = vld [vmem:[#allocation2 + $0x180] sm:$0xff] }
 0x135   : > { %v860_v32 = vpop.permute.xlu0 %859  ;;  %v1036_v51 = vpack.c.bf16 %v1004_v45, %v1004_v45  ;;  %v1229_v5 = vld [vmem:[#allocation2 + $0x181] sm:$0xff] }
 0x136   : > { %949 = vst.msk [vmem:[#allocation3 + $0x1c] sm:$0xf] %vm941_vm5, %v860_v32 }
 0x137   : > { %1100 = vrot.lane.b32.xlu1 %v5874_v19, %s5417_s11 }
 0x138   : > { %1096 = vrot.lane.b32.xlu2 %v5849_v62, %s5417_s11 }
 0x139   : > { %v856_v46 = vpop.permute.xlu1 %855 }
 0x13a   : > { %947 = vst.msk [vmem:[#allocation3 + $0x14] sm:$0xf] %vm941_vm5, %v856_v46  ;;  %v870_v1 = vpop.permute.xlu2 %869  ;;  %v1207_v46 = vld [vmem:[#allocation2 + $0x79] sm:$0xff] }
 0x13b   : > { %1110 = vrot.lane.b32.xlu0 %v5920_v4, %s5417_s11  ;;  %954 = vst.msk [vmem:[#allocation3 + $0x30] sm:$0xf] %vm941_vm5, %v870_v1  ;;  %v311_v4 = vld [vmem:[%s5628_s30 + $0xf8] sm:$0xff] }
 0x13d   : > { %v866_v3 = vpop.permute.xlu0 %865 }
 0x13e   : > { %952 = vst.msk [vmem:[#allocation3 + $0x28] sm:$0xf] %vm941_vm5, %v866_v3  ;;  %v1241_v3 = vpack.c.bf16 %v1209_v24, %v1209_v24 }
 0x13f   : > { %1106 = vrot.lane.b32.xlu1 %v5895_v40, %s5417_s11 }
 0x140   : > { %1102 = vrot.lane.b32.xlu2 %v5870_v16, %s5417_s11 }
 0x141   : > { %v862_v62 = vpop.permute.xlu1 %861 }
 0x142   : > { %950 = vst.msk [vmem:[#allocation3 + $0x20] sm:$0xf] %vm941_vm5, %v862_v62  ;;  %v876_v19 = vpop.permute.xlu2 %875  ;;  %v1214_v62 = vld [vmem:[#allocation2 + $0xc9] sm:$0xff] }
 0x143   : > { %1116 = vrot.lane.b32.xlu0 %v5941_v30, %s5417_s11  ;;  %957 = vst.msk [vmem:[#allocation3 + $0x3c] sm:$0xf] %vm941_vm5, %v876_v19  ;;  %v5371_v30 = vld [vmem:[%s7737_s1] ss:$0 sm:$0xff]  ;;  %v6130_v19 = vpack.c.bf16 %v1207_v46, %v1207_v46  ;;  %v1227_v46 = vld [vmem:[#allocation2 + $0x169] sm:$0xff] }
 0x144   : > { %v347_v35 = vadd.f32 %v5371_v30, %v311_v4  ;;  %v1210_v30 = vld [vmem:[#allocation2 + $0x99] sm:$0xff] }
 0x145   : > { %v872_v44 = vpop.permute.xlu0 %871 }
 0x146   : > { %955 = vst.msk [vmem:[#allocation3 + $0x34] sm:$0xf] %vm941_vm5, %v872_v44 }
 0x147   : > { %1112 = vrot.lane.b32.xlu1 %v5916_v63, %s5417_s11  ;;  %426 = vst.msk [vmem:[#allocation2 + $0x189] sm:$0xff] %vm348_vm0, %v347_v35 }
 0x148   : > { %1108 = vrot.lane.b32.xlu2 %v5891_v36, %s5417_s11 }
 0x149   : > { %v868_v40 = vpop.permute.xlu1 %867 }
 0x14a   : > { %953 = vst.msk [vmem:[#allocation3 + $0x2c] sm:$0xf] %vm941_vm5, %v868_v40  ;;  %v882_v16 = vpop.permute.xlu2 %881  ;;  %v6134_v40 = vpack.c.bf16 %v1214_v62, %v1214_v62 }
 0x14b   : > { %1122 = vrot.lane.b32.xlu0 %v5962_v60, %s5417_s11  ;;  %960 = vst.msk [vmem:[#allocation3 + $0x48] sm:$0xf] %vm941_vm5, %v882_v16  ;;  %v1200_v60 = vld [vmem:[#allocation2 + $0x21] sm:$0xff]  ;;  %v1212_v16 = vld [vmem:[#allocation2 + $0xb1] sm:$0xff] }
 0x14c   : > { %v1232_v6 = vpack.c.bf16 %v1200_v60, %v1200_v60  ;;  %v1218_v60 = vld [vmem:[#allocation2 + $0xf9] sm:$0xff] }
 0x14d   : > { %v878_v39 = vpop.permute.xlu0 %877 }
 0x14e   : > { %958 = vst.msk [vmem:[#allocation3 + $0x40] sm:$0xf] %vm941_vm5, %v878_v39  ;;  %v1005_v61 = vld [vmem:[#allocation2 + $0x188] sm:$0xff]  ;;  %v1244_v39 = vpack.c.bf16 %v1212_v16, %v1212_v16 }
 0x14f   : > { %1118 = vrot.lane.b32.xlu1 %v5937_v25, %s5417_s11  ;;  %v1231_v25 = vpack.c.bf16 %v1199_v41, %v1199_v41  ;;  %v1425_v16 = vld [vmem:[#allocation2 + $0x22] sm:$0xff] }
 0x150   : > { %1114 = vrot.lane.b32.xlu2 %v5912_v58, %s5417_s11 }
 0x151   : > { %v874_v36 = vpop.permute.xlu1 %873 }
 0x152   : > { %956 = vst.msk [vmem:[#allocation3 + $0x38] sm:$0xf] %vm941_vm5, %v874_v36  ;;  %v888_v63 = vpop.permute.xlu2 %887  ;;  %v1217_v36 = vld [vmem:[#allocation2 + $0xf1] sm:$0xff] }
 0x153   : > { %1128 = vrot.lane.b32.xlu0 %v5977_v8, %s5417_s11  ;;  %963 = vst.msk [vmem:[#allocation3 + $0x54] sm:$0xf] %vm941_vm5, %v888_v63  ;;  %v6094_v8 = vpack.c.bf16 %v1005_v61, %v1005_v61  ;;  %v6142_v63 = vpack.c.bf16 %v1210_v30, %v1210_v30  ;;  %v1216_v61 = vld [vmem:[#allocation2 + $0xe1] sm:$0xff] }
 0x155   : > { %v884_v43 = vpop.permute.xlu0 %883 }
 0x156   : > { %961 = vst.msk [vmem:[#allocation3 + $0x4c] sm:$0xf] %vm941_vm5, %v884_v43  ;;  %v6146_v43 = vpack.c.bf16 %v1217_v36, %v1217_v36 }
 0x157   : > { %1124 = vrot.lane.b32.xlu1 %v5958_v54, %s5417_s11  ;;  %v6086_v54 = vpack.c.bf16 %v1202_v55, %v1202_v55 }
 0x158   : > { %1120 = vrot.lane.b32.xlu2 %v5933_v18, %s5417_s11 }
 0x159   : > { %v880_v58 = vpop.permute.xlu1 %879 }
 0x15a   : > { %959 = vst.msk [vmem:[#allocation3 + $0x44] sm:$0xf] %vm941_vm5, %v880_v58  ;;  %v894_v48 = vpop.permute.xlu2 %893  ;;  %v1213_v58 = vld [vmem:[#allocation2 + $0xc1] sm:$0xff] }
 0x15b   : > { %1295 = vrot.lane.b32.xlu0 %v1231_v25, %s5418_s14  ;;  %966 = vst.msk [vmem:[#allocation3 + $0x60] sm:$0xf] %vm941_vm5, %v894_v48  ;;  %v1215_v25 = vld [vmem:[#allocation2 + $0xd9] sm:$0xff]  ;;  %v6154_v55 = vpack.c.bf16 %v1213_v58, %v1213_v58 }
 0x15d   : > { %v890_v56 = vpop.permute.xlu0 %889 }
 0x15e   : > { %964 = vst.msk [vmem:[#allocation3 + $0x58] sm:$0xf] %vm941_vm5, %v890_v56 }
 0x15f   : > { %1130 = vrot.lane.b32.xlu1 %v1036_v51, %s5417_s11  ;;  %v1247_v51 = vpack.c.bf16 %v1215_v25, %v1215_v25 }
 0x160   : > { %1126 = vrot.lane.b32.xlu2 %v5954_v47, %s5417_s11  ;;  %v6098_v47 = vpack.c.bf16 %v1205_v7, %v1205_v7  ;;  %v6164_v7 = vpack.c.bf16 %v1216_v61, %v1216_v61 }
 0x161   : > { %v886_v18 = vpop.permute.xlu1 %885 }
 0x162   : > { %962 = vst.msk [vmem:[#allocation3 + $0x50] sm:$0xf] %vm941_vm5, %v886_v18  ;;  %v900_v0 = vpop.permute.xlu2 %899 }
 0x163   : > { %1301 = vrot.lane.b32.xlu0 %v6086_v54, %s5418_s14  ;;  %969 = vst.msk [vmem:[#allocation3 + $0x6c] sm:$0xf] %vm941_vm5, %v900_v0 }
 0x165   : > { %v896_v12 = vpop.permute.xlu0 %895 }
 0x166   : > { %967 = vst.msk [vmem:[#allocation3 + $0x64] sm:$0xf] %vm941_vm5, %v896_v12 }
 0x167   : > { %1297 = vrot.lane.b32.xlu1 %v1232_v6, %s5418_s14  ;;  %v1250_v6 = vpack.c.bf16 %v1218_v60, %v1218_v60  ;;  %v1424_v60 = vld [vmem:[#allocation2 + $0x1a] sm:$0xff] }
 0x168   : > { %1132 = vrot.lane.b32.xlu2 %v6094_v8, %s5417_s11 }
 0x169   : > { %v892_v15 = vpop.permute.xlu1 %891 }
 0x16a   : > { %965 = vst.msk [vmem:[#allocation3 + $0x5c] sm:$0xf] %vm941_vm5, %v892_v15  ;;  %v906_v23 = vpop.permute.xlu2 %905 }
 0x16b   : > { %1307 = vrot.lane.b32.xlu0 %v6098_v47, %s5418_s14  ;;  %972 = vst.msk [vmem:[#allocation3 + $0x78] sm:$0xf] %vm941_vm5, %v906_v23 }
 0x16d   : > { %v902_v28 = vpop.permute.xlu0 %901 }
 0x16e   : > { %970 = vst.msk [vmem:[#allocation3 + $0x70] sm:$0xf] %vm941_vm5, %v902_v28 }
 0x16f   : > { %1303 = vrot.lane.b32.xlu1 %v1235_v10, %s5418_s14  ;;  %v1226_v10 = vld [vmem:[#allocation2 + $0x159] sm:$0xff] }
 0x170   : > { %1299 = vrot.lane.b32.xlu2 %v6106_v14, %s5418_s14  ;;  %v6178_v22 = vpack.c.bf16 %v1226_v10, %v1226_v10  ;;  %v1432_v10 = vld [vmem:[#allocation2 + $0x7a] sm:$0xff] }
 0x171   : > { %v898_v26 = vpop.permute.xlu1 %897 }
 0x172   : > { %968 = vst.msk [vmem:[#allocation3 + $0x68] sm:$0xf] %vm941_vm5, %v898_v26  ;;  %v1073_v21 = vpop.permute.xlu2 %1072  ;;  %v1224_v26 = vld [vmem:[#allocation2 + $0x141] sm:$0xff] }
 0x173   : > { %1313 = vrot.lane.b32.xlu0 %v6110_v37, %s5418_s14  ;;  %1168 = vst.msk [vmem:[#allocation3 + $0x4] sm:$0xf] %vm1166_vm6, %v1073_v21  ;;  %v1222_v21 = vld [vmem:[#allocation2 + $0x129] sm:$0xff] }
 0x175   : > { %v908_v33 = vpop.permute.xlu0 %907 }
 0x176   : > { %973 = vst.msk [vmem:[#allocation3 + $0x7c] sm:$0xf] %vm941_vm5, %v908_v33  ;;  %v6186_v33 = vpack.c.bf16 %v1222_v21, %v1222_v21 }
 0x177   : > { %1309 = vrot.lane.b32.xlu1 %v1238_v34, %s5418_s14  ;;  %v1256_v34 = vpack.c.bf16 %v1224_v26, %v1224_v26  ;;  %v1430_v26 = vld [vmem:[#allocation2 + $0x62] sm:$0xff] }
 0x178   : > { %1305 = vrot.lane.b32.xlu2 %v6118_v49, %s5418_s14  ;;  %v6243_v21 = vpack.c.bf16 %v1430_v26, %v1430_v26 }
 0x179   : > { %v904_v32 = vpop.permute.xlu1 %903 }
 0x17a   : > { %971 = vst.msk [vmem:[#allocation3 + $0x74] sm:$0xf] %vm941_vm5, %v904_v32  ;;  %v1079_v1 = vpop.permute.xlu2 %1078  ;;  %v6190_v32 = vpack.c.bf16 %v1229_v5, %v1229_v5 }
 0x17b   : > { %1319 = vrot.lane.b32.xlu0 %v6122_v31, %s5418_s14  ;;  %1171 = vst.msk [vmem:[#allocation3 + $0x10] sm:$0xf] %vm1166_vm6, %v1079_v1 }
 0x17d   : > { %v1075_v44 = vpop.permute.xlu0 %1074 }
 0x17e   : > { %1169 = vst.msk [vmem:[#allocation3 + $0x8] sm:$0xf] %vm1166_vm6, %v1075_v44  ;;  %v6197_v44 = vpack.c.bf16 %v1227_v46, %v1227_v46 }
 0x17f   : > { %1315 = vrot.lane.b32.xlu1 %v1241_v3, %s5418_s14  ;;  %v1225_v3 = vld [vmem:[#allocation2 + $0x151] sm:$0xff] }
 0x180   : > { %1311 = vrot.lane.b32.xlu2 %v6130_v19, %s5418_s14 }
 0x181   : > { %v1071_v4 = vpop.permute.xlu1 %1070 }
 0x182   : > { %1167 = vst.msk [vmem:[#allocation3] sm:$0xf] %vm1166_vm6, %v1071_v4  ;;  %v1085_v35 = vpop.permute.xlu2 %1084  ;;  %v6200_v4 = vpack.c.bf16 %v1225_v3, %v1225_v3 }
 0x183   : > { %1325 = vrot.lane.b32.xlu0 %v6134_v40, %s5418_s14  ;;  %1174 = vst.msk [vmem:[#allocation3 + $0x1c] sm:$0xf] %vm1166_vm6, %v1085_v35  ;;  %v1457_v35 = vpack.c.bf16 %v1425_v16, %v1425_v16 }
 0x185   : > { %v1081_v41 = vpop.permute.xlu0 %1080 }
 0x186   : > { %1172 = vst.msk [vmem:[#allocation3 + $0x14] sm:$0xf] %vm1166_vm6, %v1081_v41  ;;  %v1228_v41 = vld [vmem:[#allocation2 + $0x171] sm:$0xff] }
 0x187   : > { %1321 = vrot.lane.b32.xlu1 %v1244_v39, %s5418_s14  ;;  %v1230_v39 = vld [vmem:[#allocation2 + $0x189] sm:$0xff]  ;;  %v6212_v58 = vpack.c.bf16 %v1228_v41, %v1228_v41 }
 0x188   : > { %1317 = vrot.lane.b32.xlu2 %v6142_v63, %s5418_s14  ;;  %v1441_v41 = vld [vmem:[#allocation2 + $0xe2] sm:$0xff] }
 0x189   : > { %v1077_v45 = vpop.permute.xlu1 %1076 }
 0x18a   : > { %1170 = vst.msk [vmem:[#allocation3 + $0xc] sm:$0xf] %vm1166_vm6, %v1077_v45  ;;  %v1091_v48 = vpop.permute.xlu2 %1090  ;;  %v6209_v45 = vpack.c.bf16 %v1230_v39, %v1230_v39 }
 0x18b   : > { %1331 = vrot.lane.b32.xlu0 %v6146_v43, %s5418_s14  ;;  %1177 = vst.msk [vmem:[#allocation3 + $0x28] sm:$0xf] %vm1166_vm6, %v1091_v48 }
 0x18d   : > { %v1087_v56 = vpop.permute.xlu0 %1086 }
 0x18e   : > { %1175 = vst.msk [vmem:[#allocation3 + $0x20] sm:$0xf] %vm1166_vm6, %v1087_v56 }
 0x18f   : > { %1327 = vrot.lane.b32.xlu1 %v1247_v51, %s5418_s14  ;;  %v1426_v51 = vld [vmem:[#allocation2 + $0x32] sm:$0xff] }
 0x190   : > { %1323 = vrot.lane.b32.xlu2 %v6154_v55, %s5418_s14  ;;  %v6222_v61 = vpack.c.bf16 %v1426_v51, %v1426_v51  ;;  %v6275_v51 = vpack.c.bf16 %v1441_v41, %v1441_v41 }
 0x191   : > { %v1083_v18 = vpop.permute.xlu1 %1082 }
 0x192   : > { %1173 = vst.msk [vmem:[#allocation3 + $0x18] sm:$0xf] %vm1166_vm6, %v1083_v18  ;;  %v1097_v0 = vpop.permute.xlu2 %1096 }
 0x193   : > { %1337 = vrot.lane.b32.xlu0 %v5769_v53, %s5418_s14  ;;  %1180 = vst.msk [vmem:[#allocation3 + $0x34] sm:$0xf] %vm1166_vm6, %v1097_v0  ;;  %v1253_v53 = vpack.c.bf16 %v1221_v13, %v1221_v13  ;;  %v1456_v0 = vpack.c.bf16 %v1424_v60, %v1424_v60 }
 0x195   : > { %v1093_v12 = vpop.permute.xlu0 %1092 }
 0x196   : > { %1178 = vst.msk [vmem:[#allocation3 + $0x2c] sm:$0xf] %vm1166_vm6, %v1093_v12  ;;  %v1429_v12 = vld [vmem:[#allocation2 + $0x52] sm:$0xff] }
 0x197   : > { %1333 = vrot.lane.b32.xlu1 %v1250_v6, %s5418_s14 }
 0x198   : > { %1329 = vrot.lane.b32.xlu2 %v6164_v7, %s5418_s14 }
 0x199   : > { %v1089_v15 = vpop.permute.xlu1 %1088 }
 0x19a   : > { %1176 = vst.msk [vmem:[#allocation3 + $0x24] sm:$0xf] %vm1166_vm6, %v1089_v15  ;;  %v1103_v23 = vpop.permute.xlu2 %1102  ;;  %v1427_v15 = vld [vmem:[#allocation2 + $0x3a] sm:$0xff] }
 0x19b   : > { %1343 = vrot.lane.b32.xlu0 %v5775_v59, %s5418_s14  ;;  %1183 = vst.msk [vmem:[#allocation3 + $0x40] sm:$0xf] %vm1166_vm6, %v1103_v23  ;;  %v6233_v23 = vpack.c.bf16 %v1427_v15, %v1427_v15 }
 0x19d   : > { %v1099_v28 = vpop.permute.xlu0 %1098 }
 0x19e   : > { %1181 = vst.msk [vmem:[#allocation3 + $0x38] sm:$0xf] %vm1166_vm6, %v1099_v28 }
 0x19f   : > { %1339 = vrot.lane.b32.xlu1 %v1253_v53, %s5418_s14 }
 0x1a0   : > { %1335 = vrot.lane.b32.xlu2 %v6174_v27, %s5418_s14 }
 0x1a1   : > { %v1095_v52 = vpop.permute.xlu1 %1094 }
 0x1a2   : > { %1179 = vst.msk [vmem:[#allocation3 + $0x30] sm:$0xf] %vm1166_vm6, %v1095_v52  ;;  %v1109_v59 = vpop.permute.xlu2 %1108  ;;  %v1464_v52 = vpack.c.bf16 %v1432_v10, %v1432_v10 }
 0x1a3   : > { %1349 = vrot.lane.b32.xlu0 %v6178_v22, %s5418_s14  ;;  %1186 = vst.msk [vmem:[#allocation3 + $0x4c] sm:$0xf] %vm1166_vm6, %v1109_v59 }
 0x1a5   : > { %v1105_v24 = vpop.permute.xlu0 %1104 }
 0x1a6   : > { %1184 = vst.msk [vmem:[#allocation3 + $0x44] sm:$0xf] %vm1166_vm6, %v1105_v24  ;;  %v1433_v24 = vld [vmem:[#allocation2 + $0x82] sm:$0xff] }
 0x1a7   : > { %1345 = vrot.lane.b32.xlu1 %v1256_v34, %s5418_s14  ;;  %v1435_v34 = vld [vmem:[#allocation2 + $0x9a] sm:$0xff] }
 0x1a8   : > { %1341 = vrot.lane.b32.xlu2 %v6186_v33, %s5418_s14 }
 0x1a9   : > { %v1101_v1 = vpop.permute.xlu1 %1100 }
 0x1aa   : > { %1182 = vst.msk [vmem:[#allocation3 + $0x3c] sm:$0xf] %vm1166_vm6, %v1101_v1  ;;  %v1115_v62 = vpop.permute.xlu2 %1114  ;;  %v6253_v1 = vpack.c.bf16 %v1433_v24, %v1433_v24 }
 0x1ab   : > { %1355 = vrot.lane.b32.xlu0 %v6190_v32, %s5418_s14  ;;  %1189 = vst.msk [vmem:[#allocation3 + $0x58] sm:$0xf] %vm1166_vm6, %v1115_v62  ;;  %v1438_v62 = vld [vmem:[#allocation2 + $0xc2] sm:$0xff] }
 0x1ad   : > { %v1111_v30 = vpop.permute.xlu0 %1110 }
 0x1ae   : > { %1187 = vst.msk [vmem:[#allocation3 + $0x50] sm:$0xf] %vm1166_vm6, %v1111_v30  ;;  %v1436_v30 = vld [vmem:[#allocation2 + $0xaa] sm:$0xff] }
 0x1af   : > { %1351 = vrot.lane.b32.xlu1 %v6197_v44, %s5418_s14  ;;  %v6265_v39 = vpack.c.bf16 %v1436_v30, %v1436_v30 }
 0x1b0   : > { %1347 = vrot.lane.b32.xlu2 %v6200_v4, %s5418_s14 }
 0x1b1   : > { %v1107_v36 = vpop.permute.xlu1 %1106 }
 0x1b2   : > { %1185 = vst.msk [vmem:[#allocation3 + $0x48] sm:$0xf] %vm1166_vm6, %v1107_v36  ;;  %v1121_v25 = vpop.permute.xlu2 %1120 }
 0x1b3   : > { %1522 = vrot.lane.b32.xlu0 %v1457_v35, %s5419_s15  ;;  %1192 = vst.msk [vmem:[#allocation3 + $0x64] sm:$0xf] %vm1166_vm6, %v1121_v25 }
 0x1b5   : > { %v1117_v48 = vpop.permute.xlu0 %1116 }
 0x1b6   : > { %1190 = vst.msk [vmem:[#allocation3 + $0x5c] sm:$0xf] %vm1166_vm6, %v1117_v48  ;;  %v1439_v48 = vld [vmem:[#allocation2 + $0xca] sm:$0xff] }
 0x1b7   : > { %1357 = vrot.lane.b32.xlu1 %v6209_v45, %s5418_s14 }
 0x1b8   : > { %1353 = vrot.lane.b32.xlu2 %v6212_v58, %s5418_s14 }
 0x1b9   : > { %v1113_v56 = vpop.permute.xlu1 %1112 }
 0x1ba   : > { %1188 = vst.msk [vmem:[#allocation3 + $0x54] sm:$0xf] %vm1166_vm6, %v1113_v56  ;;  %v1127_v18 = vpop.permute.xlu2 %1126  ;;  %v6278_v56 = vpack.c.bf16 %v1439_v48, %v1439_v48  ;;  %v1650_v48 = vld [vmem:[#allocation2 + $0x30] sm:$0xff] }
 0x1bb   : > { %1528 = vrot.lane.b32.xlu0 %v5824_v42, %s5419_s15  ;;  %1195 = vst.msk [vmem:[#allocation3 + $0x70] sm:$0xf] %vm1166_vm6, %v1127_v18  ;;  %v1461_v42 = vpack.c.bf16 %v1429_v12, %v1429_v12  ;;  %v1444_v18 = vld [vmem:[#allocation2 + $0x10a] sm:$0xff] }
 0x1bc   : > { %v1476_v12 = vpack.c.bf16 %v1444_v18, %v1444_v18 }
 0x1bd   : > { %v1123_v6 = vpop.permute.xlu0 %1122 }
 0x1be   : > { %1193 = vst.msk [vmem:[#allocation3 + $0x68] sm:$0xf] %vm1166_vm6, %v1123_v6  ;;  %v1442_v6 = vld [vmem:[#allocation2 + $0xf2] sm:$0xff] }
 0x1bf   : > { %1524 = vrot.lane.b32.xlu1 %v6222_v61, %s5419_s15 }
 0x1c0   : > { %1520 = vrot.lane.b32.xlu2 %v1456_v0, %s5419_s15 }
 0x1c1   : > { %v1119_v13 = vpop.permute.xlu1 %1118 }
 0x1c2   : > { %1191 = vst.msk [vmem:[#allocation3 + $0x60] sm:$0xf] %vm1166_vm6, %v1119_v13  ;;  %v1133_v20 = vpop.permute.xlu2 %1132  ;;  %v6289_v13 = vpack.c.bf16 %v1442_v6, %v1442_v6  ;;  %v1655_v6 = vld [vmem:[#allocation2 + $0x68] sm:$0xff] }
 0x1c3   : > { %1534 = vrot.lane.b32.xlu0 %v5842_v57, %s5419_s15  ;;  %1198 = vst.msk [vmem:[#allocation3 + $0x7c] sm:$0xf] %vm1166_vm6, %v1133_v20  ;;  %v1447_v20 = vld [vmem:[#allocation2 + $0x12a] sm:$0xff] }
 0x1c5   : > { %v1129_v53 = vpop.permute.xlu0 %1128 }
 0x1c6   : > { %1196 = vst.msk [vmem:[#allocation3 + $0x74] sm:$0xf] %vm1166_vm6, %v1129_v53  ;;  %v1445_v53 = vld [vmem:[#allocation2 + $0x112] sm:$0xff] }
 0x1c7   : > { %1530 = vrot.lane.b32.xlu1 %v1461_v42, %s5419_s15 }
 0x1c8   : > { %1526 = vrot.lane.b32.xlu2 %v6233_v23, %s5419_s15 }
 0x1c9   : > { %v1125_v28 = vpop.permute.xlu1 %1124 }
 0x1ca   : > { %1194 = vst.msk [vmem:[#allocation3 + $0x6c] sm:$0xf] %vm1166_vm6, %v1125_v28  ;;  %v1300_v57 = vpop.permute.xlu2 %1299  ;;  %v6299_v28 = vpack.c.bf16 %v1445_v53, %v1445_v53  ;;  %v1651_v53 = vld [vmem:[#allocation2 + $0x38] sm:$0xff] }
 0x1cb   : > { %1540 = vrot.lane.b32.xlu0 %v5862_v9, %s5419_s15  ;;  %1394 = vst.msk [vmem:[#allocation3 + $0x8] sm:$0xf] %vm1391_vm7, %v1300_v57  ;;  %v1467_v9 = vpack.c.bf16 %v1435_v34, %v1435_v34  ;;  %v1450_v57 = vld [vmem:[#allocation2 + $0x152] sm:$0xff] }
 0x1cd   : > { %v1296_v59 = vpop.permute.xlu0 %1295 }
 0x1ce   : > { %1392 = vst.msk [vmem:[#allocation3] sm:$0xf] %vm1391_vm7, %v1296_v59  ;;  %v1448_v59 = vld [vmem:[#allocation2 + $0x13a] sm:$0xff] }
 0x1cf   : > { %1536 = vrot.lane.b32.xlu1 %v1464_v52, %s5419_s15  ;;  %v6309_v24 = vpack.c.bf16 %v1448_v59, %v1448_v59 }
 0x1d0   : > { %1532 = vrot.lane.b32.xlu2 %v6243_v21, %s5419_s15 }
 0x1d1   : > { %v1131_v5 = vpop.permute.xlu1 %1130 }
 0x1d2   : > { %1197 = vst.msk [vmem:[#allocation3 + $0x78] sm:$0xf] %vm1166_vm6, %v1131_v5  ;;  %v1306_v46 = vpop.permute.xlu2 %1305  ;;  %v1455_v5 = vld [vmem:[#allocation2 + $0x18a] sm:$0xff] }
 0x1d3   : > { %1546 = vrot.lane.b32.xlu0 %v5883_v29, %s5419_s15  ;;  %1397 = vst.msk [vmem:[#allocation3 + $0x14] sm:$0xf] %vm1391_vm7, %v1306_v46  ;;  %v6262_v29 = vpack.c.bf16 %v1438_v62, %v1438_v62 }
 0x1d5   : > { %v1302_v3 = vpop.permute.xlu0 %1301 }
 0x1d6   : > { %1395 = vst.msk [vmem:[#allocation3 + $0xc] sm:$0xf] %vm1391_vm7, %v1302_v3  ;;  %v1453_v3 = vld [vmem:[#allocation2 + $0x172] sm:$0xff] }
 0x1d7   : > { %1542 = vrot.lane.b32.xlu1 %v1467_v9, %s5419_s15  ;;  %v1487_v9 = vpack.c.bf16 %v1455_v5, %v1455_v5  ;;  %v1485_v30 = vpack.c.bf16 %v1453_v3, %v1453_v3  ;;  %v1654_v5 = vld [vmem:[#allocation2 + $0x60] sm:$0xff]  ;;  %v1661_v3 = vld [vmem:[#allocation2 + $0xb0] sm:$0xff] }
 0x1d8   : > { %1538 = vrot.lane.b32.xlu2 %v6253_v1, %s5419_s15 }
 0x1d9   : > { %v1298_v16 = vpop.permute.xlu1 %1297 }
 0x1da   : > { %1393 = vst.msk [vmem:[#allocation3 + $0x4] sm:$0xf] %vm1391_vm7, %v1298_v16  ;;  %v1312_v35 = vpop.permute.xlu2 %1311  ;;  %v1451_v16 = vld [vmem:[#allocation2 + $0x15a] sm:$0xff] }
 0x1db   : > { %1552 = vrot.lane.b32.xlu0 %v5904_v50, %s5419_s15  ;;  %1400 = vst.msk [vmem:[#allocation3 + $0x20] sm:$0xf] %vm1391_vm7, %v1312_v35  ;;  %v1652_v35 = vld [vmem:[#allocation2 + $0x48] sm:$0xff] }
 0x1dd   : > { %v1308_v36 = vpop.permute.xlu0 %1307 }
 0x1de   : > { %1398 = vst.msk [vmem:[#allocation3 + $0x18] sm:$0xf] %vm1391_vm7, %v1308_v36  ;;  %v6318_v36 = vpack.c.bf16 %v1451_v16, %v1451_v16 }
 0x1df   : > { %1548 = vrot.lane.b32.xlu1 %v6262_v29, %s5419_s15 }
 0x1e0   : > { %1544 = vrot.lane.b32.xlu2 %v6265_v39, %s5419_s15 }
 0x1e1   : > { %v1304_v25 = vpop.permute.xlu1 %1303 }
 0x1e2   : > { %1396 = vst.msk [vmem:[#allocation3 + $0x10] sm:$0xf] %vm1391_vm7, %v1304_v25  ;;  %v1318_v50 = vpop.permute.xlu2 %1317  ;;  %v1684_v25 = vpack.c.bf16 %v1652_v35, %v1652_v35 }
 0x1e3   : > { %1558 = vrot.lane.b32.xlu0 %v5925_v11, %s5419_s15  ;;  %1403 = vst.msk [vmem:[#allocation3 + $0x2c] sm:$0xf] %vm1391_vm7, %v1318_v50 }
 0x1e5   : > { %v1314_v60 = vpop.permute.xlu0 %1313 }
 0x1e6   : > { %1401 = vst.msk [vmem:[#allocation3 + $0x24] sm:$0xf] %vm1391_vm7, %v1314_v60  ;;  %v1454_v60 = vld [vmem:[#allocation2 + $0x182] sm:$0xff] }
 0x1e7   : > { %1554 = vrot.lane.b32.xlu1 %v6275_v51, %s5419_s15 }
 0x1e8   : > { %1550 = vrot.lane.b32.xlu2 %v6278_v56, %s5419_s15 }
 0x1e9   : > { %v1310_v0 = vpop.permute.xlu1 %1309 }
 0x1ea   : > { %1399 = vst.msk [vmem:[#allocation3 + $0x1c] sm:$0xf] %vm1391_vm7, %v1310_v0  ;;  %v1324_v11 = vpop.permute.xlu2 %1323  ;;  %v1682_v0 = vpack.c.bf16 %v1650_v48, %v1650_v48 }
 0x1eb   : > { %1564 = vrot.lane.b32.xlu0 %v5946_v38, %s5419_s15  ;;  %1406 = vst.msk [vmem:[#allocation3 + $0x38] sm:$0xf] %vm1391_vm7, %v1324_v11  ;;  %v1479_v38 = vpack.c.bf16 %v1447_v20, %v1447_v20  ;;  %v1486_v11 = vpack.c.bf16 %v1454_v60, %v1454_v60  ;;  %v1653_v20 = vld [vmem:[#allocation2 + $0x50] sm:$0xff] }
 0x1ed   : > { %v1320_v15 = vpop.permute.xlu0 %1319 }
 0x1ee   : > { %1404 = vst.msk [vmem:[#allocation3 + $0x30] sm:$0xf] %vm1391_vm7, %v1320_v15  ;;  %v1687_v15 = vpack.c.bf16 %v1655_v6, %v1655_v6  ;;  %v1662_v6 = vld [vmem:[#allocation2 + $0xc0] sm:$0xff] }
 0x1ef   : > { %1560 = vrot.lane.b32.xlu1 %v1476_v12, %s5419_s15 }
 0x1f0   : > { %1556 = vrot.lane.b32.xlu2 %v6289_v13, %s5419_s15 }
 0x1f1   : > { %v1316_v42 = vpop.permute.xlu1 %1315 }
 0x1f2   : > { %1402 = vst.msk [vmem:[#allocation3 + $0x28] sm:$0xf] %vm1391_vm7, %v1316_v42  ;;  %v1330_v10 = vpop.permute.xlu2 %1329 }
 0x1f3   : > { %1570 = vrot.lane.b32.xlu0 %v5967_v2, %s5419_s15  ;;  %1409 = vst.msk [vmem:[#allocation3 + $0x44] sm:$0xf] %vm1391_vm7, %v1330_v10  ;;  %v1482_v2 = vpack.c.bf16 %v1450_v57, %v1450_v57  ;;  %v1683_v57 = vpack.c.bf16 %v1651_v53, %v1651_v53 }
 0x1f5   : > { %v1326_v26 = vpop.permute.xlu0 %1325 }
 0x1f6   : > { %1407 = vst.msk [vmem:[#allocation3 + $0x3c] sm:$0xf] %vm1391_vm7, %v1326_v26  ;;  %v1658_v26 = vld [vmem:[#allocation2 + $0x90] sm:$0xff] }
 0x1f7   : > { %1566 = vrot.lane.b32.xlu1 %v1479_v38, %s5419_s15  ;;  %v1685_v38 = vpack.c.bf16 %v1653_v20, %v1653_v20  ;;  %v1690_v59 = vpack.c.bf16 %v1658_v26, %v1658_v26  ;;  %v1694_v20 = vpack.c.bf16 %v1662_v6, %v1662_v6  ;;  %v1665_v26 = vld [vmem:[#allocation2 + $0xe0] sm:$0xff] }
 0x1f8   : > { %1562 = vrot.lane.b32.xlu2 %v6299_v28, %s5419_s15 }
 0x1f9   : > { %v1322_v52 = vpop.permute.xlu1 %1321 }
 0x1fa   : > { %1405 = vst.msk [vmem:[#allocation3 + $0x34] sm:$0xf] %vm1391_vm7, %v1322_v52  ;;  %v1336_v34 = vpop.permute.xlu2 %1335 }
 0x1fb   : > { %1576 = vrot.lane.b32.xlu0 %v5983_v17, %s5419_s15  ;;  %1412 = vst.msk [vmem:[#allocation3 + $0x50] sm:$0xf] %vm1391_vm7, %v1336_v34  ;;  %v1656_v34 = vld [vmem:[#allocation2 + $0x78] sm:$0xff] }
 0x1fd   : > { %v1332_v46 = vpop.permute.xlu0 %1331 }
 0x1fe   : > { %1410 = vst.msk [vmem:[#allocation3 + $0x48] sm:$0xf] %vm1391_vm7, %v1332_v46 }
 0x1ff   : > { %1572 = vrot.lane.b32.xlu1 %v1482_v2, %s5419_s15 }
 0x200   : > { %1568 = vrot.lane.b32.xlu2 %v6309_v24, %s5419_s15 }
 0x201   : > { %v1328_v62 = vpop.permute.xlu1 %1327 }
 0x202   : > { %1408 = vst.msk [vmem:[#allocation3 + $0x40] sm:$0xf] %vm1391_vm7, %v1328_v62  ;;  %v1342_v17 = vpop.permute.xlu2 %1341  ;;  %v1686_v62 = vpack.c.bf16 %v1654_v5, %v1654_v5 }
 0x203   : > { %1582 = vrot.lane.b32.xlu0 %v1487_v9, %s5419_s15  ;;  %1415 = vst.msk [vmem:[#allocation3 + $0x5c] sm:$0xf] %vm1391_vm7, %v1342_v17  ;;  %v1688_v9 = vpack.c.bf16 %v1656_v34, %v1656_v34  ;;  %v1693_v17 = vpack.c.bf16 %v1661_v3, %v1661_v3  ;;  %v1697_v34 = vpack.c.bf16 %v1665_v26, %v1665_v26  ;;  %v1668_v3 = vld [vmem:[#allocation2 + $0x108] sm:$0xff] }
 0x205   : > { %v1338_v41 = vpop.permute.xlu0 %1337 }
 0x206   : > { %1413 = vst.msk [vmem:[#allocation3 + $0x54] sm:$0xf] %vm1391_vm7, %v1338_v41  ;;  %v1657_v41 = vld [vmem:[#allocation2 + $0x80] sm:$0xff] }
 0x207   : > { %1578 = vrot.lane.b32.xlu1 %v1485_v30, %s5419_s15  ;;  %v1659_v30 = vld [vmem:[#allocation2 + $0x98] sm:$0xff]  ;;  %v1689_v60 = vpack.c.bf16 %v1657_v41, %v1657_v41 }
 0x208   : > { %1574 = vrot.lane.b32.xlu2 %v6318_v36, %s5419_s15  ;;  %v1691_v48 = vpack.c.bf16 %v1659_v30, %v1659_v30  ;;  %v1700_v30 = vpack.c.bf16 %v1668_v3, %v1668_v3 }
 0x209   : > { %v1334_v50 = vpop.permute.xlu1 %1333 }
 0x20a   : > { %1411 = vst.msk [vmem:[#allocation3 + $0x4c] sm:$0xf] %vm1391_vm7, %v1334_v50  ;;  %v1348_v18 = vpop.permute.xlu2 %1347  ;;  %v1664_v50 = vld [vmem:[#allocation2 + $0xd8] sm:$0xff] }
 0x20b   : > { %1750 = vrot.lane.b32.xlu0 %v1684_v25, %s5420_s16  ;;  %1418 = vst.msk [vmem:[#allocation3 + $0x68] sm:$0xf] %vm1391_vm7, %v1348_v18 }
 0x20d   : > { %v1344_v12 = vpop.permute.xlu0 %1343 }
 0x20e   : > { %1416 = vst.msk [vmem:[#allocation3 + $0x60] sm:$0xf] %vm1391_vm7, %v1344_v12  ;;  %v1660_v12 = vld [vmem:[#allocation2 + $0xa8] sm:$0xff] }
 0x20f   : > { %1746 = vrot.lane.b32.xlu1 %v1682_v0, %s5420_s16  ;;  %v1696_v0 = vpack.c.bf16 %v1664_v50, %v1664_v50  ;;  %v1692_v53 = vpack.c.bf16 %v1660_v12, %v1660_v12  ;;  %v1671_v50 = vld [vmem:[#allocation2 + $0x128] sm:$0xff] }
 0x210   : > { %1580 = vrot.lane.b32.xlu2 %v1486_v11, %s5419_s15  ;;  %v1703_v6 = vpack.c.bf16 %v1671_v50, %v1671_v50 }
 0x211   : > { %v1340_v42 = vpop.permute.xlu1 %1339 }
 0x212   : > { %1414 = vst.msk [vmem:[#allocation3 + $0x58] sm:$0xf] %vm1391_vm7, %v1340_v42  ;;  %v1354_v10 = vpop.permute.xlu2 %1353  ;;  %v1667_v42 = vld [vmem:[#allocation2 + $0xf8] sm:$0xff] }
 0x213   : > { %1756 = vrot.lane.b32.xlu0 %v1687_v15, %s5420_s16  ;;  %1421 = vst.msk [vmem:[#allocation3 + $0x74] sm:$0xf] %vm1391_vm7, %v1354_v10 }
 0x215   : > { %v1350_v52 = vpop.permute.xlu0 %1349 }
 0x216   : > { %1419 = vst.msk [vmem:[#allocation3 + $0x6c] sm:$0xf] %vm1391_vm7, %v1350_v52  ;;  %v1663_v52 = vld [vmem:[#allocation2 + $0xc8] sm:$0xff] }
 0x217   : > { %1752 = vrot.lane.b32.xlu1 %v1685_v38, %s5420_s16  ;;  %v1699_v38 = vpack.c.bf16 %v1667_v42, %v1667_v42  ;;  %v1695_v5 = vpack.c.bf16 %v1663_v52, %v1663_v52  ;;  %v1674_v42 = vld [vmem:[#allocation2 + $0x150] sm:$0xff] }
 0x218   : > { %1748 = vrot.lane.b32.xlu2 %v1683_v57, %s5420_s16  ;;  %v1706_v26 = vpack.c.bf16 %v1674_v42, %v1674_v42  ;;  %v1883_v42 = vld [vmem:[#allocation2 + $0x91] sm:$0xff] }
 0x219   : > { %v1346_v2 = vpop.permute.xlu1 %1345 }
 0x21a   : > { %1417 = vst.msk [vmem:[#allocation3 + $0x64] sm:$0xf] %vm1391_vm7, %v1346_v2  ;;  %v1521_v46 = vpop.permute.xlu2 %1520  ;;  %v1670_v2 = vld [vmem:[#allocation2 + $0x120] sm:$0xff] }
 0x21b   : > { %1762 = vrot.lane.b32.xlu0 %v1690_v59, %s5420_s16  ;;  %1617 = vst.msk [vmem:[#allocation3] sm:$0xf] %vm1616_vm8, %v1521_v46 }
 0x21d   : > { %v1356_v16 = vpop.permute.xlu0 %1355 }
 0x21e   : > { %1422 = vst.msk [vmem:[#allocation3 + $0x78] sm:$0xf] %vm1391_vm7, %v1356_v16  ;;  %v1666_v16 = vld [vmem:[#allocation2 + $0xf0] sm:$0xff] }
 0x21f   : > { %1758 = vrot.lane.b32.xlu1 %v1688_v9, %s5420_s16  ;;  %v1702_v9 = vpack.c.bf16 %v1670_v2, %v1670_v2  ;;  %v1698_v41 = vpack.c.bf16 %v1666_v16, %v1666_v16  ;;  %v1675_v2 = vld [vmem:[#allocation2 + $0x158] sm:$0xff] }
 0x220   : > { %1754 = vrot.lane.b32.xlu2 %v1686_v62, %s5420_s16 }
 0x221   : > { %v1352_v35 = vpop.permute.xlu1 %1351 }
 0x222   : > { %1420 = vst.msk [vmem:[#allocation3 + $0x70] sm:$0xf] %vm1391_vm7, %v1352_v35  ;;  %v1527_v25 = vpop.permute.xlu2 %1526  ;;  %v1673_v35 = vld [vmem:[#allocation2 + $0x140] sm:$0xff] }
 0x223   : > { %1768 = vrot.lane.b32.xlu0 %v1693_v17, %s5420_s16  ;;  %1620 = vst.msk [vmem:[#allocation3 + $0xc] sm:$0xf] %vm1616_vm8, %v1527_v25 }
 0x225   : > { %v1523_v18 = vpop.permute.xlu0 %1522 }
 0x226   : > { %1618 = vst.msk [vmem:[#allocation3 + $0x4] sm:$0xf] %vm1616_vm8, %v1523_v18  ;;  %v1669_v18 = vld [vmem:[#allocation2 + $0x110] sm:$0xff] }
 0x227   : > { %1764 = vrot.lane.b32.xlu1 %v1691_v48, %s5420_s16  ;;  %v1705_v48 = vpack.c.bf16 %v1673_v35, %v1673_v35  ;;  %v1701_v12 = vpack.c.bf16 %v1669_v18, %v1669_v18 }
 0x228   : > { %1760 = vrot.lane.b32.xlu2 %v1689_v60, %s5420_s16 }
 0x229   : > { %v1358_v11 = vpop.permute.xlu1 %1357 }
 0x22a   : > { %1423 = vst.msk [vmem:[#allocation3 + $0x7c] sm:$0xf] %vm1391_vm7, %v1358_v11  ;;  %v1533_v15 = vpop.permute.xlu2 %1532  ;;  %v1676_v11 = vld [vmem:[#allocation2 + $0x168] sm:$0xff] }
 0x22b   : > { %1774 = vrot.lane.b32.xlu0 %v1696_v0, %s5420_s16  ;;  %1623 = vst.msk [vmem:[#allocation3 + $0x18] sm:$0xf] %vm1616_vm8, %v1533_v15 }
 0x22d   : > { %v1529_v10 = vpop.permute.xlu0 %1528 }
 0x22e   : > { %1621 = vst.msk [vmem:[#allocation3 + $0x10] sm:$0xf] %vm1616_vm8, %v1529_v10  ;;  %v1672_v10 = vld [vmem:[#allocation2 + $0x138] sm:$0xff] }
 0x22f   : > { %1770 = vrot.lane.b32.xlu1 %v1694_v20, %s5420_s16  ;;  %v1708_v20 = vpack.c.bf16 %v1676_v11, %v1676_v11 }
 0x230   : > { %1766 = vrot.lane.b32.xlu2 %v1692_v53, %s5420_s16 }
 0x231   : > { %v1525_v57 = vpop.permute.xlu1 %1524 }
 0x232   : > { %1619 = vst.msk [vmem:[#allocation3 + $0x8] sm:$0xf] %vm1616_vm8, %v1525_v57  ;;  %v1539_v59 = vpop.permute.xlu2 %1538  ;;  %v1704_v57 = vpack.c.bf16 %v1672_v10, %v1672_v10 }
 0x233   : > { %1780 = vrot.lane.b32.xlu0 %v1699_v38, %s5420_s16  ;;  %1626 = vst.msk [vmem:[#allocation3 + $0x24] sm:$0xf] %vm1616_vm8, %v1539_v59  ;;  %v1677_v59 = vld [vmem:[#allocation2 + $0x170] sm:$0xff] }
 0x235   : > { %v1535_v46 = vpop.permute.xlu0 %1534 }
 0x236   : > { %1624 = vst.msk [vmem:[#allocation3 + $0x1c] sm:$0xf] %vm1616_vm8, %v1535_v46  ;;  %v1709_v46 = vpack.c.bf16 %v1677_v59, %v1677_v59 }
 0x237   : > { %1776 = vrot.lane.b32.xlu1 %v1697_v34, %s5420_s16 }
 0x238   : > { %1772 = vrot.lane.b32.xlu2 %v1695_v5, %s5420_s16 }
 0x239   : > { %v1531_v62 = vpop.permute.xlu1 %1530 }
 0x23a   : > { %1622 = vst.msk [vmem:[#allocation3 + $0x14] sm:$0xf] %vm1616_vm8, %v1531_v62  ;;  %v1545_v17 = vpop.permute.xlu2 %1544  ;;  %v1680_v62 = vld [vmem:[#allocation2 + $0x198] sm:$0xff] }
 0x23b   : > { %1786 = vrot.lane.b32.xlu0 %v1702_v9, %s5420_s16  ;;  %1629 = vst.msk [vmem:[#allocation3 + $0x30] sm:$0xf] %vm1616_vm8, %v1545_v17  ;;  %v1707_v9 = vpack.c.bf16 %v1675_v2, %v1675_v2  ;;  %v1678_v17 = vld [vmem:[#allocation2 + $0x180] sm:$0xff] }
 0x23c   : > { %v1710_v35 = vpack.c.bf16 %v1678_v17, %v1678_v17 }
 0x23d   : > { %v1541_v25 = vpop.permute.xlu0 %1540 }
 0x23e   : > { %1627 = vst.msk [vmem:[#allocation3 + $0x28] sm:$0xf] %vm1616_vm8, %v1541_v25 }
 0x23f   : > { %1782 = vrot.lane.b32.xlu1 %v1700_v30, %s5420_s16 }
 0x240   : > { %1778 = vrot.lane.b32.xlu2 %v1698_v41, %s5420_s16 }
 0x241   : > { %v1537_v60 = vpop.permute.xlu1 %1536 }
 0x242   : > { %1625 = vst.msk [vmem:[#allocation3 + $0x20] sm:$0xf] %vm1616_vm8, %v1537_v60  ;;  %v1551_v0 = vpop.permute.xlu2 %1550 }
 0x243   : > { %1792 = vrot.lane.b32.xlu0 %v1705_v48, %s5420_s16  ;;  %1632 = vst.msk [vmem:[#allocation3 + $0x3c] sm:$0xf] %vm1616_vm8, %v1551_v0  ;;  %v1681_v48 = vld [vmem:[#allocation2 + $0x1a0] sm:$0xff]  ;;  %v1877_v0 = vld [vmem:[#allocation2 + $0x49] sm:$0xff] }
 0x245   : > { %v1547_v15 = vpop.permute.xlu0 %1546 }
 0x246   : > { %1630 = vst.msk [vmem:[#allocation3 + $0x34] sm:$0xf] %vm1616_vm8, %v1547_v15 }
 0x247   : > { %1788 = vrot.lane.b32.xlu1 %v1703_v6, %s5420_s16 }
 0x248   : > { %1784 = vrot.lane.b32.xlu2 %v1701_v12, %s5420_s16  ;;  %v1880_v12 = vld [vmem:[#allocation2 + $0x69] sm:$0xff] }
 0x249   : > { %v1543_v53 = vpop.permute.xlu1 %1542 }
 0x24a   : > { %1628 = vst.msk [vmem:[#allocation3 + $0x2c] sm:$0xf] %vm1616_vm8, %v1543_v53  ;;  %v1557_v38 = vpop.permute.xlu2 %1556 }
 0x24b   : > { %1798 = vrot.lane.b32.xlu0 %v1708_v20, %s5420_s16  ;;  %1635 = vst.msk [vmem:[#allocation3 + $0x48] sm:$0xf] %vm1616_vm8, %v1557_v38  ;;  %v1886_v38 = vld [vmem:[#allocation2 + $0xb1] sm:$0xff] }
 0x24d   : > { %v1553_v52 = vpop.permute.xlu0 %1552 }
 0x24e   : > { %1633 = vst.msk [vmem:[#allocation3 + $0x40] sm:$0xf] %vm1616_vm8, %v1553_v52  ;;  %v1889_v52 = vld [vmem:[#allocation2 + $0xd9] sm:$0xff] }
 0x24f   : > { %1794 = vrot.lane.b32.xlu1 %v1706_v26, %s5420_s16 }
 0x250   : > { %1790 = vrot.lane.b32.xlu2 %v1704_v57, %s5420_s16 }
 0x251   : > { %v1549_v34 = vpop.permute.xlu1 %1548 }
 0x252   : > { %1631 = vst.msk [vmem:[#allocation3 + $0x38] sm:$0xf] %vm1616_vm8, %v1549_v34  ;;  %v1563_v5 = vpop.permute.xlu2 %1562 }
 0x253   : > { %1804 = vrot.lane.b32.xlu0 %v6094_v8, %s5420_s16  ;;  %1638 = vst.msk [vmem:[#allocation3 + $0x54] sm:$0xf] %vm1616_vm8, %v1563_v5  ;;  %v1712_v8 = vpack.c.bf16 %v1680_v62, %v1680_v62  ;;  %v1892_v5 = vld [vmem:[#allocation2 + $0xf9] sm:$0xff] }
 0x255   : > { %v1559_v3 = vpop.permute.xlu0 %1558 }
 0x256   : > { %1636 = vst.msk [vmem:[#allocation3 + $0x4c] sm:$0xf] %vm1616_vm8, %v1559_v3 }
 0x257   : > { %1800 = vrot.lane.b32.xlu1 %v1709_v46, %s5420_s16 }
 0x258   : > { %1796 = vrot.lane.b32.xlu2 %v1707_v9, %s5420_s16  ;;  %v1924_v9 = vpack.c.bf16 %v1892_v5, %v1892_v5  ;;  %v2117_v5 = vld [vmem:[#allocation2 + $0xfa] sm:$0xff] }
 0x259   : > { %v1555_v16 = vpop.permute.xlu1 %1554 }
 0x25a   : > { %1634 = vst.msk [vmem:[#allocation3 + $0x44] sm:$0xf] %vm1616_vm8, %v1555_v16  ;;  %v1569_v30 = vpop.permute.xlu2 %1568  ;;  %v1895_v16 = vld [vmem:[#allocation2 + $0x121] sm:$0xff] }
 0x25b   : > { %1971 = vrot.lane.b32.xlu0 %v6106_v14, %s5421_s17  ;;  %1641 = vst.msk [vmem:[#allocation3 + $0x60] sm:$0xf] %vm1616_vm8, %v1569_v30  ;;  %v1713_v14 = vpack.c.bf16 %v1681_v48, %v1681_v48  ;;  %v1927_v30 = vpack.c.bf16 %v1895_v16, %v1895_v16 }
 0x25d   : > { %v1565_v41 = vpop.permute.xlu0 %1564 }
 0x25e   : > { %1639 = vst.msk [vmem:[#allocation3 + $0x58] sm:$0xf] %vm1616_vm8, %v1565_v41  ;;  %v1898_v41 = vld [vmem:[#allocation2 + $0x141] sm:$0xff] }
 0x25f   : > { %1806 = vrot.lane.b32.xlu1 %v1712_v8, %s5420_s16  ;;  %v1930_v48 = vpack.c.bf16 %v1898_v41, %v1898_v41 }
 0x260   : > { %1802 = vrot.lane.b32.xlu2 %v1710_v35, %s5420_s16 }
 0x261   : > { %v1561_v25 = vpop.permute.xlu1 %1560 }
 0x262   : > { %1637 = vst.msk [vmem:[#allocation3 + $0x50] sm:$0xf] %vm1616_vm8, %v1561_v25  ;;  %v1575_v50 = vpop.permute.xlu2 %1574 }
 0x263   : > { %1977 = vrot.lane.b32.xlu0 %v6118_v49, %s5421_s17  ;;  %1644 = vst.msk [vmem:[#allocation3 + $0x6c] sm:$0xf] %vm1616_vm8, %v1575_v50  ;;  %v1909_v49 = vpack.c.bf16 %v1877_v0, %v1877_v0  ;;  %v1906_v0 = vld [vmem:[#allocation2 + $0x1a1] sm:$0xff] }
 0x265   : > { %v1571_v60 = vpop.permute.xlu0 %1570 }
 0x266   : > { %1642 = vst.msk [vmem:[#allocation3 + $0x64] sm:$0xf] %vm1616_vm8, %v1571_v60 }
 0x267   : > { %1973 = vrot.lane.b32.xlu1 %v6086_v54, %s5421_s17 }
 0x268   : > { %1808 = vrot.lane.b32.xlu2 %v1713_v14, %s5420_s16 }
 0x269   : > { %v1567_v18 = vpop.permute.xlu1 %1566 }
 0x26a   : > { %1640 = vst.msk [vmem:[#allocation3 + $0x5c] sm:$0xf] %vm1616_vm8, %v1567_v18  ;;  %v1581_v6 = vpop.permute.xlu2 %1580 }
 0x26b   : > { %1983 = vrot.lane.b32.xlu0 %v6130_v19, %s5421_s17  ;;  %1647 = vst.msk [vmem:[#allocation3 + $0x78] sm:$0xf] %vm1616_vm8, %v1581_v6  ;;  %v1912_v19 = vpack.c.bf16 %v1880_v12, %v1880_v12 }
 0x26d   : > { %v1577_v11 = vpop.permute.xlu0 %1576 }
 0x26e   : > { %1645 = vst.msk [vmem:[#allocation3 + $0x70] sm:$0xf] %vm1616_vm8, %v1577_v11 }
 0x26f   : > { %1979 = vrot.lane.b32.xlu1 %v6098_v47, %s5421_s17 }
 0x270   : > { %1975 = vrot.lane.b32.xlu2 %v1909_v49, %s5421_s17  ;;  %v1938_v49 = vpack.c.bf16 %v1906_v0, %v1906_v0  ;;  %v5319_v0 = vld [vmem:[%s7738_s2 + $0x18] sm:$0xff] }
 0x271   : > { %v1573_v54 = vpop.permute.xlu1 %1572 }
 0x272   : > { %1643 = vst.msk [vmem:[#allocation3 + $0x68] sm:$0xf] %vm1616_vm8, %v1573_v54  ;;  %v1749_v15 = vpop.permute.xlu2 %1748 }
 0x273   : > { %1989 = vrot.lane.b32.xlu0 %v6142_v63, %s5421_s17  ;;  %1844 = vst.msk [vmem:[#allocation3 + $0x4] sm:$0xf] %vm1842_vm9, %v1749_v15  ;;  %v1915_v63 = vpack.c.bf16 %v1883_v42, %v1883_v42  ;;  %v2105_v15 = vld [vmem:[#allocation2 + $0x6a] sm:$0xff] }
 0x275   : > { %v1583_v20 = vpop.permute.xlu0 %1582 }
 0x276   : > { %1648 = vst.msk [vmem:[#allocation3 + $0x7c] sm:$0xf] %vm1616_vm8, %v1583_v20 }
 0x277   : > { %1985 = vrot.lane.b32.xlu1 %v6110_v37, %s5421_s17 }
 0x278   : > { %1981 = vrot.lane.b32.xlu2 %v1912_v19, %s5421_s17  ;;  %v2103_v19 = vld [vmem:[#allocation2 + $0x52] sm:$0xff] }
 0x279   : > { %v1579_v47 = vpop.permute.xlu1 %1578 }
 0x27a   : > { %1646 = vst.msk [vmem:[#allocation3 + $0x74] sm:$0xf] %vm1616_vm8, %v1579_v47  ;;  %v1755_v53 = vpop.permute.xlu2 %1754  ;;  %v2137_v47 = vpack.c.bf16 %v2105_v15, %v2105_v15  ;;  %v2126_v15 = vld [vmem:[#allocation2 + $0x16a] sm:$0xff] }
 0x27b   : > { %1995 = vrot.lane.b32.xlu0 %v6154_v55, %s5421_s17  ;;  %1847 = vst.msk [vmem:[#allocation3 + $0x10] sm:$0xf] %vm1842_vm9, %v1755_v53  ;;  %v1918_v55 = vpack.c.bf16 %v1886_v38, %v1886_v38  ;;  %v2108_v53 = vld [vmem:[#allocation2 + $0x92] sm:$0xff] }
 0x27d   : > { %v1751_v10 = vpop.permute.xlu0 %1750 }
 0x27e   : > { %1845 = vst.msk [vmem:[#allocation3 + $0x8] sm:$0xf] %vm1842_vm9, %v1751_v10 }
 0x27f   : > { %1991 = vrot.lane.b32.xlu1 %v6122_v31, %s5421_s17 }
 0x280   : > { %1987 = vrot.lane.b32.xlu2 %v1915_v63, %s5421_s17  ;;  %v2106_v63 = vld [vmem:[#allocation2 + $0x7a] sm:$0xff] }
 0x281   : > { %v1747_v37 = vpop.permute.xlu1 %1746 }
 0x282   : > { %1843 = vst.msk [vmem:[#allocation3] sm:$0xf] %vm1842_vm9, %v1747_v37  ;;  %v1761_v26 = vpop.permute.xlu2 %1760  ;;  %v2140_v37 = vpack.c.bf16 %v2108_v53, %v2108_v53 }
 0x283   : > { %2001 = vrot.lane.b32.xlu0 %v6164_v7, %s5421_s17  ;;  %1850 = vst.msk [vmem:[#allocation3 + $0x1c] sm:$0xf] %vm1842_vm9, %v1761_v26  ;;  %v1921_v7 = vpack.c.bf16 %v1889_v52, %v1889_v52  ;;  %v2111_v26 = vld [vmem:[#allocation2 + $0xb2] sm:$0xff] }
 0x284   : > { %v2143_v52 = vpack.c.bf16 %v2111_v26, %v2111_v26 }
 0x285   : > { %v1757_v57 = vpop.permute.xlu0 %1756 }
 0x286   : > { %1848 = vst.msk [vmem:[#allocation3 + $0x14] sm:$0xf] %vm1842_vm9, %v1757_v57  ;;  %v2109_v57 = vld [vmem:[#allocation2 + $0x9a] sm:$0xff] }
 0x287   : > { %1997 = vrot.lane.b32.xlu1 %v6134_v40, %s5421_s17  ;;  %v1894_v40 = vld [vmem:[#allocation2 + $0x111] sm:$0xff] }
 0x288   : > { %1993 = vrot.lane.b32.xlu2 %v1918_v55, %s5421_s17 }
 0x289   : > { %v1753_v31 = vpop.permute.xlu1 %1752 }
 0x28a   : > { %1846 = vst.msk [vmem:[#allocation3 + $0xc] sm:$0xf] %vm1842_vm9, %v1753_v31  ;;  %v1767_v59 = vpop.permute.xlu2 %1766 }
 0x28b   : > { %2007 = vrot.lane.b32.xlu0 %v6174_v27, %s5421_s17  ;;  %1853 = vst.msk [vmem:[#allocation3 + $0x28] sm:$0xf] %vm1842_vm9, %v1767_v59  ;;  %v1926_v27 = vpack.c.bf16 %v1894_v40, %v1894_v40 }
 0x28d   : > { %v1763_v34 = vpop.permute.xlu0 %1762 }
 0x28e   : > { %1851 = vst.msk [vmem:[#allocation3 + $0x20] sm:$0xf] %vm1842_vm9, %v1763_v34 }
 0x28f   : > { %2003 = vrot.lane.b32.xlu1 %v6146_v43, %s5421_s17  ;;  %v1897_v43 = vld [vmem:[#allocation2 + $0x139] sm:$0xff] }
 0x290   : > { %1999 = vrot.lane.b32.xlu2 %v1921_v7, %s5421_s17  ;;  %v2114_v7 = vld [vmem:[#allocation2 + $0xda] sm:$0xff] }
 0x291   : > { %v1759_v2 = vpop.permute.xlu1 %1758 }
 0x292   : > { %1849 = vst.msk [vmem:[#allocation3 + $0x18] sm:$0xf] %vm1842_vm9, %v1759_v2  ;;  %v1773_v46 = vpop.permute.xlu2 %1772  ;;  %v2146_v2 = vpack.c.bf16 %v2114_v7, %v2114_v7 }
 0x293   : > { %2013 = vrot.lane.b32.xlu0 %v6186_v33, %s5421_s17  ;;  %1856 = vst.msk [vmem:[#allocation3 + $0x34] sm:$0xf] %vm1842_vm9, %v1773_v46  ;;  %v1929_v33 = vpack.c.bf16 %v1897_v43, %v1897_v43 }
 0x295   : > { %v1769_v3 = vpop.permute.xlu0 %1768 }
 0x296   : > { %1854 = vst.msk [vmem:[#allocation3 + $0x2c] sm:$0xf] %vm1842_vm9, %v1769_v3  ;;  %v2120_v3 = vld [vmem:[#allocation2 + $0x122] sm:$0xff] }
 0x297   : > { %2009 = vrot.lane.b32.xlu1 %v1926_v27, %s5421_s17  ;;  %v2152_v16 = vpack.c.bf16 %v2120_v3, %v2120_v3 }
 0x298   : > { %2005 = vrot.lane.b32.xlu2 %v1924_v9, %s5421_s17  ;;  %v2149_v9 = vpack.c.bf16 %v2117_v5, %v2117_v5 }
 0x299   : > { %v1765_v62 = vpop.permute.xlu1 %1764 }
 0x29a   : > { %1852 = vst.msk [vmem:[#allocation3 + $0x24] sm:$0xf] %vm1842_vm9, %v1765_v62  ;;  %v1779_v17 = vpop.permute.xlu2 %1778  ;;  %v2118_v62 = vld [vmem:[#allocation2 + $0x10a] sm:$0xff] }
 0x29b   : > { %2019 = vrot.lane.b32.xlu0 %v6200_v4, %s5421_s17  ;;  %1859 = vst.msk [vmem:[#allocation3 + $0x40] sm:$0xf] %vm1842_vm9, %v1779_v17  ;;  %v1905_v4 = vld [vmem:[#allocation2 + $0x199] sm:$0xff] }
 0x29c   : > { %v1937_v14 = vpack.c.bf16 %v1905_v4, %v1905_v4  ;;  %v2365_v4 = vld [vmem:[%s7738_s2 + $0x20] sm:$0xf] }
 0x29d   : > { %v1775_v8 = vpop.permute.xlu0 %1774 }
 0x29e   : > { %1857 = vst.msk [vmem:[#allocation3 + $0x38] sm:$0xf] %vm1842_vm9, %v1775_v8 }
 0x29f   : > { %2015 = vrot.lane.b32.xlu1 %v1929_v33, %s5421_s17 }
 0x2a0   : > { %2011 = vrot.lane.b32.xlu2 %v1927_v30, %s5421_s17  ;;  %v2123_v30 = vld [vmem:[#allocation2 + $0x142] sm:$0xff] }
 0x2a1   : > { %v1771_v35 = vpop.permute.xlu1 %1770  ;;  %v2155_v8 = vpack.c.bf16 %v2123_v30, %v2123_v30 }
 0x2a2   : > { %1855 = vst.msk [vmem:[#allocation3 + $0x30] sm:$0xf] %vm1842_vm9, %v1771_v35  ;;  %v1785_v25 = vpop.permute.xlu2 %1784 }
 0x2a3   : > { %2025 = vrot.lane.b32.xlu0 %v6212_v58, %s5421_s17  ;;  %1862 = vst.msk [vmem:[#allocation3 + $0x4c] sm:$0xf] %vm1842_vm9, %v1785_v25  ;;  %v2121_v25 = vld [vmem:[#allocation2 + $0x12a] sm:$0xff] }
 0x2a5   : > { %v1781_v50 = vpop.permute.xlu0 %1780 }
 0x2a6   : > { %1860 = vst.msk [vmem:[#allocation3 + $0x44] sm:$0xf] %vm1842_vm9, %v1781_v50  ;;  %v2467_v50 = vunpack.c.l.b16 %v2365_v4 }
 0x2a7   : > { %2021 = vrot.lane.b32.xlu1 %v6178_v22, %s5421_s17 }
 0x2a8   : > { %2017 = vrot.lane.b32.xlu2 %v1930_v48, %s5421_s17  ;;  %v2153_v48 = vpack.c.bf16 %v2121_v25, %v2121_v25 }
 0x2a9   : > { %v1777_v60 = vpop.permute.xlu1 %1776 }
 0x2aa   : > { %1858 = vst.msk [vmem:[#allocation3 + $0x3c] sm:$0xf] %vm1842_vm9, %v1777_v60  ;;  %v1791_v18 = vpop.permute.xlu2 %1790 }
 0x2ab   : > { %2031 = vrot.lane.b32.xlu0 %v1937_v14, %s5421_s17  ;;  %1865 = vst.msk [vmem:[#allocation3 + $0x58] sm:$0xf] %vm1842_vm9, %v1791_v18  ;;  %v2472_v14 = vpack.c.b16 %v2467_v50, %v2467_v50 }
 0x2ad   : > { %v1787_v58 = vpop.permute.xlu0 %1786  ;;  %v2528_v60 = vsel %vm2526_vm11, %v2472_v14, 0 }
 0x2ae   : > { %1863 = vst.msk [vmem:[#allocation3 + $0x50] sm:$0xf] %vm1842_vm9, %v1787_v58  ;;  %2533 = vmatpush.bf16.msra.mxu0 %v2528_v60  ;;  %5340 = vmatpush.bf16.msra.mxu2 %v2528_v60 }
 0x2af   : > { %2027 = vrot.lane.b32.xlu1 %v6190_v32, %s5421_s17  ;;  %v2102_v32 = vld [vmem:[#allocation2 + $0x4a] sm:$0xff] }
 0x2b0   : > { %2023 = vrot.lane.b32.xlu2 %v6197_v44, %s5421_s17  ;;  %v2134_v12 = vpack.c.bf16 %v2102_v32, %v2102_v32  ;;  %v5317_v32 = vld [vmem:[%s7738_s2 + $0x8] sm:$0xff] }
 0x2b1   : > { %v1783_v22 = vpop.permute.xlu1 %1782 }
 0x2b2   : > { %1861 = vst.msk [vmem:[#allocation3 + $0x48] sm:$0xf] %vm1842_vm9, %v1783_v22  ;;  %v1797_v6 = vpop.permute.xlu2 %1796  ;;  %2534 = vmatpush.bf16.msra.mxu0 %v5319_v0  ;;  %v5318_v22 = vld [vmem:[%s7738_s2 + $0x10] sm:$0xff]  ;;  %5341 = vmatpush.bf16.msra.mxu2 %v5319_v0  ;;  %v2131_v0 = vld [vmem:[#allocation2 + $0x1a2] sm:$0xff] }
 0x2b3   : > { %2198 = vrot.lane.b32.xlu0 %v6233_v23, %s5422_s18  ;;  %1868 = vst.msk [vmem:[#allocation3 + $0x64] sm:$0xf] %vm1842_vm9, %v1797_v6 }
 0x2b5   : > { %v1793_v11 = vpop.permute.xlu0 %1792 }
 0x2b6   : > { %1866 = vst.msk [vmem:[#allocation3 + $0x5c] sm:$0xf] %vm1842_vm9, %v1793_v11  ;;  %2535 = vmatpush.bf16.msra.mxu0 %v5318_v22  ;;  %5342 = vmatpush.bf16.msra.mxu2 %v5318_v22  ;;  %v2163_v22 = vpack.c.bf16 %v2131_v0, %v2131_v0 }
 0x2b7   : > { %2033 = vrot.lane.b32.xlu1 %v1938_v49, %s5421_s17 }
 0x2b8   : > { %2029 = vrot.lane.b32.xlu2 %v6209_v45, %s5421_s17 }
 0x2b9   : > { %v1789_v44 = vpop.permute.xlu1 %1788 }
 0x2ba   : > { %1864 = vst.msk [vmem:[#allocation3 + $0x54] sm:$0xf] %vm1842_vm9, %v1789_v44  ;;  %v1803_v54 = vpop.permute.xlu2 %1802  ;;  %2536 = vmatpush.bf16.msra.mxu0 %v5317_v32  ;;  %v5316_v44 = vld [vmem:[%s7738_s2] sm:$0xff]  ;;  %5343 = vmatpush.bf16.msra.mxu2 %v5317_v32  ;;  %v2891_v32 = vld [vmem:[#allocation4 + $0x1] sm:$0xff] }
 0x2bb   : > { %2204 = vrot.lane.b32.xlu0 %v6243_v21, %s5422_s18  ;;  %1871 = vst.msk [vmem:[#allocation3 + $0x70] sm:$0xf] %vm1842_vm9, %v1803_v54  ;;  %v2135_v21 = vpack.c.bf16 %v2103_v19, %v2103_v19 }
 0x2bd   : > { %v1799_v23 = vpop.permute.xlu0 %1798 }
 0x2be   : > { %1869 = vst.msk [vmem:[#allocation3 + $0x68] sm:$0xf] %vm1842_vm9, %v1799_v23  ;;  %2537 = vmatpush.bf16.msra.mxu0 %v5316_v44  ;;  %5344 = vmatpush.bf16.msra.mxu2 %v5316_v44 }
 0x2bf   : > { %2200 = vrot.lane.b32.xlu1 %v2134_v12, %s5422_s18 }
 0x2c0   : > { %2196 = vrot.lane.b32.xlu2 %v6222_v61, %s5422_s18 }
 0x2c1   : > { %v1795_v45 = vpop.permute.xlu1 %1794 }
 0x2c2   : > { %1867 = vst.msk [vmem:[#allocation3 + $0x60] sm:$0xf] %vm1842_vm9, %v1795_v45  ;;  %v1809_v20 = vpop.permute.xlu2 %1808  ;;  %v2158_v45 = vpack.c.bf16 %v2126_v15, %v2126_v15  ;;  %v2892_v15 = vld [vmem:[#allocation4 + $0x9] sm:$0xff] }
 0x2c3   : > { %2210 = vrot.lane.b32.xlu0 %v6253_v1, %s5422_s18  ;;  %1874 = vst.msk [vmem:[#allocation3 + $0x7c] sm:$0xf] %vm1842_vm9, %v1809_v20  ;;  %v2138_v1 = vpack.c.bf16 %v2106_v63, %v2106_v63 }
 0x2c5   : > { %v1805_v42 = vpop.permute.xlu0 %1804 }
 0x2c6   : > { %1872 = vst.msk [vmem:[#allocation3 + $0x74] sm:$0xf] %vm1842_vm9, %v1805_v42 }
 0x2c7   : > { %2206 = vrot.lane.b32.xlu1 %v2137_v47, %s5422_s18 }
 0x2c8   : > { %2202 = vrot.lane.b32.xlu2 %v2135_v21, %s5422_s18  ;;  %v2124_v21 = vld [vmem:[#allocation2 + $0x152] sm:$0xff] }
 0x2c9   : > { %v1801_v61 = vpop.permute.xlu1 %1800  ;;  %v2156_v42 = vpack.c.bf16 %v2124_v21, %v2124_v21 }
 0x2ca   : > { %1870 = vst.msk [vmem:[#allocation3 + $0x6c] sm:$0xf] %vm1842_vm9, %v1801_v61  ;;  %v1976_v10 = vpop.permute.xlu2 %1975 }
 0x2cb   : > { %2216 = vrot.lane.b32.xlu0 %v6265_v39, %s5422_s18  ;;  %2070 = vst.msk [vmem:[#allocation3 + $0x8] sm:$0xf] %vm2067_vm10, %v1976_v10  ;;  %v2141_v39 = vpack.c.bf16 %v2109_v57, %v2109_v57  ;;  %v2128_v10 = vld [vmem:[#allocation2 + $0x182] sm:$0xff] }
 0x2cd   : > { %v1972_v38 = vpop.permute.xlu0 %1971 }
 0x2ce   : > { %2068 = vst.msk [vmem:[#allocation3] sm:$0xf] %vm2067_vm10, %v1972_v38 }
 0x2cf   : > { %2212 = vrot.lane.b32.xlu1 %v2140_v37, %s5422_s18  ;;  %v2129_v37 = vld [vmem:[#allocation2 + $0x18a] sm:$0xff] }
 0x2d0   : > { %2208 = vrot.lane.b32.xlu2 %v2138_v1, %s5422_s18  ;;  %v2160_v1 = vpack.c.bf16 %v2128_v10, %v2128_v10  ;;  %v2161_v38 = vpack.c.bf16 %v2129_v37, %v2129_v37 }
 0x2d1   : > { %v1807_v55 = vpop.permute.xlu1 %1806 }
 0x2d2   : > { %1873 = vst.msk [vmem:[#allocation3 + $0x78] sm:$0xf] %vm1842_vm9, %v1807_v55  ;;  %v1982_v31 = vpop.permute.xlu2 %1981 }
 0x2d3   : > { %2222 = vrot.lane.b32.xlu0 %v6278_v56, %s5422_s18  ;;  %2073 = vst.msk [vmem:[#allocation3 + $0x14] sm:$0xf] %vm2067_vm10, %v1982_v31  ;;  %v2127_v31 = vld [vmem:[#allocation2 + $0x172] sm:$0xff] }
 0x2d5   : > { %v1978_v59 = vpop.permute.xlu0 %1977 }
 0x2d6   : > { %2071 = vst.msk [vmem:[#allocation3 + $0xc] sm:$0xf] %vm2067_vm10, %v1978_v59 }
 0x2d7   : > { %2218 = vrot.lane.b32.xlu1 %v2143_v52, %s5422_s18  ;;  %v2159_v52 = vpack.c.bf16 %v2127_v31, %v2127_v31 }
 0x2d8   : > { %2214 = vrot.lane.b32.xlu2 %v2141_v39, %s5422_s18 }
 0x2d9   : > { %v1974_v34 = vpop.permute.xlu1 %1973 }
 0x2da   : > { %2069 = vst.msk [vmem:[#allocation3 + $0x4] sm:$0xf] %vm2067_vm10, %v1974_v34  ;;  %v1988_v40 = vpop.permute.xlu2 %1987 }
 0x2db   : > { %2228 = vrot.lane.b32.xlu0 %v6289_v13, %s5422_s18  ;;  %2076 = vst.msk [vmem:[#allocation3 + $0x20] sm:$0xf] %vm2067_vm10, %v1988_v40 }
 0x2dd   : > { %v1984_v56 = vpop.permute.xlu0 %1983 }
 0x2de   : > { %2074 = vst.msk [vmem:[#allocation3 + $0x18] sm:$0xf] %vm2067_vm10, %v1984_v56 }
 0x2df   : > { %2224 = vrot.lane.b32.xlu1 %v2146_v2, %s5422_s18 }
 0x2e0   : > { %2220 = vrot.lane.b32.xlu2 %v6262_v29, %s5422_s18 }
 0x2e1   : > { %v1980_v46 = vpop.permute.xlu1 %1979 }
 0x2e2   : > { %2072 = vst.msk [vmem:[#allocation3 + $0x10] sm:$0xf] %vm2067_vm10, %v1980_v46  ;;  %v1994_v27 = vpop.permute.xlu2 %1993 }
 0x2e3   : > { %2079 = vst.msk [vmem:[#allocation3 + $0x2c] sm:$0xf] %vm2067_vm10, %v1994_v27  ;;  %2234 = vrot.lane.b32.xlu0 %v6299_v28, %s5422_s18  ;;  %v2150_v28 = vpack.c.bf16 %v2118_v62, %v2118_v62 }
 0x2e5   : > { %v1990_v13 = vpop.permute.xlu0 %1989 }
 0x2e6   : > { %2077 = vst.msk [vmem:[#allocation3 + $0x24] sm:$0xf] %vm2067_vm10, %v1990_v13 }
 0x2e7   : > { %2230 = vrot.lane.b32.xlu1 %v2149_v9, %s5422_s18 }
 0x2e8   : > { %2226 = vrot.lane.b32.xlu2 %v6275_v51, %s5422_s18 }
 0x2e9   : > { %v1986_v29 = vpop.permute.xlu1 %1985 }
 0x2ea   : > { %2075 = vst.msk [vmem:[#allocation3 + $0x1c] sm:$0xf] %vm2067_vm10, %v1986_v29  ;;  %v2000_v43 = vpop.permute.xlu2 %1999 }
 0x2eb   : > { %2082 = vst.msk [vmem:[#allocation3 + $0x38] sm:$0xf] %vm2067_vm10, %v2000_v43  ;;  %2240 = vrot.lane.b32.xlu0 %v6309_v24, %s5422_s18 }
 0x2ed   : > { %v1996_v17 = vpop.permute.xlu0 %1995 }
 0x2ee   : > { %2080 = vst.msk [vmem:[#allocation3 + $0x30] sm:$0xf] %vm2067_vm10, %v1996_v17 }
 0x2ef   : > { %2236 = vrot.lane.b32.xlu1 %v2152_v16, %s5422_s18 }
 0x2f0   : > { %2232 = vrot.lane.b32.xlu2 %v2150_v28, %s5422_s18 }
 0x2f1   : > { %v1992_v51 = vpop.permute.xlu1 %1991 }
 0x2f2   : > { %2078 = vst.msk [vmem:[#allocation3 + $0x28] sm:$0xf] %vm2067_vm10, %v1992_v51  ;;  %v2006_v33 = vpop.permute.xlu2 %2005 }
 0x2f3   : > { %2085 = vst.msk [vmem:[#allocation3 + $0x44] sm:$0xf] %vm2067_vm10, %v2006_v33  ;;  %2246 = vrot.lane.b32.xlu0 %v6318_v36, %s5422_s18 }
 0x2f5   : > { %v2002_v24 = vpop.permute.xlu0 %2001 }
 0x2f6   : > { %2083 = vst.msk [vmem:[#allocation3 + $0x3c] sm:$0xf] %vm2067_vm10, %v2002_v24 }
 0x2f7   : > { %2242 = vrot.lane.b32.xlu1 %v2155_v8, %s5422_s18 }
 0x2f8   : > { %2238 = vrot.lane.b32.xlu2 %v2153_v48, %s5422_s18 }
 0x2f9   : > { %v1998_v35 = vpop.permute.xlu1 %1997 }
 0x2fa   : > { %2081 = vst.msk [vmem:[#allocation3 + $0x34] sm:$0xf] %vm2067_vm10, %v1998_v35  ;;  %v2012_v41 = vpop.permute.xlu2 %2011 }
 0x2fb   : > { %2088 = vst.msk [vmem:[#allocation3 + $0x50] sm:$0xf] %vm2067_vm10, %v2012_v41  ;;  %2252 = vrot.lane.b32.xlu0 %v2160_v1, %s5422_s18 }
 0x2fd   : > { %v2008_v36 = vpop.permute.xlu0 %2007 }
 0x2fe   : > { %2086 = vst.msk [vmem:[#allocation3 + $0x48] sm:$0xf] %vm2067_vm10, %v2008_v36 }
 0x2ff   : > { %2248 = vrot.lane.b32.xlu1 %v2158_v45, %s5422_s18  ;;  %v2924_v45 = vpack.c.bf16 %v2892_v15, %v2892_v15 }
 0x300   : > { %2244 = vrot.lane.b32.xlu2 %v2156_v42, %s5422_s18 }
 0x301   : > { %v2004_v18 = vpop.permute.xlu1 %2003 }
 0x302   : > { %2084 = vst.msk [vmem:[#allocation3 + $0x40] sm:$0xf] %vm2067_vm10, %v2004_v18  ;;  %v2018_v58 = vpop.permute.xlu2 %2017 }
 0x303   : > { %2091 = vst.msk [vmem:[#allocation3 + $0x5c] sm:$0xf] %vm2067_vm10, %v2018_v58  ;;  %2258 = vrot.lane.b32.xlu0 %v2163_v22, %s5422_s18 }
 0x305   : > { %v2014_v6 = vpop.permute.xlu0 %2013 }
 0x306   : > { %2089 = vst.msk [vmem:[#allocation3 + $0x54] sm:$0xf] %vm2067_vm10, %v2014_v6 }
 0x307   : > { %2254 = vrot.lane.b32.xlu1 %v2161_v38, %s5422_s18 }
 0x308   : > { %2250 = vrot.lane.b32.xlu2 %v2159_v52, %s5422_s18 }
 0x309   : > { %v2010_v49 = vpop.permute.xlu1 %2009 }
 0x30a   : > { %2087 = vst.msk [vmem:[#allocation3 + $0x4c] sm:$0xf] %vm2067_vm10, %v2010_v49  ;;  %v2024_v11 = vpop.permute.xlu2 %2023 }
 0x30b   : > { %2094 = vst.msk [vmem:[#allocation3 + $0x68] sm:$0xf] %vm2067_vm10, %v2024_v11  ;;  %v2130_v11 = vld [vmem:[#allocation2 + $0x19a] sm:$0xff] }
 0x30c   : > { %v2162_v44 = vpack.c.bf16 %v2130_v11, %v2130_v11 }
 0x30d   : > { %v2020_v54 = vpop.permute.xlu0 %2019 }
 0x30e   : > { %2092 = vst.msk [vmem:[#allocation3 + $0x60] sm:$0xf] %vm2067_vm10, %v2020_v54  ;;  %v2923_v54 = vpack.c.bf16 %v2891_v32, %v2891_v32 }
 0x310   : > { %2256 = vrot.lane.b32.xlu2 %v2162_v44, %s5422_s18  ;;  %2987 = vrot.lane.b32.xlu1 %v2923_v54, %s5415_s26 }
 0x311   : > { %v2016_v12 = vpop.permute.xlu1 %2015 }
 0x312   : > { %2090 = vst.msk [vmem:[#allocation3 + $0x58] sm:$0xf] %vm2067_vm10, %v2016_v12  ;;  %v2030_v23 = vpop.permute.xlu2 %2029 }
 0x313   : > { %2097 = vst.msk [vmem:[#allocation3 + $0x74] sm:$0xf] %vm2067_vm10, %v2030_v23 }
 0x315   : > { %v2026_v19 = vpop.permute.xlu0 %2025 }
 0x316   : > { %2095 = vst.msk [vmem:[#allocation3 + $0x6c] sm:$0xf] %vm2067_vm10, %v2026_v19  ;;  %v6624_v19 = vld [vmem:[%s7739_s3] ss:$0 sm:$0xff] }
 0x318   : > { %2989 = vrot.lane.b32.xlu2 %v2924_v45, %s5415_s26 }
 0x319   : > { %v2022_v20 = vpop.permute.xlu1 %2021 }
 0x31a   : > { %2093 = vst.msk [vmem:[#allocation3 + $0x64] sm:$0xf] %vm2067_vm10, %v2022_v20  ;;  %v2197_v47 = vpop.permute.xlu2 %2196  ;;  %v6629_v20 = vld [vmem:[%s7740_s4] ss:$0 sm:$0xff] }
 0x31b   : > { %2293 = vst.msk [vmem:[#allocation3] sm:$0xf] %vm2292_vm12, %v2197_v47 }
 0x31d   : > { %v2032_v53 = vpop.permute.xlu0 %2031 }
 0x31e   : > { %2098 = vst.msk [vmem:[#allocation3 + $0x78] sm:$0xf] %vm2067_vm10, %v2032_v53 }
 0x321   : > { %v2028_v61 = vpop.permute.xlu1 %2027 }
 0x322   : > { %2096 = vst.msk [vmem:[#allocation3 + $0x70] sm:$0xf] %vm2067_vm10, %v2028_v61  ;;  %v2203_v63 = vpop.permute.xlu2 %2202 }
 0x323   : > { %2296 = vst.msk [vmem:[#allocation3 + $0xc] sm:$0xf] %vm2292_vm12, %v2203_v63 }
 0x325   : > { %v2199_v26 = vpop.permute.xlu0 %2198 }
 0x326   : > { %2294 = vst.msk [vmem:[#allocation3 + $0x4] sm:$0xf] %vm2292_vm12, %v2199_v26 }
 0x329   : > { %v2034_v55 = vpop.permute.xlu1 %2033 }
 0x32a   : > { %2099 = vst.msk [vmem:[#allocation3 + $0x7c] sm:$0xf] %vm2067_vm10, %v2034_v55  ;;  %v2209_v57 = vpop.permute.xlu2 %2208 }
 0x32b   : > { %2299 = vst.msk [vmem:[#allocation3 + $0x18] sm:$0xf] %vm2292_vm12, %v2209_v57 }
 0x32d   : > { %v5300_v39 = vld [vmem:[#allocation3] sm:$0xff]  ;;  %v2205_v59 = vpop.permute.xlu0 %2204 }
 0x32e   : > { %2297 = vst.msk [vmem:[#allocation3 + $0x10] sm:$0xf] %vm2292_vm12, %v2205_v59  ;;  %5184 = vmatmul.msk.bf16.vlgmr.msra.gmra.mxu0 %vm2477_vm13, %v5300_v39 }
 0x331   : > { %v2201_v7 = vpop.permute.xlu1 %2200 }
 0x332   : > { %2295 = vst.msk [vmem:[#allocation3 + $0x8] sm:$0xf] %vm2292_vm12, %v2201_v7  ;;  %v2215_v34 = vpop.permute.xlu2 %2214 }
 0x333   : > { %2302 = vst.msk [vmem:[#allocation3 + $0x24] sm:$0xf] %vm2292_vm12, %v2215_v34 }
 0x335   : > { %v2211_v40 = vpop.permute.xlu0 %2210 }
 0x336   : > { %2300 = vst.msk [vmem:[#allocation3 + $0x1c] sm:$0xf] %vm2292_vm12, %v2211_v40 }
 0x339   : > { %v2207_v2 = vpop.permute.xlu1 %2206  ;;  %v5301_v5 = vld [vmem:[#allocation3 + $0x8] sm:$0xff] }
 0x33a   : > { %2298 = vst.msk [vmem:[#allocation3 + $0x14] sm:$0xf] %vm2292_vm12, %v2207_v2  ;;  %v2221_v56 = vpop.permute.xlu2 %2220 }
 0x33b   : > { %2305 = vst.msk [vmem:[#allocation3 + $0x30] sm:$0xf] %vm2292_vm12, %v2221_v56 }
 0x33d   : > { %v2217_v46 = vpop.permute.xlu0 %2216  ;;  %v5303_v33 = vld [vmem:[#allocation3 + $0x18] sm:$0xff] }
 0x33e   : > { %2303 = vst.msk [vmem:[#allocation3 + $0x28] sm:$0xf] %vm2292_vm12, %v2217_v46  ;;  %5185 = vmatmul.msk.bf16.gmra.mxu0 %vm2477_vm13, %v5301_v5 }
 0x341   : > { %v2213_v27 = vpop.permute.xlu1 %2212  ;;  %v5302_v43 = vld [vmem:[#allocation3 + $0x10] sm:$0xff] }
 0x342   : > { %2301 = vst.msk [vmem:[#allocation3 + $0x20] sm:$0xf] %vm2292_vm12, %v2213_v27  ;;  %v2227_v9 = vpop.permute.xlu2 %2226 }
 0x343   : > { %2308 = vst.msk [vmem:[#allocation3 + $0x3c] sm:$0xf] %vm2292_vm12, %v2227_v9 }
 0x345   : > { %v2223_v13 = vpop.permute.xlu0 %2222 }
 0x346   : > { %2306 = vst.msk [vmem:[#allocation3 + $0x34] sm:$0xf] %vm2292_vm12, %v2223_v13 }
 0x349   : > { %v2219_v3 = vpop.permute.xlu1 %2218  ;;  %v5304_v41 = vld [vmem:[#allocation3 + $0x20] sm:$0xff] }
 0x34a   : > { %2304 = vst.msk [vmem:[#allocation3 + $0x2c] sm:$0xf] %vm2292_vm12, %v2219_v3  ;;  %v2233_v29 = vpop.permute.xlu2 %2232 }
 0x34b   : > { %2311 = vst.msk [vmem:[#allocation3 + $0x48] sm:$0xf] %vm2292_vm12, %v2233_v29 }
 0x34d   : > { %v2229_v62 = vpop.permute.xlu0 %2228  ;;  %v5306_v18 = vld [vmem:[#allocation3 + $0x30] sm:$0xff] }
 0x34e   : > { %2309 = vst.msk [vmem:[#allocation3 + $0x40] sm:$0xf] %vm2292_vm12, %v2229_v62  ;;  %5186 = vmatmul.msk.bf16.gmra.mxu0 %vm2477_vm13, %v5302_v43 }
 0x351   : > { %v2225_v16 = vpop.permute.xlu1 %2224  ;;  %v5305_v50 = vld [vmem:[#allocation3 + $0x28] sm:$0xff] }
 0x352   : > { %2307 = vst.msk [vmem:[#allocation3 + $0x38] sm:$0xf] %vm2292_vm12, %v2225_v16  ;;  %v2239_v17 = vpop.permute.xlu2 %2238 }
 0x353   : > { %2314 = vst.msk [vmem:[#allocation3 + $0x54] sm:$0xf] %vm2292_vm12, %v2239_v17 }
 0x355   : > { %v2235_v28 = vpop.permute.xlu0 %2234 }
 0x356   : > { %2312 = vst.msk [vmem:[#allocation3 + $0x4c] sm:$0xf] %vm2292_vm12, %v2235_v28 }
 0x359   : > { %v2231_v51 = vpop.permute.xlu1 %2230  ;;  %v5307_v12 = vld [vmem:[#allocation3 + $0x38] sm:$0xff] }
 0x35a   : > { %2310 = vst.msk [vmem:[#allocation3 + $0x44] sm:$0xf] %vm2292_vm12, %v2231_v51  ;;  %v2245_v48 = vpop.permute.xlu2 %2244 }
 0x35b   : > { %2317 = vst.msk [vmem:[#allocation3 + $0x60] sm:$0xf] %vm2292_vm12, %v2245_v48 }
 0x35d   : > { %v2241_v24 = vpop.permute.xlu0 %2240  ;;  %v5309_v25 = vld [vmem:[#allocation3 + $0x48] sm:$0xff] }
 0x35e   : > { %5187 = vmatmul.msk.bf16.gmra.mxu0 %vm2477_vm13, %v5303_v33  ;;  %2315 = vst.msk [vmem:[#allocation3 + $0x58] sm:$0xf] %vm2292_vm12, %v2241_v24 }
 0x361   : > { %v5308_v30 = vld [vmem:[#allocation3 + $0x40] sm:$0xff]  ;;  %v2237_v8 = vpop.permute.xlu1 %2236 }
 0x362   : > { %2313 = vst.msk [vmem:[#allocation3 + $0x50] sm:$0xf] %vm2292_vm12, %v2237_v8  ;;  %5192 = vmatmul.msk.bf16.vlgmr.msra.gmra.mxu2 %vm2477_vm13, %v5308_v30  ;;  %v2251_v14 = vpop.permute.xlu2 %2250 }
 0x363   : > { %2320 = vst.msk [vmem:[#allocation3 + $0x6c] sm:$0xf] %vm2292_vm12, %v2251_v14 }
 0x365   : > { %v2247_v4 = vpop.permute.xlu0 %2246 }
 0x366   : > { %2318 = vst.msk [vmem:[#allocation3 + $0x64] sm:$0xf] %vm2292_vm12, %v2247_v4 }
 0x369   : > { %v2243_v35 = vpop.permute.xlu1 %2242  ;;  %v5310_v36 = vld [vmem:[#allocation3 + $0x50] sm:$0xff] }
 0x36a   : > { %2316 = vst.msk [vmem:[#allocation3 + $0x5c] sm:$0xf] %vm2292_vm12, %v2243_v35 }
 0x36d   : > { %v2253_v6 = vpop.permute.xlu0 %2252  ;;  %v5312_v23 = vld [vmem:[#allocation3 + $0x60] sm:$0xff] }
 0x36e   : > { %5188 = vmatmul.msk.bf16.gmra.mxu0 %vm2477_vm13, %v5304_v41  ;;  %2321 = vst.msk [vmem:[#allocation3 + $0x70] sm:$0xf] %vm2292_vm12, %v2253_v6 }
 0x371   : > { %v2249_v60 = vpop.permute.xlu1 %2248  ;;  %v5311_v58 = vld [vmem:[#allocation3 + $0x58] sm:$0xff] }
 0x372   : > { %5193 = vmatmul.msk.bf16.gmra.mxu2 %vm2477_vm13, %v5309_v25  ;;  %2319 = vst.msk [vmem:[#allocation3 + $0x68] sm:$0xf] %vm2292_vm12, %v2249_v60 }
 0x379   : > { %v2255_v49 = vpop.permute.xlu1 %2254  ;;  %v5313_v53 = vld [vmem:[#allocation3 + $0x68] sm:$0xff] }
 0x37a   : > { %2322 = vst.msk [vmem:[#allocation3 + $0x74] sm:$0xf] %vm2292_vm12, %v2255_v49 }
 0x37e   : > { %5189 = vmatmul.msk.bf16.gmra.mxu0 %vm2477_vm13, %v5305_v50 }
 0x381   : > { %v5314_v59 = vld [vmem:[#allocation3 + $0x70] sm:$0xff] }
 0x382   : > { %5194 = vmatmul.msk.bf16.gmra.mxu2 %vm2477_vm13, %v5310_v36 }
 0x38e   : > { %5190 = vmatmul.msk.bf16.gmra.mxu0 %vm2477_vm13, %v5306_v18 }
 0x392   : > { %5195 = vmatmul.msk.bf16.gmra.mxu2 %vm2477_vm13, %v5311_v58 }
 0x39e   : > { %5191 = vmatmul.msk.bf16.gmra.mxu0 %vm2477_vm13, %v5307_v12 }
 0x3a2   : > { %5196 = vmatmul.msk.bf16.gmra.mxu2 %vm2477_vm13, %v5312_v23 }
 0x3ab   : > { %v2539_v47 = vpop.f32.mrf.mxu0 }
 0x3ac   : > { %v2540_v21 = vadd.f32 %v6624_v19, %v2539_v47 }
 0x3ae   : > { %vm2619_vm14 = vcmp.gt.f32.partialorder %v2540_v21, 0.0  ;;  %v2655_v42 = vmul.f32 %v6629_v20, %v2540_v21 }
 0x3b0   : > { %v2687_v61 = vsel %vm2619_vm14, %v2540_v21, %v2655_v42 }
 0x3b1   : > { %2763 = vst.msk [vmem:[#allocation4 + $0x19] sm:$0xff] %vm348_vm0, %v2687_v61 }
 0x3b2   : > { %5197 = vmatmul.msk.bf16.gmra.mxu2 %vm2477_vm13, %v5313_v53 }
 0x3b3   : > { %v2541_v63 = vpop.f32.mrf.mxu0 }
 0x3b4   : > { %v2542_v10 = vadd.f32 %v6624_v19, %v2541_v63 }
 0x3b6   : > { %vm2620_vm15 = vcmp.gt.f32.partialorder %v2542_v10, 0.0  ;;  %v2656_v37 = vmul.f32 %v6629_v20, %v2542_v10 }
 0x3b8   : > { %v2688_v1 = vsel %vm2620_vm15, %v2542_v10, %v2656_v37  ;;  %v2893_v38 = vld [vmem:[#allocation4 + $0x19] sm:$0xff] }
 0x3b9   : > { %v2797_v26 = vld [vmem:[#allocation4 + $0x18] sm:$0xff]  ;;  %2764 = vst.msk [vmem:[#allocation4 + $0x21] sm:$0xff] %vm348_vm0, %v2688_v1  ;;  %v2925_v55 = vpack.c.bf16 %v2893_v38, %v2893_v38 }
 0x3ba   : > { %v6638_v57 = vpack.c.bf16 %v2797_v26, %v2797_v26 }
 0x3bb   : > { %2991 = vrot.lane.b32.xlu0 %v2925_v55, %s5415_s26  ;;  %v2544_v31 = vpop.f32.mrf.mxu0 }
 0x3bc   : > { %2861 = vst.msk [vmem:[#allocation5 + $0x8] sm:$0xf] %vm491_vm3, %v6638_v57  ;;  %v2545_v52 = vadd.f32 %v6624_v19, %v2544_v31 }
 0x3be   : > { %vm2621_vm1 = vcmp.gt.f32.partialorder %v2545_v52, 0.0  ;;  %v2657_v39 = vmul.f32 %v6629_v20, %v2545_v52 }
 0x3c0   : > { %v2689_v7 = vsel %vm2621_vm1, %v2545_v52, %v2657_v39  ;;  %v2894_v34 = vld [vmem:[#allocation4 + $0x21] sm:$0xff] }
 0x3c1   : > { %v2798_v40 = vld [vmem:[#allocation4 + $0x20] sm:$0xff]  ;;  %2765 = vst.msk [vmem:[#allocation4 + $0x31] sm:$0xff] %vm348_vm0, %v2689_v7  ;;  %v2926_v2 = vpack.c.bf16 %v2894_v34, %v2894_v34 }
 0x3c2   : > { %v6646_v56 = vpack.c.bf16 %v2798_v40, %v2798_v40  ;;  %5198 = vmatmul.msk.bf16.gmra.mxu2 %vm2477_vm13, %v5314_v59 }
 0x3c3   : > { %2993 = vrot.lane.b32.xlu1 %v2926_v2, %s5415_s26  ;;  %v2546_v5 = vpop.f32.mrf.mxu0 }
 0x3c4   : > { %2862 = vst.msk [vmem:[#allocation5 + $0xc] sm:$0xf] %vm491_vm3, %v6646_v56  ;;  %v2547_v46 = vadd.f32 %v6624_v19, %v2546_v5 }
 0x3c6   : > { %vm2622_vm2 = vcmp.gt.f32.partialorder %v2547_v46, 0.0  ;;  %v2658_v27 = vmul.f32 %v6629_v20, %v2547_v46 }
 0x3c8   : > { %v2690_v9 = vsel %vm2622_vm2, %v2547_v46, %v2658_v27  ;;  %v2895_v13 = vld [vmem:[#allocation4 + $0x31] sm:$0xff] }
 0x3c9   : > { %v2799_v3 = vld [vmem:[#allocation4 + $0x30] sm:$0xff]  ;;  %2766 = vst.msk [vmem:[#allocation4 + $0x39] sm:$0xff] %vm348_vm0, %v2690_v9  ;;  %v2927_v29 = vpack.c.bf16 %v2895_v13, %v2895_v13 }
 0x3ca   : > { %v6655_v43 = vpack.c.bf16 %v2799_v3, %v2799_v3 }
 0x3cb   : > { %v2549_v62 = vpop.f32.mrf.mxu0  ;;  %2995 = vrot.lane.b32.xlu2 %v2927_v29, %s5415_s26 }
 0x3cc   : > { %2863 = vst.msk [vmem:[#allocation5 + $0x10] sm:$0xf] %vm491_vm3, %v6655_v43  ;;  %v2550_v16 = vadd.f32 %v6624_v19, %v2549_v62 }
 0x3ce   : > { %vm2623_vm14 = vcmp.gt.f32.partialorder %v2550_v16, 0.0  ;;  %v2659_v28 = vmul.f32 %v6629_v20, %v2550_v16 }
 0x3d0   : > { %v2691_v17 = vsel %vm2623_vm14, %v2550_v16, %v2659_v28  ;;  %v2896_v51 = vld [vmem:[#allocation4 + $0x39] sm:$0xff]  ;;  %v2257_v16 = vpop.permute.xlu2 %2256 }
 0x3d1   : > { %v2800_v33 = vld [vmem:[#allocation4 + $0x38] sm:$0xff]  ;;  %2767 = vst.msk [vmem:[#allocation4 + $0x49] sm:$0xff] %vm348_vm0, %v2691_v17  ;;  %v2928_v30 = vpack.c.bf16 %v2896_v51, %v2896_v51 }
 0x3d2   : > { %v6663_v8 = vpack.c.bf16 %v2800_v33, %v2800_v33  ;;  %2323 = vst.msk [vmem:[#allocation3 + $0x78] sm:$0xf] %vm2292_vm12, %v2257_v16 }
 0x3d3   : > { %v2551_v24 = vpop.f32.mrf.mxu0  ;;  %2997 = vrot.lane.b32.xlu0 %v2928_v30, %s5415_s26 }
 0x3d4   : > { %2864 = vst.msk [vmem:[#allocation5 + $0x14] sm:$0xf] %vm491_vm3, %v6663_v8  ;;  %v2552_v35 = vadd.f32 %v6624_v19, %v2551_v24 }
 0x3d6   : > { %vm2624_vm15 = vcmp.gt.f32.partialorder %v2552_v35, 0.0  ;;  %v2660_v41 = vmul.f32 %v6629_v20, %v2552_v35 }
 0x3d8   : > { %v2692_v25 = vsel %vm2624_vm15, %v2552_v35, %v2660_v41  ;;  %v2897_v4 = vld [vmem:[#allocation4 + $0x49] sm:$0xff] }
 0x3d9   : > { %v2801_v48 = vld [vmem:[#allocation4 + $0x48] sm:$0xff]  ;;  %2768 = vst.msk [vmem:[#allocation4 + $0x51] sm:$0xff] %vm348_vm0, %v2692_v25  ;;  %v2929_v50 = vpack.c.bf16 %v2897_v4, %v2897_v4 }
 0x3da   : > { %v6671_v36 = vpack.c.bf16 %v2801_v48, %v2801_v48 }
 0x3db   : > { %v2554_v14 = vpop.f32.mrf.mxu0  ;;  %2999 = vrot.lane.b32.xlu1 %v2929_v50, %s5415_s26 }
 0x3dc   : > { %2865 = vst.msk [vmem:[#allocation5 + $0x18] sm:$0xf] %vm491_vm3, %v6671_v36  ;;  %v2555_v60 = vadd.f32 %v6624_v19, %v2554_v14 }
 0x3de   : > { %vm2625_vm1 = vcmp.gt.f32.partialorder %v2555_v60, 0.0  ;;  %v2661_v18 = vmul.f32 %v6629_v20, %v2555_v60 }
 0x3e0   : > { %v2693_v58 = vsel %vm2625_vm1, %v2555_v60, %v2661_v18  ;;  %v2898_v0 = vld [vmem:[#allocation4 + $0x51] sm:$0xff] }
 0x3e1   : > { %v2802_v22 = vld [vmem:[#allocation4 + $0x50] sm:$0xff]  ;;  %2769 = vst.msk [vmem:[#allocation4 + $0x61] sm:$0xff] %vm348_vm0, %v2693_v58  ;;  %v2930_v6 = vpack.c.bf16 %v2898_v0, %v2898_v0 }
 0x3e2   : > { %v6679_v49 = vpack.c.bf16 %v2802_v22, %v2802_v22 }
 0x3e3   : > { %v2556_v11 = vpop.f32.mrf.mxu0  ;;  %3001 = vrot.lane.b32.xlu2 %v2930_v6, %s5415_s26  ;;  %v2796_v6 = vld [vmem:[#allocation4 + $0x8] sm:$0xff] }
 0x3e4   : > { %2866 = vst.msk [vmem:[#allocation5 + $0x1c] sm:$0xf] %vm491_vm3, %v6679_v49  ;;  %v2557_v32 = vadd.f32 %v6624_v19, %v2556_v11 }
 0x3e5   : > { %v2579_v44 = vpop.f32.mrf.mxu2 }
 0x3e6   : > { %v2580_v54 = vadd.f32 %v6624_v19, %v2579_v44  ;;  %vm2626_vm2 = vcmp.gt.f32.partialorder %v2557_v32, 0.0  ;;  %v2662_v12 = vmul.f32 %v6629_v20, %v2557_v32  ;;  %v2828_v44 = vpack.c.bf16 %v2796_v6, %v2796_v6 }
 0x3e8   : > { %vm2635_vm14 = vcmp.gt.f32.partialorder %v2580_v54, 0.0  ;;  %v2671_v23 = vmul.f32 %v6629_v20, %v2580_v54  ;;  %v2694_v15 = vsel %vm2626_vm2, %v2557_v32, %v2662_v12  ;;  %v2899_v45 = vld [vmem:[#allocation4 + $0x61] sm:$0xff]  ;;  %2860 = vst.msk [vmem:[#allocation5 + $0x4] sm:$0xf] %vm491_vm3, %v2828_v44 }
 0x3e9   : > { %v2803_v47 = vld [vmem:[#allocation4 + $0x60] sm:$0xff]  ;;  %2770 = vst.msk [vmem:[#allocation4 + $0x69] sm:$0xff] %vm348_vm0, %v2694_v15  ;;  %v2931_v21 = vpack.c.bf16 %v2899_v45, %v2899_v45  ;;  %v2990_v15 = vpop.permute.xlu2 %2989 }
 0x3ea   : > { %v6689_v42 = vpack.c.bf16 %v2803_v47, %v2803_v47  ;;  %v2703_v53 = vsel %vm2635_vm14, %v2580_v54, %v2671_v23  ;;  %3084 = vst.msk [vmem:[#allocation5 + $0x4] sm:$0xf] %vm716_vm4, %v2990_v15 }
 0x3eb   : > { %2779 = vst.msk [vmem:[#allocation4 + $0xd9] sm:$0xff] %vm348_vm0, %v2703_v53  ;;  %v2559_v61 = vpop.f32.mrf.mxu0  ;;  %3003 = vrot.lane.b32.xlu0 %v2931_v21, %s5415_s26 }
 0x3ec   : > { %v2560_v63 = vadd.f32 %v6624_v19, %v2559_v61  ;;  %2867 = vst.msk [vmem:[#allocation5 + $0x20] sm:$0xf] %vm491_vm3, %v6689_v42 }
 0x3ed   : > { %v2581_v10 = vpop.f32.mrf.mxu2 }
 0x3ee   : > { %v2582_v37 = vadd.f32 %v6624_v19, %v2581_v10  ;;  %vm2627_vm15 = vcmp.gt.f32.partialorder %v2560_v63, 0.0  ;;  %v2663_v1 = vmul.f32 %v6629_v20, %v2560_v63 }
 0x3f0   : > { %vm2636_vm1 = vcmp.gt.f32.partialorder %v2582_v37, 0.0  ;;  %v2672_v38 = vmul.f32 %v6629_v20, %v2582_v37  ;;  %v2695_v26 = vsel %vm2627_vm15, %v2560_v63, %v2663_v1  ;;  %v2900_v55 = vld [vmem:[#allocation4 + $0x69] sm:$0xff]  ;;  %v2259_v63 = vpop.permute.xlu0 %2258 }
 0x3f1   : > { %v2804_v31 = vld [vmem:[#allocation4 + $0x68] sm:$0xff]  ;;  %2771 = vst.msk [vmem:[#allocation4 + $0x79] sm:$0xff] %vm348_vm0, %v2695_v26  ;;  %v2932_v52 = vpack.c.bf16 %v2900_v55, %v2900_v55 }
 0x3f2   : > { %v6700_v39 = vpack.c.bf16 %v2804_v31, %v2804_v31  ;;  %v2704_v59 = vsel %vm2636_vm1, %v2582_v37, %v2672_v38  ;;  %v2813_v7 = vld [vmem:[#allocation4 + $0xd8] sm:$0xff]  ;;  %2324 = vst.msk [vmem:[#allocation3 + $0x7c] sm:$0xf] %vm2292_vm12, %v2259_v63 }
 0x3f3   : > { %2780 = vst.msk [vmem:[#allocation4 + $0xe1] sm:$0xff] %vm348_vm0, %v2704_v59  ;;  %v2561_v34 = vpop.f32.mrf.mxu0  ;;  %3005 = vrot.lane.b32.xlu1 %v2932_v52, %s5415_s26  ;;  %v6704_v40 = vpack.c.bf16 %v2813_v7, %v2813_v7 }
 0x3f4   : > { %v2562_v2 = vadd.f32 %v6624_v19, %v2561_v34  ;;  %2868 = vst.msk [vmem:[#allocation5 + $0x24] sm:$0xf] %vm491_vm3, %v6700_v39 }
 0x3f5   : > { %v2584_v5 = vpop.f32.mrf.mxu2  ;;  %2877 = vst.msk [vmem:[#allocation5 + $0x48] sm:$0xf] %vm491_vm3, %v6704_v40 }
 0x3f6   : > { %v2585_v46 = vadd.f32 %v6624_v19, %v2584_v5  ;;  %vm2628_vm2 = vcmp.gt.f32.partialorder %v2562_v2, 0.0  ;;  %v2664_v27 = vmul.f32 %v6629_v20, %v2562_v2 }
 0x3f8   : > { %vm2637_vm14 = vcmp.gt.f32.partialorder %v2585_v46, 0.0  ;;  %v2673_v9 = vmul.f32 %v6629_v20, %v2585_v46  ;;  %v2696_v13 = vsel %vm2628_vm2, %v2562_v2, %v2664_v27  ;;  %v2901_v3 = vld [vmem:[#allocation4 + $0x79] sm:$0xff] }
 0x3f9   : > { %v2805_v29 = vld [vmem:[#allocation4 + $0x78] sm:$0xff]  ;;  %2772 = vst.msk [vmem:[#allocation4 + $0x81] sm:$0xff] %vm348_vm0, %v2696_v13  ;;  %v2933_v62 = vpack.c.bf16 %v2901_v3, %v2901_v3 }
 0x3fa   : > { %v6715_v28 = vpack.c.bf16 %v2805_v29, %v2805_v29  ;;  %v2705_v17 = vsel %vm2637_vm14, %v2585_v46, %v2673_v9  ;;  %v2814_v33 = vld [vmem:[#allocation4 + $0xe0] sm:$0xff] }
 0x3fb   : > { %2781 = vst.msk [vmem:[#allocation4 + $0xf1] sm:$0xff] %vm348_vm0, %v2705_v17  ;;  %v2564_v51 = vpop.f32.mrf.mxu0  ;;  %3007 = vrot.lane.b32.xlu2 %v2933_v62, %s5415_s26  ;;  %v6723_v24 = vpack.c.bf16 %v2814_v33, %v2814_v33  ;;  %v2795_v29 = vld [vmem:[#allocation4] sm:$0xff] }
 0x3fc   : > { %v2565_v30 = vadd.f32 %v6624_v19, %v2564_v51  ;;  %2869 = vst.msk [vmem:[#allocation5 + $0x28] sm:$0xf] %vm491_vm3, %v6715_v28  ;;  %v2827_v17 = vpack.c.bf16 %v2795_v29, %v2795_v29 }
 0x3fd   : > { %v2586_v35 = vpop.f32.mrf.mxu2  ;;  %2878 = vst.msk [vmem:[#allocation5 + $0x4c] sm:$0xf] %vm491_vm3, %v6723_v24 }
 0x3fe   : > { %v2587_v41 = vadd.f32 %v6624_v19, %v2586_v35  ;;  %vm2629_vm15 = vcmp.gt.f32.partialorder %v2565_v30, 0.0  ;;  %v2665_v25 = vmul.f32 %v6629_v20, %v2565_v30  ;;  %2859 = vst.msk [vmem:[#allocation5] sm:$0xf] %vm491_vm3, %v2827_v17  ;;  %v2988_v35 = vpop.permute.xlu1 %2987 }
 0x3ff   : > { %3083 = vst.msk [vmem:[#allocation5] sm:$0xf] %vm716_vm4, %v2988_v35  ;;  %v2910_v35 = vld [vmem:[#allocation4 + $0xe1] sm:$0xff] }
 0x400   : > { %vm2638_vm1 = vcmp.gt.f32.partialorder %v2587_v41, 0.0  ;;  %v2674_v4 = vmul.f32 %v6629_v20, %v2587_v41  ;;  %v2697_v48 = vsel %vm2629_vm15, %v2565_v30, %v2665_v25  ;;  %v2902_v50 = vld [vmem:[#allocation4 + $0x81] sm:$0xff] }
 0x401   : > { %v2806_v14 = vld [vmem:[#allocation4 + $0x80] sm:$0xff]  ;;  %2773 = vst.msk [vmem:[#allocation4 + $0x91] sm:$0xff] %vm348_vm0, %v2697_v48  ;;  %v2934_v60 = vpack.c.bf16 %v2902_v50, %v2902_v50 }
 0x402   : > { %v6731_v18 = vpack.c.bf16 %v2806_v14, %v2806_v14  ;;  %v2706_v58 = vsel %vm2638_vm1, %v2587_v41, %v2674_v4  ;;  %v2815_v0 = vld [vmem:[#allocation4 + $0xf0] sm:$0xff] }
 0x403   : > { %2782 = vst.msk [vmem:[#allocation4 + $0xf9] sm:$0xff] %vm348_vm0, %v2706_v58  ;;  %v2566_v22 = vpop.f32.mrf.mxu0  ;;  %3009 = vrot.lane.b32.xlu0 %v2934_v60, %s5415_s26  ;;  %v6735_v11 = vpack.c.bf16 %v2815_v0, %v2815_v0 }
 0x404   : > { %v2567_v32 = vadd.f32 %v6624_v19, %v2566_v22  ;;  %2870 = vst.msk [vmem:[#allocation5 + $0x2c] sm:$0xf] %vm491_vm3, %v6731_v18 }
 0x405   : > { %v2589_v54 = vpop.f32.mrf.mxu2  ;;  %2879 = vst.msk [vmem:[#allocation5 + $0x50] sm:$0xf] %vm491_vm3, %v6735_v11 }
 0x406   : > { %v2590_v12 = vadd.f32 %v6624_v19, %v2589_v54  ;;  %vm2630_vm2 = vcmp.gt.f32.partialorder %v2567_v32, 0.0  ;;  %v2666_v23 = vmul.f32 %v6629_v20, %v2567_v32 }
 0x408   : > { %vm2639_vm14 = vcmp.gt.f32.partialorder %v2590_v12, 0.0  ;;  %v2675_v45 = vmul.f32 %v6629_v20, %v2590_v12  ;;  %v2698_v47 = vsel %vm2630_vm2, %v2567_v32, %v2666_v23  ;;  %v2903_v21 = vld [vmem:[#allocation4 + $0x91] sm:$0xff] }
 0x409   : > { %v2807_v53 = vld [vmem:[#allocation4 + $0x90] sm:$0xff]  ;;  %2774 = vst.msk [vmem:[#allocation4 + $0x99] sm:$0xff] %vm348_vm0, %v2698_v47  ;;  %v2935_v61 = vpack.c.bf16 %v2903_v21, %v2903_v21 }
 0x40a   : > { %v6748_v10 = vpack.c.bf16 %v2807_v53, %v2807_v53  ;;  %v2707_v37 = vsel %vm2639_vm14, %v2590_v12, %v2675_v45  ;;  %v2816_v38 = vld [vmem:[#allocation4 + $0xf8] sm:$0xff] }
 0x40b   : > { %2783 = vst.msk [vmem:[#allocation4 + $0x109] sm:$0xff] %vm348_vm0, %v2707_v37  ;;  %v2569_v1 = vpop.f32.mrf.mxu0  ;;  %3011 = vrot.lane.b32.xlu1 %v2935_v61, %s5415_s26  ;;  %v6756_v55 = vpack.c.bf16 %v2816_v38, %v2816_v38 }
 0x40c   : > { %v2570_v26 = vadd.f32 %v6624_v19, %v2569_v1  ;;  %2871 = vst.msk [vmem:[#allocation5 + $0x30] sm:$0xf] %vm491_vm3, %v6748_v10 }
 0x40d   : > { %v2591_v31 = vpop.f32.mrf.mxu2  ;;  %2880 = vst.msk [vmem:[#allocation5 + $0x54] sm:$0xf] %vm491_vm3, %v6756_v55 }
 0x40e   : > { %v2592_v52 = vadd.f32 %v6624_v19, %v2591_v31  ;;  %vm2631_vm15 = vcmp.gt.f32.partialorder %v2570_v26, 0.0  ;;  %v2667_v59 = vmul.f32 %v6629_v20, %v2570_v26 }
 0x410   : > { %vm2640_vm1 = vcmp.gt.f32.partialorder %v2592_v52, 0.0  ;;  %v2676_v7 = vmul.f32 %v6629_v20, %v2592_v52  ;;  %v2699_v34 = vsel %vm2631_vm15, %v2570_v26, %v2667_v59  ;;  %v2904_v2 = vld [vmem:[#allocation4 + $0x99] sm:$0xff] }
 0x411   : > { %v2808_v5 = vld [vmem:[#allocation4 + $0x98] sm:$0xff]  ;;  %2775 = vst.msk [vmem:[#allocation4 + $0xa9] sm:$0xff] %vm348_vm0, %v2699_v34  ;;  %v2936_v46 = vpack.c.bf16 %v2904_v2, %v2904_v2 }
 0x412   : > { %v6764_v27 = vpack.c.bf16 %v2808_v5, %v2808_v5  ;;  %v2708_v9 = vsel %vm2640_vm1, %v2592_v52, %v2676_v7  ;;  %v2817_v13 = vld [vmem:[#allocation4 + $0x108] sm:$0xff]  ;;  %v2909_v59 = vld [vmem:[#allocation4 + $0xd9] sm:$0xff] }
 0x413   : > { %2784 = vst.msk [vmem:[#allocation4 + $0x111] sm:$0xff] %vm348_vm0, %v2708_v9  ;;  %v2571_v3 = vpop.f32.mrf.mxu0  ;;  %3013 = vrot.lane.b32.xlu2 %v2936_v46, %s5415_s26  ;;  %v6768_v62 = vpack.c.bf16 %v2817_v13, %v2817_v13  ;;  %v2941_v46 = vpack.c.bf16 %v2909_v59, %v2909_v59 }
 0x414   : > { %v2572_v16 = vadd.f32 %v6624_v19, %v2571_v3  ;;  %2872 = vst.msk [vmem:[#allocation5 + $0x34] sm:$0xf] %vm491_vm3, %v6764_v27 }
 0x415   : > { %v2594_v51 = vpop.f32.mrf.mxu2  ;;  %2881 = vst.msk [vmem:[#allocation5 + $0x58] sm:$0xf] %vm491_vm3, %v6768_v62 }
 0x416   : > { %v2595_v33 = vadd.f32 %v6624_v19, %v2594_v51  ;;  %vm2632_vm2 = vcmp.gt.f32.partialorder %v2572_v16, 0.0  ;;  %v2668_v30 = vmul.f32 %v6629_v20, %v2572_v16 }
 0x418   : > { %vm2641_vm14 = vcmp.gt.f32.partialorder %v2595_v33, 0.0  ;;  %v2677_v41 = vmul.f32 %v6629_v20, %v2595_v33  ;;  %v2700_v25 = vsel %vm2632_vm2, %v2572_v16, %v2668_v30  ;;  %v2905_v4 = vld [vmem:[#allocation4 + $0xa9] sm:$0xff]  ;;  %v2912_v30 = vld [vmem:[#allocation4 + $0xf9] sm:$0xff] }
 0x419   : > { %v2809_v48 = vld [vmem:[#allocation4 + $0xa8] sm:$0xff]  ;;  %2776 = vst.msk [vmem:[#allocation4 + $0xb1] sm:$0xff] %vm348_vm0, %v2700_v25  ;;  %v2937_v50 = vpack.c.bf16 %v2905_v4, %v2905_v4  ;;  %v2944_v4 = vpack.c.bf16 %v2912_v30, %v2912_v30 }
 0x41a   : > { %v6781_v14 = vpack.c.bf16 %v2809_v48, %v2809_v48  ;;  %v2709_v60 = vsel %vm2641_vm14, %v2595_v33, %v2677_v41  ;;  %v2818_v0 = vld [vmem:[#allocation4 + $0x110] sm:$0xff] }
 0x41b   : > { %2785 = vst.msk [vmem:[#allocation4 + $0x121] sm:$0xff] %vm348_vm0, %v2709_v60  ;;  %v2574_v58 = vpop.f32.mrf.mxu0  ;;  %3015 = vrot.lane.b32.xlu0 %v2937_v50, %s5415_s26  ;;  %v6788_v6 = vpack.c.bf16 %v2818_v0, %v2818_v0 }
 0x41c   : > { %v2575_v22 = vadd.f32 %v6624_v19, %v2574_v58  ;;  %2873 = vst.msk [vmem:[#allocation5 + $0x38] sm:$0xf] %vm491_vm3, %v6781_v14  ;;  %v2942_v58 = vpack.c.bf16 %v2910_v35, %v2910_v35 }
 0x41d   : > { %v2596_v32 = vpop.f32.mrf.mxu2  ;;  %2882 = vst.msk [vmem:[#allocation5 + $0x5c] sm:$0xf] %vm491_vm3, %v6788_v6 }
 0x41e   : > { %v2597_v44 = vadd.f32 %v6624_v19, %v2596_v32  ;;  %vm2633_vm15 = vcmp.gt.f32.partialorder %v2575_v22, 0.0  ;;  %v2669_v54 = vmul.f32 %v6629_v20, %v2575_v22 }
 0x420   : > { %vm2642_vm1 = vcmp.gt.f32.partialorder %v2597_v44, 0.0  ;;  %v2678_v12 = vmul.f32 %v6629_v20, %v2597_v44  ;;  %v2701_v23 = vsel %vm2633_vm15, %v2575_v22, %v2669_v54  ;;  %v2906_v15 = vld [vmem:[#allocation4 + $0xb1] sm:$0xff] }
 0x421   : > { %2777 = vst.msk [vmem:[#allocation4 + $0xc1] sm:$0xff] %vm348_vm0, %v2701_v23  ;;  %v2938_v45 = vpack.c.bf16 %v2906_v15, %v2906_v15  ;;  %v2810_v47 = vld [vmem:[#allocation4 + $0xb0] sm:$0xff] }
 0x422   : > { %v2710_v21 = vsel %vm2642_vm1, %v2597_v44, %v2678_v12  ;;  %v6796_v53 = vpack.c.bf16 %v2810_v47, %v2810_v47  ;;  %v2819_v61 = vld [vmem:[#allocation4 + $0x120] sm:$0xff]  ;;  %v2911_v15 = vld [vmem:[#allocation4 + $0xf1] sm:$0xff] }
 0x423   : > { %2786 = vst.msk [vmem:[#allocation4 + $0x129] sm:$0xff] %vm348_vm0, %v2710_v21  ;;  %v2576_v63 = vpop.f32.mrf.mxu0  ;;  %3017 = vrot.lane.b32.xlu1 %v2938_v45, %s5415_s26  ;;  %v6800_v37 = vpack.c.bf16 %v2819_v61, %v2819_v61  ;;  %v2915_v23 = vld [vmem:[#allocation4 + $0x121] sm:$0xff]  ;;  %v2913_v45 = vld [vmem:[#allocation4 + $0x109] sm:$0xff]  ;;  %v2943_v61 = vpack.c.bf16 %v2911_v15, %v2911_v15 }
 0x424   : > { %v2577_v1 = vadd.f32 %v6624_v19, %v2576_v63  ;;  %2874 = vst.msk [vmem:[#allocation5 + $0x3c] sm:$0xf] %vm491_vm3, %v6796_v53  ;;  %v2947_v21 = vpack.c.bf16 %v2915_v23, %v2915_v23 }
 0x425   : > { %v2599_v38 = vpop.f32.mrf.mxu2  ;;  %v2996_v26 = vpop.permute.xlu2 %2995  ;;  %2883 = vst.msk [vmem:[#allocation5 + $0x60] sm:$0xf] %vm491_vm3, %v6800_v37 }
 0x426   : > { %v2600_v31 = vadd.f32 %v6624_v19, %v2599_v38  ;;  %vm2634_vm2 = vcmp.gt.f32.partialorder %v2577_v1, 0.0  ;;  %v2670_v52 = vmul.f32 %v6629_v20, %v2577_v1  ;;  %3087 = vst.msk [vmem:[#allocation5 + $0x10] sm:$0xf] %vm716_vm4, %v2996_v26 }
 0x428   : > { %vm2643_vm14 = vcmp.gt.f32.partialorder %v2600_v31, 0.0  ;;  %v2679_v7 = vmul.f32 %v6629_v20, %v2600_v31  ;;  %v2702_v34 = vsel %vm2634_vm2, %v2577_v1, %v2670_v52  ;;  %v2907_v2 = vld [vmem:[#allocation4 + $0xc1] sm:$0xff]  ;;  %v2945_v1 = vpack.c.bf16 %v2913_v45, %v2913_v45 }
 0x429   : > { %v2811_v5 = vld [vmem:[#allocation4 + $0xc0] sm:$0xff]  ;;  %2778 = vst.msk [vmem:[#allocation4 + $0xc9] sm:$0xff] %vm348_vm0, %v2702_v34  ;;  %v2939_v9 = vpack.c.bf16 %v2907_v2, %v2907_v2  ;;  %v2914_v34 = vld [vmem:[#allocation4 + $0x111] sm:$0xff] }
 0x42a   : > { %v6812_v13 = vpack.c.bf16 %v2811_v5, %v2811_v5  ;;  %v2711_v3 = vsel %vm2643_vm14, %v2600_v31, %v2679_v7  ;;  %v2820_v29 = vld [vmem:[#allocation4 + $0x128] sm:$0xff]  ;;  %v5315_v2 = vld [vmem:[#allocation3 + $0x78] sm:$0xff] }
 0x42b   : > { %2787 = vst.msk [vmem:[#allocation4 + $0x139] sm:$0xff] %vm348_vm0, %v2711_v3  ;;  %3023 = vrot.lane.b32.xlu1 %v2941_v46, %s5415_s26  ;;  %3019 = vrot.lane.b32.xlu2 %v2939_v9, %s5415_s26  ;;  %v6819_v16 = vpack.c.bf16 %v2820_v29, %v2820_v29  ;;  %v2916_v5 = vld [vmem:[#allocation4 + $0x129] sm:$0xff]  ;;  %v6853_v3 = vpack.c.bf16 %v2914_v34, %v2914_v34 }
 0x42c   : > { %2875 = vst.msk [vmem:[#allocation5 + $0x40] sm:$0xf] %vm491_vm3, %v6812_v13  ;;  %5199 = vmatmul.msk.bf16.gmra.mxu2 %vm2477_vm13, %v5315_v2 }
 0x42d   : > { %v2601_v17 = vpop.f32.mrf.mxu2  ;;  %v2992_v51 = vpop.permute.xlu0 %2991  ;;  %2884 = vst.msk [vmem:[#allocation5 + $0x64] sm:$0xf] %vm491_vm3, %v6819_v16 }
 0x42e   : > { %v2602_v33 = vadd.f32 %v6624_v19, %v2601_v17  ;;  %3085 = vst.msk [vmem:[#allocation5 + $0x8] sm:$0xf] %vm716_vm4, %v2992_v51  ;;  %v2948_v17 = vpack.c.bf16 %v2916_v5, %v2916_v5 }
 0x430   : > { %vm2644_vm15 = vcmp.gt.f32.partialorder %v2602_v33, 0.0  ;;  %v2680_v41 = vmul.f32 %v6629_v20, %v2602_v33  ;;  %v2908_v25 = vld [vmem:[#allocation4 + $0xc9] sm:$0xff] }
 0x431   : > { %v2940_v48 = vpack.c.bf16 %v2908_v25, %v2908_v25  ;;  %v2812_v50 = vld [vmem:[#allocation4 + $0xc8] sm:$0xff] }
 0x432   : > { %v2712_v60 = vsel %vm2644_vm15, %v2602_v33, %v2680_v41  ;;  %v6826_v0 = vpack.c.bf16 %v2812_v50, %v2812_v50  ;;  %v2821_v22 = vld [vmem:[#allocation4 + $0x138] sm:$0xff] }
 0x433   : > { %2788 = vst.msk [vmem:[#allocation4 + $0x141] sm:$0xff] %vm348_vm0, %v2712_v60  ;;  %3029 = vrot.lane.b32.xlu1 %v2944_v4, %s5415_s26  ;;  %3021 = vrot.lane.b32.xlu0 %v2940_v48, %s5415_s26  ;;  %v6831_v32 = vpack.c.bf16 %v2821_v22, %v2821_v22  ;;  %v2917_v25 = vld [vmem:[#allocation4 + $0x139] sm:$0xff] }
 0x434   : > { %3025 = vrot.lane.b32.xlu2 %v2942_v58, %s5415_s26  ;;  %2876 = vst.msk [vmem:[#allocation5 + $0x44] sm:$0xf] %vm491_vm3, %v6826_v0  ;;  %v6867_v50 = vpack.c.bf16 %v2917_v25, %v2917_v25  ;;  %v3121_v25 = vld [vmem:[#allocation4 + $0x4a] sm:$0xff] }
 0x435   : > { %v2604_v44 = vpop.f32.mrf.mxu2  ;;  %v2994_v54 = vpop.permute.xlu1 %2993  ;;  %2885 = vst.msk [vmem:[#allocation5 + $0x68] sm:$0xf] %vm491_vm3, %v6831_v32 }
 0x436   : > { %v2605_v12 = vadd.f32 %v6624_v19, %v2604_v44  ;;  %3086 = vst.msk [vmem:[#allocation5 + $0xc] sm:$0xf] %vm716_vm4, %v2994_v54 }
 0x438   : > { %vm2645_vm1 = vcmp.gt.f32.partialorder %v2605_v12, 0.0  ;;  %v2681_v47 = vmul.f32 %v6629_v20, %v2605_v12 }
 0x43a   : > { %v2713_v63 = vsel %vm2645_vm1, %v2605_v12, %v2681_v47  ;;  %v2822_v38 = vld [vmem:[#allocation4 + $0x140] sm:$0xff] }
 0x43b   : > { %2789 = vst.msk [vmem:[#allocation4 + $0x151] sm:$0xff] %vm348_vm0, %v2713_v63  ;;  %3035 = vrot.lane.b32.xlu1 %v2947_v21, %s5415_s26  ;;  %3027 = vrot.lane.b32.xlu0 %v2943_v61, %s5415_s26  ;;  %v6845_v26 = vpack.c.bf16 %v2822_v38, %v2822_v38  ;;  %v2918_v7 = vld [vmem:[#allocation4 + $0x141] sm:$0xff] }
 0x43c   : > { %3031 = vrot.lane.b32.xlu2 %v2945_v1, %s5415_s26  ;;  %v2950_v9 = vpack.c.bf16 %v2918_v7, %v2918_v7  ;;  %v3115_v38 = vld [vmem:[#allocation4 + $0x2] sm:$0xff] }
 0x43d   : > { %v2606_v31 = vpop.f32.mrf.mxu2  ;;  %v3002_v52 = vpop.permute.xlu2 %3001  ;;  %2886 = vst.msk [vmem:[#allocation5 + $0x6c] sm:$0xf] %vm491_vm3, %v6845_v26 }
 0x43e   : > { %v2607_v59 = vadd.f32 %v6624_v19, %v2606_v31  ;;  %3090 = vst.msk [vmem:[#allocation5 + $0x1c] sm:$0xf] %vm716_vm4, %v3002_v52  ;;  %v3147_v52 = vpack.c.bf16 %v3115_v38, %v3115_v38  ;;  %v3128_v38 = vld [vmem:[#allocation4 + $0x9a] sm:$0xff] }
 0x440   : > { %vm2646_vm2 = vcmp.gt.f32.partialorder %v2607_v59, 0.0  ;;  %v2682_v46 = vmul.f32 %v6629_v20, %v2607_v59 }
 0x442   : > { %v2714_v29 = vsel %vm2646_vm2, %v2607_v59, %v2682_v46  ;;  %v2823_v51 = vld [vmem:[#allocation4 + $0x150] sm:$0xff] }
 0x443   : > { %2790 = vst.msk [vmem:[#allocation4 + $0x159] sm:$0xff] %vm348_vm0, %v2714_v29  ;;  %3041 = vrot.lane.b32.xlu1 %v2950_v9, %s5415_s26  ;;  %3033 = vrot.lane.b32.xlu0 %v6853_v3, %s5415_s26  ;;  %v6859_v33 = vpack.c.bf16 %v2823_v51, %v2823_v51  ;;  %v2919_v4 = vld [vmem:[#allocation4 + $0x151] sm:$0xff]  ;;  %v3118_v9 = vld [vmem:[#allocation4 + $0x22] sm:$0xff] }
 0x444   : > { %3037 = vrot.lane.b32.xlu2 %v2948_v17, %s5415_s26  ;;  %v2951_v58 = vpack.c.bf16 %v2919_v4, %v2919_v4  ;;  %v3119_v29 = vld [vmem:[#allocation4 + $0x32] sm:$0xff]  ;;  %v3117_v17 = vld [vmem:[#allocation4 + $0x1a] sm:$0xff]  ;;  %v6899_v51 = vpack.c.bf16 %v3118_v9, %v3118_v9 }
 0x445   : > { %v2609_v30 = vpop.f32.mrf.mxu2  ;;  %v2998_v35 = vpop.permute.xlu0 %2997  ;;  %2887 = vst.msk [vmem:[#allocation5 + $0x70] sm:$0xf] %vm491_vm3, %v6859_v33  ;;  %v3122_v4 = vld [vmem:[#allocation4 + $0x52] sm:$0xff] }
 0x446   : > { %v2610_v41 = vadd.f32 %v6624_v19, %v2609_v30  ;;  %3088 = vst.msk [vmem:[#allocation5 + $0x14] sm:$0xf] %vm716_vm4, %v2998_v35  ;;  %v3151_v30 = vpack.c.bf16 %v3119_v29, %v3119_v29  ;;  %v3149_v35 = vpack.c.bf16 %v3117_v17, %v3117_v17 }
 0x448   : > { %vm2647_vm14 = vcmp.gt.f32.partialorder %v2610_v41, 0.0  ;;  %v2683_v48 = vmul.f32 %v6629_v20, %v2610_v41 }
 0x44a   : > { %v2715_v60 = vsel %vm2647_vm14, %v2610_v41, %v2683_v48  ;;  %v2824_v22 = vld [vmem:[#allocation4 + $0x158] sm:$0xff] }
 0x44b   : > { %2791 = vst.msk [vmem:[#allocation4 + $0x169] sm:$0xff] %vm348_vm0, %v2715_v60  ;;  %3039 = vrot.lane.b32.xlu0 %v6867_v50, %s5415_s26  ;;  %v6873_v44 = vpack.c.bf16 %v2824_v22, %v2824_v22  ;;  %v2920_v15 = vld [vmem:[#allocation4 + $0x159] sm:$0xff]  ;;  %v6906_v60 = vpack.c.bf16 %v3121_v25, %v3121_v25  ;;  %v3132_v25 = vld [vmem:[#allocation4 + $0xca] sm:$0xff] }
 0x44c   : > { %3043 = vrot.lane.b32.xlu2 %v2951_v58, %s5415_s26  ;;  %v6880_v47 = vpack.c.bf16 %v2920_v15, %v2920_v15  ;;  %v3120_v48 = vld [vmem:[#allocation4 + $0x3a] sm:$0xff]  ;;  %v3154_v58 = vpack.c.bf16 %v3122_v4, %v3122_v4  ;;  %v3123_v15 = vld [vmem:[#allocation4 + $0x62] sm:$0xff] }
 0x44d   : > { %v2611_v54 = vpop.f32.mrf.mxu2  ;;  %v3000_v12 = vpop.permute.xlu1 %2999  ;;  %2888 = vst.msk [vmem:[#allocation5 + $0x74] sm:$0xf] %vm491_vm3, %v6873_v44  ;;  %v3152_v22 = vpack.c.bf16 %v3120_v48, %v3120_v48 }
 0x44e   : > { %v2612_v23 = vadd.f32 %v6624_v19, %v2611_v54  ;;  %3089 = vst.msk [vmem:[#allocation5 + $0x18] sm:$0xf] %vm716_vm4, %v3000_v12  ;;  %v3124_v12 = vld [vmem:[#allocation4 + $0x6a] sm:$0xff] }
 0x450   : > { %vm2648_vm15 = vcmp.gt.f32.partialorder %v2612_v23, 0.0  ;;  %v2684_v45 = vmul.f32 %v6629_v20, %v2612_v23  ;;  %v3116_v20 = vld [vmem:[#allocation4 + $0xa] sm:$0xff] }
 0x451   : > { %v3148_v59 = vpack.c.bf16 %v3116_v20, %v3116_v20 }
 0x452   : > { %v2716_v21 = vsel %vm2648_vm15, %v2612_v23, %v2684_v45  ;;  %v2921_v61 = vld [vmem:[#allocation4 + $0x169] sm:$0xff]  ;;  %v3125_v23 = vld [vmem:[#allocation4 + $0x7a] sm:$0xff]  ;;  %v6913_v45 = vpack.c.bf16 %v3124_v12, %v3124_v12 }
 0x453   : > { %v2825_v63 = vld [vmem:[#allocation4 + $0x168] sm:$0xff]  ;;  %2792 = vst.msk [vmem:[#allocation4 + $0x171] sm:$0xff] %vm348_vm0, %v2716_v21  ;;  %v2953_v1 = vpack.c.bf16 %v2921_v61, %v2921_v61  ;;  %3045 = vrot.lane.b32.xlu0 %v6880_v47, %s5415_s26  ;;  %v3157_v21 = vpack.c.bf16 %v3125_v23, %v3125_v23  ;;  %v3155_v61 = vpack.c.bf16 %v3123_v15, %v3123_v15  ;;  %v3136_v12 = vld [vmem:[#allocation4 + $0xfa] sm:$0xff]  ;;  %v3135_v15 = vld [vmem:[#allocation4 + $0xf2] sm:$0xff] }
 0x454   : > { %v6885_v19 = vpack.c.bf16 %v2825_v63, %v2825_v63  ;;  %v3137_v23 = vld [vmem:[#allocation4 + $0x10a] sm:$0xff] }
 0x455   : > { %3047 = vrot.lane.b32.xlu1 %v2953_v1, %s5415_s26  ;;  %v3008_v31 = vpop.permute.xlu2 %3007  ;;  %v3127_v1 = vld [vmem:[#allocation4 + $0x92] sm:$0xff] }
 0x456   : > { %2889 = vst.msk [vmem:[#allocation5 + $0x78] sm:$0xf] %vm491_vm3, %v6885_v19  ;;  %v6920_v20 = vpack.c.bf16 %v3127_v1, %v3127_v1 }
 0x457   : > { %3093 = vst.msk [vmem:[#allocation5 + $0x28] sm:$0xf] %vm716_vm4, %v3008_v31  ;;  %v3126_v31 = vld [vmem:[#allocation4 + $0x82] sm:$0xff] }
 0x45a   : > { %v2922_v7 = vld [vmem:[#allocation4 + $0x171] sm:$0xff] }
 0x45b   : > { %v2954_v34 = vpack.c.bf16 %v2922_v7, %v2922_v7  ;;  %3211 = vrot.lane.b32.xlu0 %v3147_v52, %s5416_s10  ;;  %v2826_v2 = vld [vmem:[#allocation4 + $0x170] sm:$0xff]  ;;  %v3160_v52 = vpack.c.bf16 %v3128_v38, %v3128_v38 }
 0x45c   : > { %v6892_v5 = vpack.c.bf16 %v2826_v2, %v2826_v2  ;;  %v3131_v2 = vld [vmem:[#allocation4 + $0xc2] sm:$0xff] }
 0x45d   : > { %3213 = vrot.lane.b32.xlu1 %v3148_v59, %s5416_s10  ;;  %3049 = vrot.lane.b32.xlu2 %v2954_v34, %s5415_s26  ;;  %v3004_v46 = vpop.permute.xlu0 %3003  ;;  %v3158_v59 = vpack.c.bf16 %v3126_v31, %v3126_v31  ;;  %v3130_v34 = vld [vmem:[#allocation4 + $0xb2] sm:$0xff]  ;;  %v3163_v29 = vpack.c.bf16 %v3131_v2, %v3131_v2  ;;  %v3139_v31 = vld [vmem:[#allocation4 + $0x122] sm:$0xff] }
 0x45e   : > { %3091 = vst.msk [vmem:[#allocation5 + $0x20] sm:$0xf] %vm716_vm4, %v3004_v46  ;;  %v3129_v46 = vld [vmem:[#allocation4 + $0xaa] sm:$0xff]  ;;  %v6927_v9 = vpack.c.bf16 %v3130_v34, %v3130_v34 }
 0x45f   : > { %2890 = vst.msk [vmem:[#allocation5 + $0x7c] sm:$0xf] %vm491_vm3, %v6892_v5  ;;  %v3161_v17 = vpack.c.bf16 %v3129_v46, %v3129_v46 }
 0x463   : > { %3217 = vrot.lane.b32.xlu0 %v6899_v51, %s5416_s10 }
 0x465   : > { %3219 = vrot.lane.b32.xlu1 %v3151_v30, %s5416_s10  ;;  %3215 = vrot.lane.b32.xlu2 %v3149_v35, %s5416_s10  ;;  %v3006_v41 = vpop.permute.xlu1 %3005  ;;  %v3133_v35 = vld [vmem:[#allocation4 + $0xda] sm:$0xff] }
 0x466   : > { %3092 = vst.msk [vmem:[#allocation5 + $0x24] sm:$0xf] %vm716_vm4, %v3006_v41  ;;  %v3134_v41 = vld [vmem:[#allocation4 + $0xe2] sm:$0xff]  ;;  %v6934_v4 = vpack.c.bf16 %v3133_v35, %v3133_v35  ;;  %v3141_v35 = vld [vmem:[#allocation4 + $0x13a] sm:$0xff] }
 0x467   : > { %v3166_v48 = vpack.c.bf16 %v3134_v41, %v3134_v41 }
 0x46b   : > { %3223 = vrot.lane.b32.xlu0 %v6906_v60, %s5416_s10 }
 0x46d   : > { %3225 = vrot.lane.b32.xlu1 %v3154_v58, %s5416_s10  ;;  %3221 = vrot.lane.b32.xlu2 %v3152_v22, %s5416_s10  ;;  %v3014_v54 = vpop.permute.xlu2 %3013  ;;  %v3164_v58 = vpack.c.bf16 %v3132_v25, %v3132_v25 }
 0x46e   : > { %3096 = vst.msk [vmem:[#allocation5 + $0x34] sm:$0xf] %vm716_vm4, %v3014_v54 }
 0x473   : > { %3229 = vrot.lane.b32.xlu0 %v6913_v45, %s5416_s10 }
 0x475   : > { %3231 = vrot.lane.b32.xlu1 %v3157_v21, %s5416_s10  ;;  %3227 = vrot.lane.b32.xlu2 %v3155_v61, %s5416_s10  ;;  %v3010_v63 = vpop.permute.xlu0 %3009  ;;  %v6942_v21 = vpack.c.bf16 %v3136_v12, %v3136_v12  ;;  %v3169_v61 = vpack.c.bf16 %v3137_v23, %v3137_v23  ;;  %v3145_v12 = vld [vmem:[#allocation4 + $0x16a] sm:$0xff]  ;;  %v3146_v23 = vld [vmem:[#allocation4 + $0x172] sm:$0xff] }
 0x476   : > { %3094 = vst.msk [vmem:[#allocation5 + $0x2c] sm:$0xf] %vm716_vm4, %v3010_v63  ;;  %v3167_v63 = vpack.c.bf16 %v3135_v15, %v3135_v15  ;;  %v3144_v15 = vld [vmem:[#allocation4 + $0x15a] sm:$0xff] }
 0x47b   : > { %3235 = vrot.lane.b32.xlu0 %v6920_v20, %s5416_s10 }
 0x47d   : > { %3237 = vrot.lane.b32.xlu1 %v3160_v52, %s5416_s10  ;;  %3233 = vrot.lane.b32.xlu2 %v3158_v59, %s5416_s10  ;;  %v3012_v7 = vpop.permute.xlu1 %3011  ;;  %v3140_v52 = vld [vmem:[#allocation4 + $0x12a] sm:$0xff]  ;;  %v3138_v59 = vld [vmem:[#allocation4 + $0x112] sm:$0xff] }
 0x47e   : > { %3095 = vst.msk [vmem:[#allocation5 + $0x30] sm:$0xf] %vm716_vm4, %v3012_v7  ;;  %v6950_v7 = vpack.c.bf16 %v3139_v31, %v3139_v31  ;;  %v3172_v34 = vpack.c.bf16 %v3140_v52, %v3140_v52  ;;  %v3170_v2 = vpack.c.bf16 %v3138_v59, %v3138_v59 }
 0x483   : > { %3241 = vrot.lane.b32.xlu0 %v6927_v9, %s5416_s10 }
 0x485   : > { %3243 = vrot.lane.b32.xlu1 %v3163_v29, %s5416_s10  ;;  %3239 = vrot.lane.b32.xlu2 %v3161_v17, %s5416_s10  ;;  %v3020_v30 = vpop.permute.xlu2 %3019  ;;  %v3142_v17 = vld [vmem:[#allocation4 + $0x142] sm:$0xff] }
 0x486   : > { %3099 = vst.msk [vmem:[#allocation5 + $0x40] sm:$0xf] %vm716_vm4, %v3020_v30  ;;  %v3143_v30 = vld [vmem:[#allocation4 + $0x152] sm:$0xff]  ;;  %v6958_v41 = vpack.c.bf16 %v3142_v17, %v3142_v17 }
 0x487   : > { %v3175_v25 = vpack.c.bf16 %v3143_v30, %v3143_v30 }
 0x48b   : > { %3247 = vrot.lane.b32.xlu0 %v6934_v4, %s5416_s10 }
 0x48d   : > { %3249 = vrot.lane.b32.xlu1 %v3166_v48, %s5416_s10  ;;  %3245 = vrot.lane.b32.xlu2 %v3164_v58, %s5416_s10  ;;  %v3016_v22 = vpop.permute.xlu0 %3015  ;;  %v6960_v48 = vpack.c.bf16 %v3141_v35, %v3141_v35 }
 0x48e   : > { %3097 = vst.msk [vmem:[#allocation5 + $0x38] sm:$0xf] %vm716_vm4, %v3016_v22  ;;  %v3026_v54 = vpop.permute.xlu2 %3025 }
 0x48f   : > { %3102 = vst.msk [vmem:[#allocation5 + $0x4c] sm:$0xf] %vm716_vm4, %v3026_v54 }
 0x493   : > { %3253 = vrot.lane.b32.xlu0 %v6942_v21, %s5416_s10 }
 0x495   : > { %3255 = vrot.lane.b32.xlu1 %v3169_v61, %s5416_s10  ;;  %3251 = vrot.lane.b32.xlu2 %v3167_v63, %s5416_s10  ;;  %v3018_v1 = vpop.permute.xlu1 %3017  ;;  %v3177_v61 = vpack.c.bf16 %v3145_v12, %v3145_v12  ;;  %v3178_v63 = vpack.c.bf16 %v3146_v23, %v3146_v23  ;;  %v3563_v23 = vld [vmem:[#allocation4 + $0x19] sm:$0xff] }
 0x496   : > { %3098 = vst.msk [vmem:[#allocation5 + $0x3c] sm:$0xf] %vm716_vm4, %v3018_v1  ;;  %v3032_v38 = vpop.permute.xlu2 %3031  ;;  %v3176_v1 = vpack.c.bf16 %v3144_v15, %v3144_v15 }
 0x497   : > { %3105 = vst.msk [vmem:[#allocation5 + $0x58] sm:$0xf] %vm716_vm4, %v3032_v38 }
 0x49b   : > { %3259 = vrot.lane.b32.xlu0 %v6950_v7, %s5416_s10 }
 0x49d   : > { %3261 = vrot.lane.b32.xlu1 %v3172_v34, %s5416_s10  ;;  %3257 = vrot.lane.b32.xlu2 %v3170_v2, %s5416_s10  ;;  %v3024_v46 = vpop.permute.xlu1 %3023 }
 0x49e   : > { %3101 = vst.msk [vmem:[#allocation5 + $0x48] sm:$0xf] %vm716_vm4, %v3024_v46  ;;  %v3038_v29 = vpop.permute.xlu2 %3037 }
 0x49f   : > { %3108 = vst.msk [vmem:[#allocation5 + $0x64] sm:$0xf] %vm716_vm4, %v3038_v29 }
 0x4a3   : > { %3265 = vrot.lane.b32.xlu0 %v6958_v41, %s5416_s10 }
 0x4a5   : > { %3267 = vrot.lane.b32.xlu1 %v3175_v25, %s5416_s10  ;;  %3263 = vrot.lane.b32.xlu2 %v6960_v48, %s5416_s10  ;;  %v3030_v58 = vpop.permute.xlu1 %3029  ;;  %v3022_v22 = vpop.permute.xlu0 %3021 }
 0x4a6   : > { %3104 = vst.msk [vmem:[#allocation5 + $0x54] sm:$0xf] %vm716_vm4, %v3030_v58  ;;  %v3044_v54 = vpop.permute.xlu2 %3043 }
 0x4a7   : > { %3100 = vst.msk [vmem:[#allocation5 + $0x44] sm:$0xf] %vm716_vm4, %v3022_v22 }
 0x4a8   : > { %3111 = vst.msk [vmem:[#allocation5 + $0x70] sm:$0xf] %vm716_vm4, %v3044_v54 }
 0x4ab   : > { %3271 = vrot.lane.b32.xlu0 %v3177_v61, %s5416_s10 }
 0x4ad   : > { %3273 = vrot.lane.b32.xlu1 %v3178_v63, %s5416_s10  ;;  %3269 = vrot.lane.b32.xlu2 %v3176_v1, %s5416_s10  ;;  %v3036_v38 = vpop.permute.xlu1 %3035  ;;  %v3028_v31 = vpop.permute.xlu0 %3027  ;;  %s7554_s10 = scalar_lea.vmem %s7743_s7, %s5298_s27 }
 0x4ae   : > { %3107 = vst.msk [vmem:[#allocation5 + $0x60] sm:$0xf] %vm716_vm4, %v3036_v38 }
 0x4af   : > { %3103 = vst.msk [vmem:[#allocation5 + $0x50] sm:$0xf] %vm716_vm4, %v3028_v31  ;;  %v3566_v31 = vld [vmem:[#allocation4 + $0x39] sm:$0xff] }
 0x4b3   : > { %3437 = vrot.lane.b32.xlu0 %v6646_v56, %s5417_s11 }
 0x4b5   : > { %3439 = vrot.lane.b32.xlu1 %v6655_v43, %s5417_s11  ;;  %3435 = vrot.lane.b32.xlu2 %v6638_v57, %s5417_s11  ;;  %v3042_v52 = vpop.permute.xlu1 %3041  ;;  %v3034_v59 = vpop.permute.xlu0 %3033 }
 0x4b6   : > { %3110 = vst.msk [vmem:[#allocation5 + $0x6c] sm:$0xf] %vm716_vm4, %v3042_v52  ;;  %v2614_v43 = vpop.f32.mrf.mxu2  ;;  %v3564_v52 = vld [vmem:[#allocation4 + $0x21] sm:$0xff] }
 0x4b7   : > { %v3050_v34 = vpop.permute.xlu2 %3049  ;;  %3106 = vst.msk [vmem:[#allocation5 + $0x5c] sm:$0xf] %vm716_vm4, %v3034_v59 }
 0x4b8   : > { %3114 = vst.msk [vmem:[#allocation5 + $0x7c] sm:$0xf] %vm716_vm4, %v3050_v34  ;;  %v7080_v34 = vpack.c.bf16 %v3566_v31, %v3566_v31 }
 0x4bb   : > { %3443 = vrot.lane.b32.xlu0 %v6671_v36, %s5417_s11  ;;  %v5372_v36 = vld [vmem:[%s7739_s3] ss:$0 sm:$0xff] }
 0x4bc   : > { %v2615_v2 = vadd.f32 %v5372_v36, %v2614_v43  ;;  %v3568_v43 = vld [vmem:[#allocation4 + $0x51] sm:$0xff] }
 0x4bd   : > { %3445 = vrot.lane.b32.xlu1 %v6679_v49, %s5417_s11  ;;  %3441 = vrot.lane.b32.xlu2 %v6663_v8, %s5417_s11  ;;  %v3040_v56 = vpop.permute.xlu0 %3039  ;;  %v5373_v49 = vld [vmem:[%s7740_s4] ss:$0 sm:$0xff] }
 0x4be   : > { %3109 = vst.msk [vmem:[#allocation5 + $0x68] sm:$0xf] %vm716_vm4, %v3040_v56  ;;  %vm2649_vm3 = vcmp.gt.f32.partialorder %v2615_v2, 0.0  ;;  %v3596_v56 = vpack.c.bf16 %v3564_v52, %v3564_v52  ;;  %v3583_v52 = vld [vmem:[#allocation4 + $0x109] sm:$0xff] }
 0x4bf   : > { %v3216_v57 = vpop.permute.xlu2 %3215 }
 0x4c0   : > { %3309 = vst.msk [vmem:[#allocation5 + $0x8] sm:$0xf] %vm941_vm5, %v3216_v57 }
 0x4c3   : > { %3449 = vrot.lane.b32.xlu0 %v6700_v39, %s5417_s11  ;;  %v2685_v39 = vmul.f32 %v5373_v49, %v2615_v2 }
 0x4c5   : > { %3451 = vrot.lane.b32.xlu1 %v6715_v28, %s5417_s11  ;;  %3447 = vrot.lane.b32.xlu2 %v6689_v42, %s5417_s11  ;;  %v3046_v8 = vpop.permute.xlu0 %3045  ;;  %v2717_v17 = vsel %vm2649_vm3, %v2615_v2, %v2685_v39  ;;  %v2616_v42 = vpop.f32.mrf.mxu2  ;;  %v7090_v39 = vpack.c.bf16 %v3568_v43, %v3568_v43  ;;  %v3582_v43 = vld [vmem:[#allocation4 + $0xf9] sm:$0xff] }
 0x4c6   : > { %3112 = vst.msk [vmem:[#allocation5 + $0x74] sm:$0xf] %vm716_vm4, %v3046_v8  ;;  %v2617_v28 = vadd.f32 %v5372_v36, %v2616_v42  ;;  %v3569_v8 = vld [vmem:[#allocation4 + $0x61] sm:$0xff]  ;;  %v3571_v42 = vld [vmem:[#allocation4 + $0x79] sm:$0xff] }
 0x4c7   : > { %v3048_v46 = vpop.permute.xlu1 %3047  ;;  %v3222_v29 = vpop.permute.xlu2 %3221  ;;  %2793 = vst.msk [vmem:[#allocation4 + $0x181] sm:$0xff] %vm348_vm0, %v2717_v17 }
 0x4c8   : > { %3113 = vst.msk [vmem:[#allocation5 + $0x78] sm:$0xf] %vm716_vm4, %v3048_v46  ;;  %vm2650_vm4 = vcmp.gt.f32.partialorder %v2617_v28, 0.0  ;;  %v2686_v35 = vmul.f32 %v5373_v49, %v2617_v28  ;;  %v3567_v49 = vld [vmem:[#allocation4 + $0x49] sm:$0xff]  ;;  %v7092_v46 = vpack.c.bf16 %v3569_v8, %v3569_v8 }
 0x4c9   : > { %3312 = vst.msk [vmem:[#allocation5 + $0x14] sm:$0xf] %vm941_vm5, %v3222_v29  ;;  %v7094_v29 = vpack.c.bf16 %v3567_v49, %v3567_v49  ;;  %v3586_v49 = vld [vmem:[#allocation4 + $0x129] sm:$0xff] }
 0x4ca   : > { %v2718_v22 = vsel %vm2650_vm4, %v2617_v28, %v2686_v35  ;;  %v3572_v35 = vld [vmem:[#allocation4 + $0x81] sm:$0xff] }
 0x4cb   : > { %3455 = vrot.lane.b32.xlu0 %v6748_v10, %s5417_s11  ;;  %2794 = vst.msk [vmem:[#allocation4 + $0x189] sm:$0xff] %vm348_vm0, %v2718_v22  ;;  %v7107_v22 = vpack.c.bf16 %v3572_v35, %v3572_v35 }
 0x4cd   : > { %3457 = vrot.lane.b32.xlu1 %v6764_v27, %s5417_s11  ;;  %3453 = vrot.lane.b32.xlu2 %v6731_v18, %s5417_s11  ;;  %v3212_v30 = vpop.permute.xlu0 %3211 }
 0x4ce   : > { %3307 = vst.msk [vmem:[#allocation5] sm:$0xf] %vm941_vm5, %v3212_v30  ;;  %v3369_v15 = vld [vmem:[#allocation4 + $0x180] sm:$0xff] }
 0x4cf   : > { %v3214_v25 = vpop.permute.xlu1 %3213  ;;  %v3228_v58 = vpop.permute.xlu2 %3227  ;;  %v3401_v63 = vpack.c.bf16 %v3369_v15, %v3369_v15  ;;  %v3580_v15 = vld [vmem:[#allocation4 + $0xe1] sm:$0xff] }
 0x4d0   : > { %3308 = vst.msk [vmem:[#allocation5 + $0x4] sm:$0xf] %vm941_vm5, %v3214_v25  ;;  %v3570_v25 = vld [vmem:[#allocation4 + $0x69] sm:$0xff] }
 0x4d1   : > { %3315 = vst.msk [vmem:[#allocation5 + $0x20] sm:$0xf] %vm941_vm5, %v3228_v58  ;;  %v7105_v58 = vpack.c.bf16 %v3571_v42, %v3571_v42 }
 0x4d3   : > { %3461 = vrot.lane.b32.xlu0 %v6796_v53, %s5417_s11 }
 0x4d5   : > { %3463 = vrot.lane.b32.xlu1 %v6812_v13, %s5417_s11  ;;  %3459 = vrot.lane.b32.xlu2 %v6781_v14, %s5417_s11  ;;  %v3218_v18 = vpop.permute.xlu0 %3217 }
 0x4d6   : > { %3310 = vst.msk [vmem:[#allocation5 + $0xc] sm:$0xf] %vm941_vm5, %v3218_v18  ;;  %v7109_v18 = vpack.c.bf16 %v3570_v25, %v3570_v25  ;;  %v3589_v25 = vld [vmem:[#allocation4 + $0x151] sm:$0xff] }
 0x4d7   : > { %v3220_v10 = vpop.permute.xlu1 %3219  ;;  %v3234_v27 = vpop.permute.xlu2 %3233 }
 0x4d8   : > { %3311 = vst.msk [vmem:[#allocation5 + $0x10] sm:$0xf] %vm941_vm5, %v3220_v10 }
 0x4d9   : > { %3318 = vst.msk [vmem:[#allocation5 + $0x2c] sm:$0xf] %vm941_vm5, %v3234_v27  ;;  %v3574_v27 = vld [vmem:[#allocation4 + $0x99] sm:$0xff] }
 0x4db   : > { %3467 = vrot.lane.b32.xlu0 %v6704_v40, %s5417_s11 }
 0x4dd   : > { %3469 = vrot.lane.b32.xlu1 %v6723_v24, %s5417_s11  ;;  %3465 = vrot.lane.b32.xlu2 %v6826_v0, %s5417_s11  ;;  %v3224_v53 = vpop.permute.xlu0 %3223 }
 0x4de   : > { %3313 = vst.msk [vmem:[#allocation5 + $0x18] sm:$0xf] %vm941_vm5, %v3224_v53 }
 0x4df   : > { %v3226_v14 = vpop.permute.xlu1 %3225  ;;  %v3240_v13 = vpop.permute.xlu2 %3239 }
 0x4e0   : > { %3314 = vst.msk [vmem:[#allocation5 + $0x1c] sm:$0xf] %vm941_vm5, %v3226_v14 }
 0x4e1   : > { %3321 = vst.msk [vmem:[#allocation5 + $0x38] sm:$0xf] %vm941_vm5, %v3240_v13  ;;  %v3575_v13 = vld [vmem:[#allocation4 + $0xa9] sm:$0xff] }
 0x4e3   : > { %3473 = vrot.lane.b32.xlu0 %v6756_v55, %s5417_s11 }
 0x4e5   : > { %3475 = vrot.lane.b32.xlu1 %v6768_v62, %s5417_s11  ;;  %3471 = vrot.lane.b32.xlu2 %v6735_v11, %s5417_s11  ;;  %v3230_v40 = vpop.permute.xlu0 %3229 }
 0x4e6   : > { %3316 = vst.msk [vmem:[#allocation5 + $0x24] sm:$0xf] %vm941_vm5, %v3230_v40  ;;  %v3573_v40 = vld [vmem:[#allocation4 + $0x91] sm:$0xff] }
 0x4e7   : > { %v3232_v24 = vpop.permute.xlu1 %3231  ;;  %v3246_v0 = vpop.permute.xlu2 %3245 }
 0x4e8   : > { %3317 = vst.msk [vmem:[#allocation5 + $0x28] sm:$0xf] %vm941_vm5, %v3232_v24  ;;  %v3606_v24 = vpack.c.bf16 %v3574_v27, %v3574_v27 }
 0x4e9   : > { %3324 = vst.msk [vmem:[#allocation5 + $0x44] sm:$0xf] %vm941_vm5, %v3246_v0  ;;  %v3607_v0 = vpack.c.bf16 %v3575_v13, %v3575_v13 }
 0x4eb   : > { %3479 = vrot.lane.b32.xlu0 %v6800_v37, %s5417_s11 }
 0x4ed   : > { %3481 = vrot.lane.b32.xlu1 %v6819_v16, %s5417_s11  ;;  %3477 = vrot.lane.b32.xlu2 %v6788_v6, %s5417_s11  ;;  %v3236_v55 = vpop.permute.xlu0 %3235 }
 0x4ee   : > { %3319 = vst.msk [vmem:[#allocation5 + $0x30] sm:$0xf] %vm941_vm5, %v3236_v55  ;;  %v3605_v55 = vpack.c.bf16 %v3573_v40, %v3573_v40  ;;  %v3592_v40 = vld [vmem:[#allocation4 + $0x171] sm:$0xff] }
 0x4ef   : > { %v3238_v62 = vpop.permute.xlu1 %3237  ;;  %v3252_v54 = vpop.permute.xlu2 %3251 }
 0x4f0   : > { %3320 = vst.msk [vmem:[#allocation5 + $0x34] sm:$0xf] %vm941_vm5, %v3238_v62 }
 0x4f1   : > { %3327 = vst.msk [vmem:[#allocation5 + $0x50] sm:$0xf] %vm941_vm5, %v3252_v54  ;;  %v3577_v54 = vld [vmem:[#allocation4 + $0xc1] sm:$0xff] }
 0x4f3   : > { %3485 = vrot.lane.b32.xlu0 %v6845_v26, %s5417_s11 }
 0x4f5   : > { %3487 = vrot.lane.b32.xlu1 %v6859_v33, %s5417_s11  ;;  %3483 = vrot.lane.b32.xlu2 %v6831_v32, %s5417_s11  ;;  %v3242_v37 = vpop.permute.xlu0 %3241  ;;  %v3370_v32 = vld [vmem:[#allocation4 + $0x188] sm:$0xff] }
 0x4f6   : > { %3322 = vst.msk [vmem:[#allocation5 + $0x3c] sm:$0xf] %vm941_vm5, %v3242_v37  ;;  %v3402_v61 = vpack.c.bf16 %v3370_v32, %v3370_v32  ;;  %v3609_v32 = vpack.c.bf16 %v3577_v54, %v3577_v54  ;;  %v7180_v54 = vpack.c.bf16 %v3592_v40, %v3592_v40 }
 0x4f7   : > { %v3244_v6 = vpop.permute.xlu1 %3243  ;;  %v3258_v16 = vpop.permute.xlu2 %3257 }
 0x4f8   : > { %3323 = vst.msk [vmem:[#allocation5 + $0x40] sm:$0xf] %vm941_vm5, %v3244_v6 }
 0x4f9   : > { %3330 = vst.msk [vmem:[#allocation5 + $0x5c] sm:$0xf] %vm941_vm5, %v3258_v16  ;;  %v3578_v16 = vld [vmem:[#allocation4 + $0xc9] sm:$0xff] }
 0x4fb   : > { %3491 = vrot.lane.b32.xlu0 %v6885_v19, %s5417_s11  ;;  %v3595_v19 = vpack.c.bf16 %v3563_v23, %v3563_v23 }
 0x4fd   : > { %3493 = vrot.lane.b32.xlu1 %v6892_v5, %s5417_s11  ;;  %3489 = vrot.lane.b32.xlu2 %v6873_v44, %s5417_s11  ;;  %v3248_v26 = vpop.permute.xlu0 %3247  ;;  %v3565_v5 = vld [vmem:[#allocation4 + $0x31] sm:$0xff] }
 0x4fe   : > { %3325 = vst.msk [vmem:[#allocation5 + $0x48] sm:$0xf] %vm941_vm5, %v3248_v26  ;;  %v7078_v59 = vpack.c.bf16 %v3565_v5, %v3565_v5  ;;  %v3576_v26 = vld [vmem:[#allocation4 + $0xb1] sm:$0xff]  ;;  %v3612_v5 = vpack.c.bf16 %v3580_v15, %v3580_v15 }
 0x4ff   : > { %v3250_v33 = vpop.permute.xlu1 %3249  ;;  %v3264_v12 = vpop.permute.xlu2 %3263 }
 0x500   : > { %3326 = vst.msk [vmem:[#allocation5 + $0x4c] sm:$0xf] %vm941_vm5, %v3250_v33  ;;  %v3610_v33 = vpack.c.bf16 %v3578_v16, %v3578_v16  ;;  %v3787_v16 = vld [vmem:[#allocation4 + $0x1a] sm:$0xff] }
 0x501   : > { %3333 = vst.msk [vmem:[#allocation5 + $0x68] sm:$0xf] %vm941_vm5, %v3264_v12  ;;  %v3608_v12 = vpack.c.bf16 %v3576_v26, %v3576_v26 }
 0x503   : > { %3497 = vrot.lane.b32.xlu0 %v3402_v61, %s5417_s11 }
 0x505   : > { %3659 = vrot.lane.b32.xlu1 %v3595_v19, %s5418_s14  ;;  %3495 = vrot.lane.b32.xlu2 %v3401_v63, %s5417_s11  ;;  %v3254_v44 = vpop.permute.xlu0 %3253  ;;  %v3581_v63 = vld [vmem:[#allocation4 + $0xf1] sm:$0xff] }
 0x506   : > { %3328 = vst.msk [vmem:[#allocation5 + $0x54] sm:$0xf] %vm941_vm5, %v3254_v44  ;;  %v3579_v44 = vld [vmem:[#allocation4 + $0xd9] sm:$0xff] }
 0x507   : > { %v3256_v1 = vpop.permute.xlu1 %3255  ;;  %v3270_v38 = vpop.permute.xlu2 %3269 }
 0x508   : > { %3329 = vst.msk [vmem:[#allocation5 + $0x58] sm:$0xf] %vm941_vm5, %v3256_v1  ;;  %v7132_v1 = vpack.c.bf16 %v3581_v63, %v3581_v63 }
 0x509   : > { %3336 = vst.msk [vmem:[#allocation5 + $0x74] sm:$0xf] %vm941_vm5, %v3270_v38  ;;  %v3611_v38 = vpack.c.bf16 %v3579_v44, %v3579_v44  ;;  %v3789_v44 = vld [vmem:[#allocation4 + $0x32] sm:$0xff] }
 0x50b   : > { %3663 = vrot.lane.b32.xlu0 %v7078_v59, %s5418_s14 }
 0x50d   : > { %3665 = vrot.lane.b32.xlu1 %v7080_v34, %s5418_s14  ;;  %3661 = vrot.lane.b32.xlu2 %v3596_v56, %s5418_s14  ;;  %v3260_v57 = vpop.permute.xlu0 %3259 }
 0x50e   : > { %3331 = vst.msk [vmem:[#allocation5 + $0x60] sm:$0xf] %vm941_vm5, %v3260_v57 }
 0x50f   : > { %v3262_v36 = vpop.permute.xlu1 %3261  ;;  %v3436_v2 = vpop.permute.xlu2 %3435 }
 0x510   : > { %3332 = vst.msk [vmem:[#allocation5 + $0x64] sm:$0xf] %vm941_vm5, %v3262_v36  ;;  %v7141_v36 = vpack.c.bf16 %v3583_v52, %v3583_v52 }
 0x511   : > { %3531 = vst.msk [vmem:[#allocation5] sm:$0xf] %vm1166_vm6, %v3436_v2  ;;  %v7143_v2 = vpack.c.bf16 %v3582_v43, %v3582_v43 }
 0x513   : > { %3669 = vrot.lane.b32.xlu0 %v7090_v39, %s5418_s14 }
 0x515   : > { %3671 = vrot.lane.b32.xlu1 %v7092_v46, %s5418_s14  ;;  %3667 = vrot.lane.b32.xlu2 %v7094_v29, %s5418_s14  ;;  %v3266_v17 = vpop.permute.xlu0 %3265 }
 0x516   : > { %3334 = vst.msk [vmem:[#allocation5 + $0x6c] sm:$0xf] %vm941_vm5, %v3266_v17 }
 0x517   : > { %v3268_v28 = vpop.permute.xlu1 %3267  ;;  %v3442_v30 = vpop.permute.xlu2 %3441 }
 0x518   : > { %3335 = vst.msk [vmem:[#allocation5 + $0x70] sm:$0xf] %vm941_vm5, %v3268_v28  ;;  %v3585_v28 = vld [vmem:[#allocation4 + $0x121] sm:$0xff] }
 0x519   : > { %3534 = vst.msk [vmem:[#allocation5 + $0xc] sm:$0xf] %vm1166_vm6, %v3442_v30  ;;  %v7154_v30 = vpack.c.bf16 %v3586_v49, %v3586_v49  ;;  %v7156_v35 = vpack.c.bf16 %v3585_v28, %v3585_v28  ;;  %v3796_v49 = vld [vmem:[#allocation4 + $0x82] sm:$0xff]  ;;  %v3795_v28 = vld [vmem:[#allocation4 + $0x7a] sm:$0xff] }
 0x51b   : > { %3675 = vrot.lane.b32.xlu0 %v7105_v58, %s5418_s14 }
 0x51d   : > { %3677 = vrot.lane.b32.xlu1 %v7107_v22, %s5418_s14  ;;  %3673 = vrot.lane.b32.xlu2 %v7109_v18, %s5418_s14  ;;  %v3272_v10 = vpop.permute.xlu0 %3271 }
 0x51e   : > { %3337 = vst.msk [vmem:[#allocation5 + $0x78] sm:$0xf] %vm941_vm5, %v3272_v10 }
 0x51f   : > { %v3274_v53 = vpop.permute.xlu1 %3273  ;;  %v3448_v14 = vpop.permute.xlu2 %3447 }
 0x520   : > { %3338 = vst.msk [vmem:[#allocation5 + $0x7c] sm:$0xf] %vm941_vm5, %v3274_v53  ;;  %v3588_v53 = vld [vmem:[#allocation4 + $0x141] sm:$0xff] }
 0x521   : > { %3537 = vst.msk [vmem:[#allocation5 + $0x18] sm:$0xf] %vm1166_vm6, %v3448_v14  ;;  %v7167_v14 = vpack.c.bf16 %v3589_v25, %v3589_v25  ;;  %v7169_v13 = vpack.c.bf16 %v3588_v53, %v3588_v53  ;;  %v7227_v25 = vpack.c.bf16 %v3795_v28, %v3795_v28 }
 0x523   : > { %3681 = vrot.lane.b32.xlu0 %v3606_v24, %s5418_s14 }
 0x525   : > { %3683 = vrot.lane.b32.xlu1 %v3607_v0, %s5418_s14  ;;  %3679 = vrot.lane.b32.xlu2 %v3605_v55, %s5418_s14  ;;  %v3438_v62 = vpop.permute.xlu0 %3437  ;;  %v3593_v55 = vld [vmem:[#allocation4 + $0x181] sm:$0xff] }
 0x526   : > { %3532 = vst.msk [vmem:[#allocation5 + $0x4] sm:$0xf] %vm1166_vm6, %v3438_v62  ;;  %v3591_v62 = vld [vmem:[#allocation4 + $0x169] sm:$0xff] }
 0x527   : > { %v3440_v37 = vpop.permute.xlu1 %3439  ;;  %v3454_v6 = vpop.permute.xlu2 %3453 }
 0x528   : > { %3533 = vst.msk [vmem:[#allocation5 + $0x8] sm:$0xf] %vm1166_vm6, %v3440_v37  ;;  %v3625_v37 = vpack.c.bf16 %v3593_v55, %v3593_v55 }
 0x529   : > { %3540 = vst.msk [vmem:[#allocation5 + $0x24] sm:$0xf] %vm1166_vm6, %v3454_v6  ;;  %v7182_v6 = vpack.c.bf16 %v3591_v62, %v3591_v62 }
 0x52b   : > { %3687 = vrot.lane.b32.xlu0 %v3609_v32, %s5418_s14 }
 0x52d   : > { %3689 = vrot.lane.b32.xlu1 %v3610_v33, %s5418_s14  ;;  %3685 = vrot.lane.b32.xlu2 %v3608_v12, %s5418_s14  ;;  %v3444_v23 = vpop.permute.xlu0 %3443  ;;  %v3594_v33 = vld [vmem:[#allocation4 + $0x189] sm:$0xff]  ;;  %v3819_v12 = vpack.c.bf16 %v3787_v16, %v3787_v16 }
 0x52e   : > { %3535 = vst.msk [vmem:[#allocation5 + $0x10] sm:$0xf] %vm1166_vm6, %v3444_v23  ;;  %v3626_v23 = vpack.c.bf16 %v3594_v33, %v3594_v33 }
 0x52f   : > { %v3446_v61 = vpop.permute.xlu1 %3445  ;;  %v3460_v19 = vpop.permute.xlu2 %3459 }
 0x530   : > { %3536 = vst.msk [vmem:[#allocation5 + $0x14] sm:$0xf] %vm1166_vm6, %v3446_v61  ;;  %v3790_v61 = vld [vmem:[#allocation4 + $0x3a] sm:$0xff] }
 0x531   : > { %3543 = vst.msk [vmem:[#allocation5 + $0x30] sm:$0xf] %vm1166_vm6, %v3460_v19 }
 0x533   : > { %3693 = vrot.lane.b32.xlu0 %v3612_v5, %s5418_s14  ;;  %v7199_v5 = vpack.c.bf16 %v3790_v61, %v3790_v61  ;;  %v3808_v61 = vld [vmem:[#allocation4 + $0x112] sm:$0xff] }
 0x535   : > { %3695 = vrot.lane.b32.xlu1 %v7132_v1, %s5418_s14  ;;  %3691 = vrot.lane.b32.xlu2 %v3611_v38, %s5418_s14  ;;  %v3450_v31 = vpop.permute.xlu0 %3449  ;;  %v7201_v38 = vpack.c.bf16 %v3789_v44, %v3789_v44  ;;  %v3807_v44 = vld [vmem:[#allocation4 + $0x10a] sm:$0xff] }
 0x536   : > { %3538 = vst.msk [vmem:[#allocation5 + $0x1c] sm:$0xf] %vm1166_vm6, %v3450_v31  ;;  %v3793_v31 = vld [vmem:[#allocation4 + $0x62] sm:$0xff] }
 0x537   : > { %v3452_v56 = vpop.permute.xlu1 %3451  ;;  %v3466_v57 = vpop.permute.xlu2 %3465  ;;  %v7212_v43 = vpack.c.bf16 %v3793_v31, %v3793_v31  ;;  %v7267_v31 = vpack.c.bf16 %v3807_v44, %v3807_v44 }
 0x538   : > { %3539 = vst.msk [vmem:[#allocation5 + $0x20] sm:$0xf] %vm1166_vm6, %v3452_v56 }
 0x539   : > { %3546 = vst.msk [vmem:[#allocation5 + $0x3c] sm:$0xf] %vm1166_vm6, %v3466_v57  ;;  %v3792_v57 = vld [vmem:[#allocation4 + $0x52] sm:$0xff] }
 0x53b   : > { %3699 = vrot.lane.b32.xlu0 %v7141_v36, %s5418_s14 }
 0x53d   : > { %3701 = vrot.lane.b32.xlu1 %v6853_v3, %s5418_s14  ;;  %3697 = vrot.lane.b32.xlu2 %v7143_v2, %s5418_s14  ;;  %v3456_v8 = vpop.permute.xlu0 %3455 }
 0x53e   : > { %3541 = vst.msk [vmem:[#allocation5 + $0x28] sm:$0xf] %vm1166_vm6, %v3456_v8  ;;  %v7214_v8 = vpack.c.bf16 %v3792_v57, %v3792_v57  ;;  %v3810_v57 = vld [vmem:[#allocation4 + $0x12a] sm:$0xff] }
 0x53f   : > { %v3458_v17 = vpop.permute.xlu1 %3457  ;;  %v3472_v42 = vpop.permute.xlu2 %3471 }
 0x540   : > { %3542 = vst.msk [vmem:[#allocation5 + $0x2c] sm:$0xf] %vm1166_vm6, %v3458_v17 }
 0x541   : > { %3549 = vst.msk [vmem:[#allocation5 + $0x48] sm:$0xf] %vm1166_vm6, %v3472_v42 }
 0x543   : > { %3705 = vrot.lane.b32.xlu0 %v7154_v30, %s5418_s14 }
 0x545   : > { %3707 = vrot.lane.b32.xlu1 %v6867_v50, %s5418_s14  ;;  %3703 = vrot.lane.b32.xlu2 %v7156_v35, %s5418_s14  ;;  %v3462_v3 = vpop.permute.xlu0 %3461 }
 0x546   : > { %3544 = vst.msk [vmem:[#allocation5 + $0x34] sm:$0xf] %vm1166_vm6, %v3462_v3  ;;  %v7225_v3 = vpack.c.bf16 %v3796_v49, %v3796_v49  ;;  %v4029_v49 = vld [vmem:[#allocation4 + $0xf8] sm:$0xff] }
 0x547   : > { %v3464_v10 = vpop.permute.xlu1 %3463  ;;  %v3478_v27 = vpop.permute.xlu2 %3477  ;;  %v4061_v28 = vpack.c.bf16 %v4029_v49, %v4029_v49 }
 0x548   : > { %3545 = vst.msk [vmem:[#allocation5 + $0x38] sm:$0xf] %vm1166_vm6, %v3464_v10  ;;  %v3799_v10 = vld [vmem:[#allocation4 + $0xaa] sm:$0xff] }
 0x549   : > { %3552 = vst.msk [vmem:[#allocation5 + $0x54] sm:$0xf] %vm1166_vm6, %v3478_v27  ;;  %v7238_v40 = vpack.c.bf16 %v3799_v10, %v3799_v10  ;;  %v4477_v10 = vld [vmem:[#allocation4 + $0xfa] sm:$0xff] }
 0x54b   : > { %3711 = vrot.lane.b32.xlu0 %v7167_v14, %s5418_s14 }
 0x54d   : > { %3713 = vrot.lane.b32.xlu1 %v6880_v47, %s5418_s14  ;;  %3709 = vrot.lane.b32.xlu2 %v7169_v13, %s5418_s14  ;;  %v3468_v50 = vpop.permute.xlu0 %3467 }
 0x54e   : > { %3547 = vst.msk [vmem:[#allocation5 + $0x40] sm:$0xf] %vm1166_vm6, %v3468_v50  ;;  %v3798_v50 = vld [vmem:[#allocation4 + $0x9a] sm:$0xff] }
 0x54f   : > { %v3470_v24 = vpop.permute.xlu1 %3469  ;;  %v3484_v0 = vpop.permute.xlu2 %3483 }
 0x550   : > { %3548 = vst.msk [vmem:[#allocation5 + $0x44] sm:$0xf] %vm1166_vm6, %v3470_v24  ;;  %v7240_v24 = vpack.c.bf16 %v3798_v50, %v3798_v50 }
 0x551   : > { %3555 = vst.msk [vmem:[#allocation5 + $0x60] sm:$0xf] %vm1166_vm6, %v3484_v0  ;;  %v3802_v0 = vld [vmem:[#allocation4 + $0xca] sm:$0xff] }
 0x553   : > { %3717 = vrot.lane.b32.xlu0 %v7180_v54, %s5418_s14 }
 0x555   : > { %3719 = vrot.lane.b32.xlu1 %v3625_v37, %s5418_s14  ;;  %3715 = vrot.lane.b32.xlu2 %v7182_v6, %s5418_s14  ;;  %v3474_v47 = vpop.permute.xlu0 %3473  ;;  %v3801_v37 = vld [vmem:[#allocation4 + $0xc2] sm:$0xff] }
 0x556   : > { %3550 = vst.msk [vmem:[#allocation5 + $0x4c] sm:$0xf] %vm1166_vm6, %v3474_v47  ;;  %v3834_v47 = vpack.c.bf16 %v3802_v0, %v3802_v0  ;;  %v3833_v16 = vpack.c.bf16 %v3801_v37, %v3801_v37 }
 0x557   : > { %v3476_v26 = vpop.permute.xlu1 %3475  ;;  %v3490_v32 = vpop.permute.xlu2 %3489 }
 0x558   : > { %3551 = vst.msk [vmem:[#allocation5 + $0x50] sm:$0xf] %vm1166_vm6, %v3476_v26  ;;  %v3805_v26 = vld [vmem:[#allocation4 + $0xf2] sm:$0xff] }
 0x559   : > { %3558 = vst.msk [vmem:[#allocation5 + $0x6c] sm:$0xf] %vm1166_vm6, %v3490_v32 }
 0x55b   : > { %3883 = vrot.lane.b32.xlu0 %v3819_v12, %s5419_s15  ;;  %v3804_v12 = vld [vmem:[#allocation4 + $0xe2] sm:$0xff] }
 0x55d   : > { %3885 = vrot.lane.b32.xlu1 %v6899_v51, %s5419_s15  ;;  %3721 = vrot.lane.b32.xlu2 %v3626_v23, %s5418_s14  ;;  %v3480_v15 = vpop.permute.xlu0 %3479  ;;  %v3837_v23 = vpack.c.bf16 %v3805_v26, %v3805_v26  ;;  %v4030_v26 = vld [vmem:[#allocation4 + $0x108] sm:$0xff] }
 0x55e   : > { %3553 = vst.msk [vmem:[#allocation5 + $0x58] sm:$0xf] %vm1166_vm6, %v3480_v15  ;;  %v3836_v15 = vpack.c.bf16 %v3804_v12, %v3804_v12  ;;  %v4255_v12 = vld [vmem:[#allocation4 + $0x111] sm:$0xff] }
 0x55f   : > { %v3482_v19 = vpop.permute.xlu1 %3481  ;;  %v3496_v63 = vpop.permute.xlu2 %3495 }
 0x560   : > { %3554 = vst.msk [vmem:[#allocation5 + $0x5c] sm:$0xf] %vm1166_vm6, %v3482_v19 }
 0x561   : > { %3561 = vst.msk [vmem:[#allocation5 + $0x78] sm:$0xf] %vm1166_vm6, %v3496_v63 }
 0x563   : > { %3889 = vrot.lane.b32.xlu0 %v7199_v5, %s5419_s15 }
 0x565   : > { %3891 = vrot.lane.b32.xlu1 %v6906_v60, %s5419_s15  ;;  %3887 = vrot.lane.b32.xlu2 %v7201_v38, %s5419_s15  ;;  %v3486_v51 = vpop.permute.xlu0 %3485 }
 0x566   : > { %3556 = vst.msk [vmem:[#allocation5 + $0x64] sm:$0xf] %vm1166_vm6, %v3486_v51  ;;  %v7265_v51 = vpack.c.bf16 %v3808_v61, %v3808_v61 }
 0x567   : > { %v3488_v52 = vpop.permute.xlu1 %3487  ;;  %v3662_v56 = vpop.permute.xlu2 %3661 }
 0x568   : > { %3557 = vst.msk [vmem:[#allocation5 + $0x68] sm:$0xf] %vm1166_vm6, %v3488_v52 }
 0x569   : > { %3756 = vst.msk [vmem:[#allocation5 + $0x4] sm:$0xf] %vm1391_vm7, %v3662_v56 }
 0x56b   : > { %3895 = vrot.lane.b32.xlu0 %v7212_v43, %s5419_s15 }
 0x56d   : > { %3897 = vrot.lane.b32.xlu1 %v6913_v45, %s5419_s15  ;;  %3893 = vrot.lane.b32.xlu2 %v7214_v8, %s5419_s15  ;;  %v3492_v60 = vpop.permute.xlu0 %3491 }
 0x56e   : > { %3559 = vst.msk [vmem:[#allocation5 + $0x70] sm:$0xf] %vm1166_vm6, %v3492_v60  ;;  %v7278_v60 = vpack.c.bf16 %v3810_v57, %v3810_v57  ;;  %v4033_v57 = vld [vmem:[#allocation4 + $0x128] sm:$0xff] }
 0x56f   : > { %v3494_v17 = vpop.permute.xlu1 %3493  ;;  %v3668_v42 = vpop.permute.xlu2 %3667 }
 0x570   : > { %3560 = vst.msk [vmem:[#allocation5 + $0x74] sm:$0xf] %vm1166_vm6, %v3494_v17 }
 0x571   : > { %3759 = vst.msk [vmem:[#allocation5 + $0x10] sm:$0xf] %vm1391_vm7, %v3668_v42 }
 0x573   : > { %3901 = vrot.lane.b32.xlu0 %v7225_v3, %s5419_s15 }
 0x575   : > { %3903 = vrot.lane.b32.xlu1 %v6920_v20, %s5419_s15  ;;  %3899 = vrot.lane.b32.xlu2 %v7227_v25, %s5419_s15  ;;  %v3498_v45 = vpop.permute.xlu0 %3497 }
 0x576   : > { %3562 = vst.msk [vmem:[#allocation5 + $0x7c] sm:$0xf] %vm1166_vm6, %v3498_v45 }
 0x577   : > { %v3660_v27 = vpop.permute.xlu1 %3659  ;;  %v3674_v53 = vpop.permute.xlu2 %3673 }
 0x578   : > { %3755 = vst.msk [vmem:[#allocation5] sm:$0xf] %vm1391_vm7, %v3660_v27  ;;  %v4509_v27 = vpack.c.bf16 %v4477_v10, %v4477_v10  ;;  %v4017_v10 = vld [vmem:[#allocation4 + $0x68] sm:$0xff] }
 0x579   : > { %3762 = vst.msk [vmem:[#allocation5 + $0x1c] sm:$0xf] %vm1391_vm7, %v3674_v53 }
 0x57b   : > { %3907 = vrot.lane.b32.xlu0 %v7238_v40, %s5419_s15 }
 0x57d   : > { %3909 = vrot.lane.b32.xlu1 %v6927_v9, %s5419_s15  ;;  %3905 = vrot.lane.b32.xlu2 %v7240_v24, %s5419_s15  ;;  %v3664_v20 = vpop.permute.xlu0 %3663 }
 0x57e   : > { %3757 = vst.msk [vmem:[#allocation5 + $0x8] sm:$0xf] %vm1391_vm7, %v3664_v20  ;;  %v4012_v20 = vld [vmem:[#allocation4 + $0x30] sm:$0xff] }
 0x57f   : > { %v3666_v55 = vpop.permute.xlu1 %3665  ;;  %v3680_v62 = vpop.permute.xlu2 %3679 }
 0x580   : > { %3758 = vst.msk [vmem:[#allocation5 + $0xc] sm:$0xf] %vm1391_vm7, %v3666_v55  ;;  %v4044_v55 = vpack.c.bf16 %v4012_v20, %v4012_v20 }
 0x581   : > { %3765 = vst.msk [vmem:[#allocation5 + $0x28] sm:$0xf] %vm1391_vm7, %v3680_v62 }
 0x583   : > { %3913 = vrot.lane.b32.xlu0 %v3834_v47, %s5419_s15  ;;  %v4031_v47 = vld [vmem:[#allocation4 + $0x110] sm:$0xff] }
 0x585   : > { %3915 = vrot.lane.b32.xlu1 %v6934_v4, %s5419_s15  ;;  %3911 = vrot.lane.b32.xlu2 %v3833_v16, %s5419_s15  ;;  %v3670_v9 = vpop.permute.xlu0 %3669 }
 0x586   : > { %3760 = vst.msk [vmem:[#allocation5 + $0x14] sm:$0xf] %vm1391_vm7, %v3670_v9 }
 0x587   : > { %v3672_v32 = vpop.permute.xlu1 %3671  ;;  %v3686_v33 = vpop.permute.xlu2 %3685 }
 0x588   : > { %3761 = vst.msk [vmem:[#allocation5 + $0x18] sm:$0xf] %vm1391_vm7, %v3672_v32  ;;  %v4063_v32 = vpack.c.bf16 %v4031_v47, %v4031_v47 }
 0x589   : > { %3768 = vst.msk [vmem:[#allocation5 + $0x34] sm:$0xf] %vm1391_vm7, %v3686_v33  ;;  %v4062_v33 = vpack.c.bf16 %v4030_v26, %v4030_v26 }
 0x58b   : > { %3919 = vrot.lane.b32.xlu0 %v3837_v23, %s5419_s15 }
 0x58d   : > { %3921 = vrot.lane.b32.xlu1 %v6942_v21, %s5419_s15  ;;  %3917 = vrot.lane.b32.xlu2 %v3836_v15, %s5419_s15  ;;  %v3676_v4 = vpop.permute.xlu0 %3675  ;;  %v4015_v15 = vld [vmem:[#allocation4 + $0x50] sm:$0xff] }
 0x58e   : > { %3763 = vst.msk [vmem:[#allocation5 + $0x20] sm:$0xf] %vm1391_vm7, %v3676_v4 }
 0x58f   : > { %v3678_v19 = vpop.permute.xlu1 %3677  ;;  %v3692_v63 = vpop.permute.xlu2 %3691 }
 0x590   : > { %3764 = vst.msk [vmem:[#allocation5 + $0x24] sm:$0xf] %vm1391_vm7, %v3678_v19  ;;  %v4014_v19 = vld [vmem:[#allocation4 + $0x48] sm:$0xff] }
 0x591   : > { %3771 = vst.msk [vmem:[#allocation5 + $0x40] sm:$0xf] %vm1391_vm7, %v3692_v63  ;;  %v4047_v63 = vpack.c.bf16 %v4015_v15, %v4015_v15  ;;  %v4046_v44 = vpack.c.bf16 %v4014_v19, %v4014_v19 }
 0x593   : > { %3925 = vrot.lane.b32.xlu0 %v7265_v51, %s5419_s15 }
 0x595   : > { %3927 = vrot.lane.b32.xlu1 %v6950_v7, %s5419_s15  ;;  %3923 = vrot.lane.b32.xlu2 %v7267_v31, %s5419_s15  ;;  %v3682_v21 = vpop.permute.xlu0 %3681 }
 0x596   : > { %3766 = vst.msk [vmem:[#allocation5 + $0x2c] sm:$0xf] %vm1391_vm7, %v3682_v21 }
 0x597   : > { %v3684_v52 = vpop.permute.xlu1 %3683  ;;  %v3698_v56 = vpop.permute.xlu2 %3697 }
 0x598   : > { %3767 = vst.msk [vmem:[#allocation5 + $0x30] sm:$0xf] %vm1391_vm7, %v3684_v52 }
 0x599   : > { %3774 = vst.msk [vmem:[#allocation5 + $0x4c] sm:$0xf] %vm1391_vm7, %v3698_v56 }
 0x59b   : > { %3931 = vrot.lane.b32.xlu0 %v6960_v48, %s5419_s15 }
 0x59d   : > { %3933 = vrot.lane.b32.xlu1 %v6958_v41, %s5419_s15  ;;  %3929 = vrot.lane.b32.xlu2 %v7278_v60, %s5419_s15  ;;  %v3688_v7 = vpop.permute.xlu0 %3687 }
 0x59e   : > { %3769 = vst.msk [vmem:[#allocation5 + $0x38] sm:$0xf] %vm1391_vm7, %v3688_v7 }
 0x59f   : > { %v3690_v17 = vpop.permute.xlu1 %3689  ;;  %v3704_v42 = vpop.permute.xlu2 %3703 }
 0x5a0   : > { %3770 = vst.msk [vmem:[#allocation5 + $0x3c] sm:$0xf] %vm1391_vm7, %v3690_v17  ;;  %v4032_v17 = vld [vmem:[#allocation4 + $0x120] sm:$0xff] }
 0x5a1   : > { %3777 = vst.msk [vmem:[#allocation5 + $0x58] sm:$0xf] %vm1391_vm7, %v3704_v42  ;;  %v4065_v42 = vpack.c.bf16 %v4033_v57, %v4033_v57 }
 0x5a3   : > { %4142 = vrot.lane.b32.xlu0 %v4061_v28, %s5420_s16  ;;  %v4064_v28 = vpack.c.bf16 %v4032_v17, %v4032_v17 }
 0x5a5   : > { %4364 = vrot.lane.b32.xlu1 %v7132_v1, %s5421_s17  ;;  %4140 = vrot.lane.b32.xlu2 %v6735_v11, %s5420_s16  ;;  %v3694_v41 = vpop.permute.xlu0 %3693  ;;  %v4013_v11 = vld [vmem:[#allocation4 + $0x38] sm:$0xff] }
 0x5a6   : > { %3772 = vst.msk [vmem:[#allocation5 + $0x44] sm:$0xf] %vm1391_vm7, %v3694_v41  ;;  %v4045_v0 = vpack.c.bf16 %v4013_v11, %v4013_v11  ;;  %v4016_v11 = vld [vmem:[#allocation4 + $0x60] sm:$0xff] }
 0x5a7   : > { %v3696_v48 = vpop.permute.xlu1 %3695  ;;  %v3710_v45 = vpop.permute.xlu2 %3709 }
 0x5a8   : > { %3773 = vst.msk [vmem:[#allocation5 + $0x48] sm:$0xf] %vm1391_vm7, %v3696_v48 }
 0x5a9   : > { %3780 = vst.msk [vmem:[#allocation5 + $0x64] sm:$0xf] %vm1391_vm7, %v3710_v45 }
 0x5ab   : > { %4588 = vrot.lane.b32.xlu0 %v3837_v23, %s5422_s18  ;;  %v4287_v23 = vpack.c.bf16 %v4255_v12, %v4255_v12 }
 0x5ad   : > { %4590 = vrot.lane.b32.xlu1 %v4509_v27, %s5422_s18  ;;  %4366 = vrot.lane.b32.xlu2 %v7143_v2, %s5421_s17  ;;  %v3700_v1 = vpop.permute.xlu0 %3699 }
 0x5ae   : > { %3775 = vst.msk [vmem:[#allocation5 + $0x50] sm:$0xf] %vm1391_vm7, %v3700_v1 }
 0x5af   : > { %v3702_v53 = vpop.permute.xlu1 %3701  ;;  %v3716_v50 = vpop.permute.xlu2 %3715 }
 0x5b0   : > { %3776 = vst.msk [vmem:[#allocation5 + $0x54] sm:$0xf] %vm1391_vm7, %v3702_v53  ;;  %v4049_v53 = vpack.c.bf16 %v4017_v10, %v4017_v10 }
 0x5b1   : > { %3783 = vst.msk [vmem:[#allocation5 + $0x70] sm:$0xf] %vm1391_vm7, %v3716_v50  ;;  %v4048_v50 = vpack.c.bf16 %v4016_v11, %v4016_v11  ;;  %v4021_v11 = vld [vmem:[#allocation4 + $0x98] sm:$0xff] }
 0x5b3   : > { %4110 = vrot.lane.b32.xlu0 %v4045_v0, %s5420_s16 }
 0x5b5   : > { %4332 = vrot.lane.b32.xlu1 %v7078_v59, %s5421_s17  ;;  %4108 = vrot.lane.b32.xlu2 %v4044_v55, %s5420_s16  ;;  %v3706_v2 = vpop.permute.xlu0 %3705 }
 0x5b6   : > { %3778 = vst.msk [vmem:[#allocation5 + $0x5c] sm:$0xf] %vm1391_vm7, %v3706_v2 }
 0x5b7   : > { %v3708_v62 = vpop.permute.xlu1 %3707  ;;  %v3722_v37 = vpop.permute.xlu2 %3721 }
 0x5b8   : > { %3779 = vst.msk [vmem:[#allocation5 + $0x60] sm:$0xf] %vm1391_vm7, %v3708_v62  ;;  %v4465_v62 = vld [vmem:[#allocation4 + $0x6a] sm:$0xff] }
 0x5b9   : > { %3786 = vst.msk [vmem:[#allocation5 + $0x7c] sm:$0xf] %vm1391_vm7, %v3722_v37 }
 0x5bb   : > { %4556 = vrot.lane.b32.xlu0 %v7201_v38, %s5422_s18 }
 0x5bd   : > { %4558 = vrot.lane.b32.xlu1 %v7199_v5, %s5422_s18  ;;  %4334 = vrot.lane.b32.xlu2 %v7080_v34, %s5421_s17  ;;  %v3712_v59 = vpop.permute.xlu0 %3711 }
 0x5be   : > { %3781 = vst.msk [vmem:[#allocation5 + $0x68] sm:$0xf] %vm1391_vm7, %v3712_v59  ;;  %v4497_v59 = vpack.c.bf16 %v4465_v62, %v4465_v62  ;;  %v4468_v62 = vld [vmem:[#allocation4 + $0x92] sm:$0xff] }
 0x5bf   : > { %v3714_v16 = vpop.permute.xlu1 %3713  ;;  %v3888_v9 = vpop.permute.xlu2 %3887 }
 0x5c0   : > { %3782 = vst.msk [vmem:[#allocation5 + $0x6c] sm:$0xf] %vm1391_vm7, %v3714_v16  ;;  %v4035_v16 = vld [vmem:[#allocation4 + $0x140] sm:$0xff] }
 0x5c1   : > { %3981 = vst.msk [vmem:[#allocation5 + $0x8] sm:$0xf] %vm1616_vm8, %v3888_v9 }
 0x5c3   : > { %4146 = vrot.lane.b32.xlu0 %v4063_v32, %s5420_s16  ;;  %v4258_v32 = vld [vmem:[#allocation4 + $0x139] sm:$0xff] }
 0x5c5   : > { %4368 = vrot.lane.b32.xlu1 %v7141_v36, %s5421_s17  ;;  %4144 = vrot.lane.b32.xlu2 %v4062_v33, %s5420_s16  ;;  %v3718_v34 = vpop.permute.xlu0 %3717  ;;  %v4034_v33 = vld [vmem:[#allocation4 + $0x138] sm:$0xff] }
 0x5c6   : > { %3784 = vst.msk [vmem:[#allocation5 + $0x74] sm:$0xf] %vm1391_vm7, %v3718_v34  ;;  %v4067_v34 = vpack.c.bf16 %v4035_v16, %v4035_v16  ;;  %v4500_v16 = vpack.c.bf16 %v4468_v62, %v4468_v62  ;;  %v4025_v62 = vld [vmem:[#allocation4 + $0xc8] sm:$0xff] }
 0x5c7   : > { %v3720_v5 = vpop.permute.xlu1 %3719  ;;  %v3894_v38 = vpop.permute.xlu2 %3893 }
 0x5c8   : > { %3785 = vst.msk [vmem:[#allocation5 + $0x78] sm:$0xf] %vm1391_vm7, %v3720_v5  ;;  %v4290_v5 = vpack.c.bf16 %v4258_v32, %v4258_v32 }
 0x5c9   : > { %3984 = vst.msk [vmem:[#allocation5 + $0x14] sm:$0xf] %vm1616_vm8, %v3894_v38  ;;  %v4066_v38 = vpack.c.bf16 %v4034_v33, %v4034_v33 }
 0x5cb   : > { %4592 = vrot.lane.b32.xlu0 %v7267_v31, %s5422_s18  ;;  %v4462_v31 = vld [vmem:[#allocation4 + $0x4a] sm:$0xff] }
 0x5cc   : > { %v4494_v56 = vpack.c.bf16 %v4462_v31, %v4462_v31 }
 0x5cd   : > { %4594 = vrot.lane.b32.xlu1 %v7265_v51, %s5422_s18  ;;  %4370 = vrot.lane.b32.xlu2 %v4287_v23, %s5421_s17  ;;  %v3884_v36 = vpop.permute.xlu0 %3883  ;;  %v4482_v23 = vld [vmem:[#allocation4 + $0x13a] sm:$0xff] }
 0x5ce   : > { %3979 = vst.msk [vmem:[#allocation5] sm:$0xf] %vm1616_vm8, %v3884_v36  ;;  %v4514_v19 = vpack.c.bf16 %v4482_v23, %v4482_v23 }
 0x5cf   : > { %v3886_v4 = vpop.permute.xlu1 %3885  ;;  %v3900_v61 = vpop.permute.xlu2 %3899 }
 0x5d0   : > { %3980 = vst.msk [vmem:[#allocation5 + $0x4] sm:$0xf] %vm1616_vm8, %v3886_v4  ;;  %v4483_v4 = vld [vmem:[#allocation4 + $0x142] sm:$0xff] }
 0x5d1   : > { %3987 = vst.msk [vmem:[#allocation5 + $0x20] sm:$0xf] %vm1616_vm8, %v3900_v61  ;;  %v5336_v61 = vld [vmem:[%s7741_s5] sm:$0xff] }
 0x5d3   : > { %4114 = vrot.lane.b32.xlu0 %v4047_v63, %s5420_s16  ;;  %v4515_v63 = vpack.c.bf16 %v4483_v4, %v4483_v4 }
 0x5d5   : > { %4336 = vrot.lane.b32.xlu1 %v7094_v29, %s5421_s17  ;;  %4112 = vrot.lane.b32.xlu2 %v4046_v44, %s5420_s16  ;;  %v3890_v51 = vpop.permute.xlu0 %3889 }
 0x5d6   : > { %3982 = vst.msk [vmem:[#allocation5 + $0xc] sm:$0xf] %vm1616_vm8, %v3890_v51  ;;  %v4019_v51 = vld [vmem:[#allocation4 + $0x80] sm:$0xff] }
 0x5d7   : > { %v3892_v21 = vpop.permute.xlu1 %3891  ;;  %v3906_v52 = vpop.permute.xlu2 %3905 }
 0x5d8   : > { %3983 = vst.msk [vmem:[#allocation5 + $0x10] sm:$0xf] %vm1616_vm8, %v3892_v21 }
 0x5d9   : > { %3990 = vst.msk [vmem:[#allocation5 + $0x2c] sm:$0xf] %vm1616_vm8, %v3906_v52  ;;  %v4018_v52 = vld [vmem:[#allocation4 + $0x78] sm:$0xff] }
 0x5db   : > { %4560 = vrot.lane.b32.xlu0 %v4494_v56, %s5422_s18  ;;  %v4051_v56 = vpack.c.bf16 %v4019_v51, %v4019_v51 }
 0x5dd   : > { %4562 = vrot.lane.b32.xlu1 %v7214_v8, %s5422_s18  ;;  %4338 = vrot.lane.b32.xlu2 %v7090_v39, %s5421_s17  ;;  %v3896_v29 = vpop.permute.xlu0 %3895  ;;  %v4480_v8 = vld [vmem:[#allocation4 + $0x122] sm:$0xff] }
 0x5de   : > { %3985 = vst.msk [vmem:[#allocation5 + $0x18] sm:$0xf] %vm1616_vm8, %v3896_v29  ;;  %v4512_v45 = vpack.c.bf16 %v4480_v8, %v4480_v8  ;;  %v4050_v29 = vpack.c.bf16 %v4018_v52, %v4018_v52 }
 0x5df   : > { %v3898_v7 = vpop.permute.xlu1 %3897  ;;  %v3912_v49 = vpop.permute.xlu2 %3911 }
 0x5e0   : > { %3986 = vst.msk [vmem:[#allocation5 + $0x1c] sm:$0xf] %vm1616_vm8, %v3898_v7 }
 0x5e1   : > { %3993 = vst.msk [vmem:[#allocation5 + $0x38] sm:$0xf] %vm1616_vm8, %v3912_v49  ;;  %v4037_v49 = vld [vmem:[#allocation4 + $0x158] sm:$0xff] }
 0x5e3   : > { %4150 = vrot.lane.b32.xlu0 %v4065_v42, %s5420_s16 }
 0x5e5   : > { %4372 = vrot.lane.b32.xlu1 %v7156_v35, %s5421_s17  ;;  %4148 = vrot.lane.b32.xlu2 %v4064_v28, %s5420_s16  ;;  %v3902_v39 = vpop.permute.xlu0 %3901  ;;  %v4036_v28 = vld [vmem:[#allocation4 + $0x150] sm:$0xff] }
 0x5e6   : > { %3988 = vst.msk [vmem:[#allocation5 + $0x24] sm:$0xf] %vm1616_vm8, %v3902_v39  ;;  %v4069_v39 = vpack.c.bf16 %v4037_v49, %v4037_v49  ;;  %v4068_v8 = vpack.c.bf16 %v4036_v28, %v4036_v28 }
 0x5e7   : > { %v3904_v41 = vpop.permute.xlu1 %3903  ;;  %v3918_v48 = vpop.permute.xlu2 %3917 }
 0x5e8   : > { %3989 = vst.msk [vmem:[#allocation5 + $0x28] sm:$0xf] %vm1616_vm8, %v3904_v41 }
 0x5e9   : > { %3996 = vst.msk [vmem:[#allocation5 + $0x44] sm:$0xf] %vm1616_vm8, %v3918_v48 }
 0x5eb   : > { %4596 = vrot.lane.b32.xlu0 %v4512_v45, %s5422_s18  ;;  %v4485_v45 = vld [vmem:[#allocation4 + $0x15a] sm:$0xff] }
 0x5ed   : > { %4598 = vrot.lane.b32.xlu1 %v7278_v60, %s5422_s18  ;;  %4374 = vrot.lane.b32.xlu2 %v7154_v30, %s5421_s17  ;;  %v3908_v35 = vpop.permute.xlu0 %3907  ;;  %v4724_v60 = vld [vmem:[%s7741_s5 + $0x20] sm:$0xf] }
 0x5ee   : > { %3991 = vst.msk [vmem:[#allocation5 + $0x30] sm:$0xf] %vm1616_vm8, %v3908_v35  ;;  %v4826_v20 = vunpack.c.l.b16 %v4724_v60  ;;  %v4261_v35 = vld [vmem:[#allocation4 + $0x159] sm:$0xff]  ;;  %v4244_v60 = vld [vmem:[#allocation4 + $0x91] sm:$0xff] }
 0x5ef   : > { %v3910_v27 = vpop.permute.xlu1 %3909  ;;  %v3924_v1 = vpop.permute.xlu2 %3923 }
 0x5f0   : > { %3992 = vst.msk [vmem:[#allocation5 + $0x34] sm:$0xf] %vm1616_vm8, %v3910_v27  ;;  %v4831_v2 = vpack.c.b16 %v4826_v20, %v4826_v20  ;;  %v4517_v27 = vpack.c.bf16 %v4485_v45, %v4485_v45  ;;  %v4053_v20 = vpack.c.bf16 %v4021_v11, %v4021_v11  ;;  %v4264_v11 = vld [vmem:[#allocation4 + $0x181] sm:$0xff] }
 0x5f1   : > { %3999 = vst.msk [vmem:[#allocation5 + $0x50] sm:$0xf] %vm1616_vm8, %v3924_v1 }
 0x5f2   : > { %v4885_v37 = vsel %vm2526_vm11, %v4831_v2, 0 }
 0x5f3   : > { %4118 = vrot.lane.b32.xlu0 %v4049_v53, %s5420_s16  ;;  %5345 = vmatpush.bf16.msra.mxu3 %v4885_v37 }
 0x5f4   : > { %4890 = vmatpush.bf16.msra.mxu1 %v4885_v37 }
 0x5f5   : > { %4340 = vrot.lane.b32.xlu1 %v7092_v46, %s5421_s17  ;;  %4116 = vrot.lane.b32.xlu2 %v4048_v50, %s5420_s16  ;;  %v3914_v30 = vpop.permute.xlu0 %3913  ;;  %v5339_v46 = vld [vmem:[%s7741_s5 + $0x18] sm:$0xff] }
 0x5f6   : > { %3994 = vst.msk [vmem:[#allocation5 + $0x3c] sm:$0xf] %vm1616_vm8, %v3914_v30  ;;  %v4020_v30 = vld [vmem:[#allocation4 + $0x90] sm:$0xff] }
 0x5f7   : > { %v3916_v0 = vpop.permute.xlu1 %3915  ;;  %v3930_v55 = vpop.permute.xlu2 %3929  ;;  %5346 = vmatpush.bf16.msra.mxu3 %v5339_v46 }
 0x5f8   : > { %3995 = vst.msk [vmem:[#allocation5 + $0x40] sm:$0xf] %vm1616_vm8, %v3916_v0  ;;  %4891 = vmatpush.bf16.msra.mxu1 %v5339_v46  ;;  %v4276_v0 = vpack.c.bf16 %v4244_v60, %v4244_v60  ;;  %v4296_v60 = vpack.c.bf16 %v4264_v11, %v4264_v11 }
 0x5f9   : > { %4002 = vst.msk [vmem:[#allocation5 + $0x5c] sm:$0xf] %vm1616_vm8, %v3930_v55  ;;  %v4052_v55 = vpack.c.bf16 %v4020_v30, %v4020_v30 }
 0x5fb   : > { %4564 = vrot.lane.b32.xlu0 %v7212_v43, %s5422_s18  ;;  %v5338_v43 = vld [vmem:[%s7741_s5 + $0x10] sm:$0xff] }
 0x5fc   : > { %5347 = vmatpush.bf16.msra.mxu3 %v5338_v43  ;;  %4892 = vmatpush.bf16.msra.mxu1 %v5338_v43  ;;  %v4038_v43 = vld [vmem:[#allocation4 + $0x168] sm:$0xff] }
 0x5fd   : > { %4566 = vrot.lane.b32.xlu1 %v4497_v59, %s5422_s18  ;;  %4342 = vrot.lane.b32.xlu2 %v7109_v18, %s5421_s17  ;;  %v3920_v47 = vpop.permute.xlu0 %3919  ;;  %v5337_v18 = vld [vmem:[%s7741_s5 + $0x8] sm:$0xff] }
 0x5fe   : > { %3997 = vst.msk [vmem:[#allocation5 + $0x48] sm:$0xf] %vm1616_vm8, %v3920_v47  ;;  %v4245_v47 = vld [vmem:[#allocation4 + $0x99] sm:$0xff] }
 0x5ff   : > { %v3922_v9 = vpop.permute.xlu1 %3921  ;;  %v4141_v26 = vpop.permute.xlu2 %4140 }
 0x600   : > { %3998 = vst.msk [vmem:[#allocation5 + $0x4c] sm:$0xf] %vm1616_vm8, %v3922_v9  ;;  %5348 = vmatpush.bf16.msra.mxu3 %v5337_v18  ;;  %4893 = vmatpush.bf16.msra.mxu1 %v5337_v18  ;;  %v4277_v9 = vpack.c.bf16 %v4245_v47, %v4245_v47 }
 0x601   : > { %4220 = vst.msk [vmem:[#allocation5 + $0x40] sm:$0xf] %vm1842_vm9, %v4141_v26 }
 0x603   : > { %4154 = vrot.lane.b32.xlu0 %v4067_v34, %s5420_s16  ;;  %v4070_v34 = vpack.c.bf16 %v4038_v43, %v4038_v43  ;;  %v4248_v43 = vld [vmem:[#allocation4 + $0xc1] sm:$0xff] }
 0x604   : > { %5349 = vmatpush.bf16.msra.mxu3 %v5336_v61  ;;  %4894 = vmatpush.bf16.msra.mxu1 %v5336_v61 }
 0x605   : > { %4376 = vrot.lane.b32.xlu1 %v4290_v5, %s5421_s17  ;;  %4152 = vrot.lane.b32.xlu2 %v4066_v38, %s5420_s16  ;;  %v3926_v12 = vpop.permute.xlu0 %3925 }
 0x606   : > { %4000 = vst.msk [vmem:[#allocation5 + $0x54] sm:$0xf] %vm1616_vm8, %v3926_v12  ;;  %v4039_v12 = vld [vmem:[#allocation4 + $0x170] sm:$0xff] }
 0x607   : > { %v3928_v36 = vpop.permute.xlu1 %3927  ;;  %v4367_v15 = vpop.permute.xlu2 %4366  ;;  %v4071_v23 = vpack.c.bf16 %v4039_v12, %v4039_v12 }
 0x608   : > { %4001 = vst.msk [vmem:[#allocation5 + $0x58] sm:$0xf] %vm1616_vm8, %v3928_v36 }
 0x60b   : > { %4600 = vrot.lane.b32.xlu0 %v4514_v19, %s5422_s18  ;;  %v4022_v19 = vld [vmem:[#allocation4 + $0xa8] sm:$0xff] }
 0x60c   : > { %v4054_v51 = vpack.c.bf16 %v4022_v19, %v4022_v19  ;;  %v4266_v19 = vld [vmem:[#allocation4 + $0x199] sm:$0xff] }
 0x60d   : > { %4602 = vrot.lane.b32.xlu1 %v4515_v63, %s5422_s18  ;;  %4378 = vrot.lane.b32.xlu2 %v7169_v13, %s5421_s17  ;;  %v3932_v44 = vpop.permute.xlu0 %3931  ;;  %v4486_v63 = vld [vmem:[#allocation4 + $0x16a] sm:$0xff] }
 0x60e   : > { %4003 = vst.msk [vmem:[#allocation5 + $0x60] sm:$0xf] %vm1616_vm8, %v3932_v44 }
 0x60f   : > { %v3934_v31 = vpop.permute.xlu1 %3933  ;;  %v4109_v21 = vpop.permute.xlu2 %4108 }
 0x610   : > { %4004 = vst.msk [vmem:[#allocation5 + $0x64] sm:$0xf] %vm1616_vm8, %v3934_v31  ;;  %v4246_v31 = vld [vmem:[#allocation4 + $0xa9] sm:$0xff] }
 0x611   : > { %4204 = vst.msk [vmem:[#allocation5] sm:$0xf] %vm1842_vm9, %v4109_v21 }
 0x613   : > { %4122 = vrot.lane.b32.xlu0 %v4051_v56, %s5420_s16 }
 0x615   : > { %4344 = vrot.lane.b32.xlu1 %v7105_v58, %s5421_s17  ;;  %4120 = vrot.lane.b32.xlu2 %v4050_v29, %s5420_s16  ;;  %v4143_v13 = vpop.permute.xlu0 %4142  ;;  %v4247_v29 = vld [vmem:[#allocation4 + $0xb1] sm:$0xff] }
 0x616   : > { %4221 = vst.msk [vmem:[#allocation5 + $0x44] sm:$0xf] %vm1842_vm9, %v4143_v13  ;;  %v4023_v13 = vld [vmem:[#allocation4 + $0xb0] sm:$0xff] }
 0x617   : > { %v4365_v57 = vpop.permute.xlu1 %4364  ;;  %v4335_v7 = vpop.permute.xlu2 %4334  ;;  %4445 = vst.msk [vmem:[#allocation5 + $0x44] sm:$0xf] %vm2067_vm10, %v4367_v15  ;;  %v4487_v15 = vld [vmem:[#allocation4 + $0x172] sm:$0xff] }
 0x618   : > { %4444 = vst.msk [vmem:[#allocation5 + $0x40] sm:$0xf] %vm2067_vm10, %v4365_v57  ;;  %v4519_v44 = vpack.c.bf16 %v4487_v15, %v4487_v15  ;;  %v4278_v57 = vpack.c.bf16 %v4246_v31, %v4246_v31 }
 0x61b   : > { %4568 = vrot.lane.b32.xlu0 %v7227_v25, %s5422_s18 }
 0x61d   : > { %4570 = vrot.lane.b32.xlu1 %v7225_v3, %s5422_s18  ;;  %4346 = vrot.lane.b32.xlu2 %v7107_v22, %s5421_s17  ;;  %v4589_v58 = vpop.permute.xlu0 %4588  ;;  %v4484_v3 = vld [vmem:[#allocation4 + $0x152] sm:$0xff] }
 0x61e   : > { %4668 = vst.msk [vmem:[#allocation5 + $0x40] sm:$0xf] %vm2292_vm12, %v4589_v58  ;;  %v4516_v10 = vpack.c.bf16 %v4484_v3, %v4484_v3  ;;  %v4055_v58 = vpack.c.bf16 %v4023_v13, %v4023_v13 }
 0x61f   : > { %v4591_v17 = vpop.permute.xlu1 %4590  ;;  %v4145_v42 = vpop.permute.xlu2 %4144 }
 0x620   : > { %4669 = vst.msk [vmem:[#allocation5 + $0x44] sm:$0xf] %vm2292_vm12, %v4591_v17  ;;  %v4471_v17 = vld [vmem:[#allocation4 + $0xb2] sm:$0xff] }
 0x621   : > { %4222 = vst.msk [vmem:[#allocation5 + $0x48] sm:$0xf] %vm1842_vm9, %v4145_v42 }
 0x623   : > { %4158 = vrot.lane.b32.xlu0 %v4069_v39, %s5420_s16  ;;  %v4503_v39 = vpack.c.bf16 %v4471_v17, %v4471_v17 }
 0x625   : > { %4380 = vrot.lane.b32.xlu1 %v7167_v14, %s5421_s17  ;;  %4156 = vrot.lane.b32.xlu2 %v4068_v8, %s5420_s16  ;;  %v4111_v22 = vpop.permute.xlu0 %4110  ;;  %v4293_v14 = vpack.c.bf16 %v4261_v35, %v4261_v35 }
 0x626   : > { %4205 = vst.msk [vmem:[#allocation5 + $0x4] sm:$0xf] %vm1842_vm9, %v4111_v22  ;;  %v4040_v22 = vld [vmem:[#allocation4 + $0x180] sm:$0xff] }
 0x627   : > { %v4333_v25 = vpop.permute.xlu1 %4332  ;;  %v4371_v41 = vpop.permute.xlu2 %4370  ;;  %4429 = vst.msk [vmem:[#allocation5 + $0x4] sm:$0xf] %vm2067_vm10, %v4335_v7  ;;  %v5328_v48 = vld [vmem:[#allocation5 + $0x40] sm:$0xff]  ;;  %v4279_v7 = vpack.c.bf16 %v4247_v29, %v4247_v29  ;;  %v4072_v45 = vpack.c.bf16 %v4040_v22, %v4040_v22  ;;  %v4267_v29 = vld [vmem:[#allocation4 + $0x1a1] sm:$0xff]  ;;  %v4250_v22 = vld [vmem:[#allocation4 + $0xd9] sm:$0xff] }
 0x628   : > { %4428 = vst.msk [vmem:[#allocation5] sm:$0xf] %vm2067_vm10, %v4333_v25  ;;  %5288 = vmatmul.msk.bf16.vlgmr.msra.gmra.mxu3 %vm2477_vm13, %v5328_v48  ;;  %v4041_v48 = vld [vmem:[#allocation4 + $0x188] sm:$0xff]  ;;  %v4299_v17 = vpack.c.bf16 %v4267_v29, %v4267_v29 }
 0x629   : > { %v4073_v35 = vpack.c.bf16 %v4041_v48, %v4041_v48 }
 0x62b   : > { %4604 = vrot.lane.b32.xlu0 %v4516_v10, %s5422_s18 }
 0x62d   : > { %4606 = vrot.lane.b32.xlu1 %v4517_v27, %s5422_s18  ;;  %4382 = vrot.lane.b32.xlu2 %v4293_v14, %s5421_s17  ;;  %v4557_v1 = vpop.permute.xlu0 %4556 }
 0x62e   : > { %4652 = vst.msk [vmem:[#allocation5] sm:$0xf] %vm2292_vm12, %v4557_v1  ;;  %v4488_v1 = vld [vmem:[#allocation4 + $0x182] sm:$0xff] }
 0x62f   : > { %v4559_v53 = vpop.permute.xlu1 %4558  ;;  %v4113_v50 = vpop.permute.xlu2 %4112 }
 0x630   : > { %4653 = vst.msk [vmem:[#allocation5 + $0x4] sm:$0xf] %vm2292_vm12, %v4559_v53 }
 0x631   : > { %4206 = vst.msk [vmem:[#allocation5 + $0x8] sm:$0xf] %vm1842_vm9, %v4113_v50  ;;  %v4520_v50 = vpack.c.bf16 %v4488_v1, %v4488_v1  ;;  %v4251_v1 = vld [vmem:[#allocation4 + $0xe1] sm:$0xff] }
 0x633   : > { %4126 = vrot.lane.b32.xlu0 %v4053_v20, %s5420_s16  ;;  %v4024_v20 = vld [vmem:[#allocation4 + $0xc0] sm:$0xff] }
 0x635   : > { %4348 = vrot.lane.b32.xlu1 %v4276_v0, %s5421_s17  ;;  %4124 = vrot.lane.b32.xlu2 %v4052_v55, %s5420_s16  ;;  %v4147_v2 = vpop.permute.xlu0 %4146 }
 0x636   : > { %4223 = vst.msk [vmem:[#allocation5 + $0x4c] sm:$0xf] %vm1842_vm9, %v4147_v2 }
 0x637   : > { %v4369_v37 = vpop.permute.xlu1 %4368  ;;  %v4339_v46 = vpop.permute.xlu2 %4338  ;;  %4447 = vst.msk [vmem:[#allocation5 + $0x4c] sm:$0xf] %vm2067_vm10, %v4371_v41  ;;  %v5320_v59 = vld [vmem:[#allocation5] sm:$0xff] }
 0x638   : > { %4446 = vst.msk [vmem:[#allocation5 + $0x48] sm:$0xf] %vm2067_vm10, %v4369_v37  ;;  %5280 = vmatmul.msk.bf16.vlgmr.msra.gmra.mxu1 %vm2477_vm13, %v5320_v59  ;;  %v4489_v37 = vld [vmem:[#allocation4 + $0x18a] sm:$0xff]  ;;  %v4057_v59 = vpack.c.bf16 %v4025_v62, %v4025_v62 }
 0x639   : > { %v4521_v47 = vpack.c.bf16 %v4489_v37, %v4489_v37 }
 0x63b   : > { %4572 = vrot.lane.b32.xlu0 %v4500_v16, %s5422_s18 }
 0x63d   : > { %4574 = vrot.lane.b32.xlu1 %v7240_v24, %s5422_s18  ;;  %4350 = vrot.lane.b32.xlu2 %v4277_v9, %s5421_s17  ;;  %v4593_v26 = vpop.permute.xlu0 %4592  ;;  %v4249_v9 = vld [vmem:[#allocation4 + $0xc9] sm:$0xff] }
 0x63e   : > { %4670 = vst.msk [vmem:[#allocation5 + $0x48] sm:$0xf] %vm2292_vm12, %v4593_v26 }
 0x63f   : > { %v4595_v32 = vpop.permute.xlu1 %4594  ;;  %v4149_v33 = vpop.permute.xlu2 %4148 }
 0x640   : > { %4671 = vst.msk [vmem:[#allocation5 + $0x4c] sm:$0xf] %vm2292_vm12, %v4595_v32 }
 0x641   : > { %4224 = vst.msk [vmem:[#allocation5 + $0x50] sm:$0xf] %vm1842_vm9, %v4149_v33  ;;  %v4472_v33 = vld [vmem:[#allocation4 + $0xc2] sm:$0xff] }
 0x643   : > { %3937 = vrot.lane.b32.xlu0 %v4517_v27, %s5419_s15 }
 0x645   : > { %4160 = vrot.lane.b32.xlu1 %v4070_v34, %s5420_s16  ;;  %3935 = vrot.lane.b32.xlu2 %v4516_v10, %s5419_s15  ;;  %v4115_v24 = vpop.permute.xlu0 %4114  ;;  %v4265_v10 = vld [vmem:[#allocation4 + $0x189] sm:$0xff]  ;;  %v4281_v34 = vpack.c.bf16 %v4249_v9, %v4249_v9 }
 0x646   : > { %4207 = vst.msk [vmem:[#allocation5 + $0xc] sm:$0xf] %vm1842_vm9, %v4115_v24  ;;  %v4297_v53 = vpack.c.bf16 %v4265_v10, %v4265_v10  ;;  %v4504_v24 = vpack.c.bf16 %v4472_v33, %v4472_v33 }
 0x647   : > { %v4337_v18 = vpop.permute.xlu1 %4336  ;;  %v4375_v5 = vpop.permute.xlu2 %4374  ;;  %4431 = vst.msk [vmem:[#allocation5 + $0xc] sm:$0xf] %vm2067_vm10, %v4339_v46  ;;  %v5329_v38 = vld [vmem:[#allocation5 + $0x48] sm:$0xff]  ;;  %v4056_v46 = vpack.c.bf16 %v4024_v20, %v4024_v20 }
 0x648   : > { %4430 = vst.msk [vmem:[#allocation5 + $0x8] sm:$0xf] %vm2067_vm10, %v4337_v18  ;;  %5289 = vmatmul.msk.bf16.gmra.mxu3 %vm2477_vm13, %v5329_v38  ;;  %v4280_v18 = vpack.c.bf16 %v4248_v43, %v4248_v43 }
 0x64b   : > { %4384 = vrot.lane.b32.xlu0 %v7182_v6, %s5421_s17  ;;  %v4518_v6 = vpack.c.bf16 %v4486_v63, %v4486_v63  ;;  %v4042_v63 = vld [vmem:[#allocation4 + $0x198] sm:$0xff] }
 0x64c   : > { %v4074_v31 = vpack.c.bf16 %v4042_v63, %v4042_v63 }
 0x64d   : > { %4386 = vrot.lane.b32.xlu1 %v7180_v54, %s5421_s17  ;;  %4162 = vrot.lane.b32.xlu2 %v4071_v23, %s5420_s16  ;;  %v4561_v36 = vpop.permute.xlu0 %4560 }
 0x64e   : > { %4654 = vst.msk [vmem:[#allocation5 + $0x8] sm:$0xf] %vm2292_vm12, %v4561_v36  ;;  %v4473_v36 = vld [vmem:[#allocation4 + $0xca] sm:$0xff] }
 0x64f   : > { %v4563_v4 = vpop.permute.xlu1 %4562  ;;  %v4117_v61 = vpop.permute.xlu2 %4116  ;;  %v4505_v15 = vpack.c.bf16 %v4473_v36, %v4473_v36 }
 0x650   : > { %4655 = vst.msk [vmem:[#allocation5 + $0xc] sm:$0xf] %vm2292_vm12, %v4563_v4  ;;  %v4043_v4 = vld [vmem:[#allocation4 + $0x1a0] sm:$0xff] }
 0x651   : > { %4208 = vst.msk [vmem:[#allocation5 + $0x10] sm:$0xf] %vm1842_vm9, %v4117_v61 }
 0x653   : > { %4610 = vrot.lane.b32.xlu0 %v4519_v44, %s5422_s18 }
 0x655   : > { %4128 = vrot.lane.b32.xlu1 %v4054_v51, %s5420_s16  ;;  %4608 = vrot.lane.b32.xlu2 %v4518_v6, %s5422_s18  ;;  %v4151_v54 = vpop.permute.xlu0 %4150 }
 0x656   : > { %4225 = vst.msk [vmem:[#allocation5 + $0x54] sm:$0xf] %vm1842_vm9, %v4151_v54  ;;  %v4298_v54 = vpack.c.bf16 %v4266_v19, %v4266_v19 }
 0x657   : > { %v4373_v21 = vpop.permute.xlu1 %4372  ;;  %v4343_v52 = vpop.permute.xlu2 %4342  ;;  %4449 = vst.msk [vmem:[#allocation5 + $0x54] sm:$0xf] %vm2067_vm10, %v4375_v5  ;;  %v5321_v56 = vld [vmem:[#allocation5 + $0x8] sm:$0xff] }
 0x658   : > { %4448 = vst.msk [vmem:[#allocation5 + $0x50] sm:$0xf] %vm2067_vm10, %v4373_v21  ;;  %5281 = vmatmul.msk.bf16.gmra.mxu1 %vm2477_vm13, %v5321_v56  ;;  %v4490_v21 = vld [vmem:[#allocation4 + $0x19a] sm:$0xff]  ;;  %v4491_v56 = vld [vmem:[#allocation4 + $0x1a2] sm:$0xff] }
 0x65b   : > { %4352 = vrot.lane.b32.xlu0 %v4278_v57, %s5421_s17 }
 0x65d   : > { %4354 = vrot.lane.b32.xlu1 %v4279_v7, %s5421_s17  ;;  %4130 = vrot.lane.b32.xlu2 %v4055_v58, %s5420_s16  ;;  %v4597_v49 = vpop.permute.xlu0 %4596  ;;  %v4522_v58 = vpack.c.bf16 %v4490_v21, %v4490_v21  ;;  %v5378_v21 = vld [vmem:[%s5628_s30 + $0x90] sm:$0xff] }
 0x65e   : > { %4672 = vst.msk [vmem:[#allocation5 + $0x50] sm:$0xf] %vm2292_vm12, %v4597_v49  ;;  %v4523_v49 = vpack.c.bf16 %v4491_v56, %v4491_v56 }
 0x65f   : > { %v4599_v42 = vpop.permute.xlu1 %4598  ;;  %v4153_v28 = vpop.permute.xlu2 %4152 }
 0x660   : > { %4673 = vst.msk [vmem:[#allocation5 + $0x54] sm:$0xf] %vm2292_vm12, %v4599_v42 }
 0x661   : > { %4226 = vst.msk [vmem:[#allocation5 + $0x58] sm:$0xf] %vm1842_vm9, %v4153_v28  ;;  %v4027_v28 = vld [vmem:[#allocation4 + $0xe0] sm:$0xff] }
 0x663   : > { %4578 = vrot.lane.b32.xlu0 %v4503_v39, %s5422_s18 }
 0x665   : > { %3939 = vrot.lane.b32.xlu1 %v4518_v6, %s5419_s15  ;;  %4576 = vrot.lane.b32.xlu2 %v7238_v40, %s5422_s18  ;;  %v4119_v8 = vpop.permute.xlu0 %4118  ;;  %v4075_v6 = vpack.c.bf16 %v4043_v4, %v4043_v4 }
 0x666   : > { %4209 = vst.msk [vmem:[#allocation5 + $0x14] sm:$0xf] %vm1842_vm9, %v4119_v8 }
 0x667   : > { %v4341_v3 = vpop.permute.xlu1 %4340  ;;  %v4379_v25 = vpop.permute.xlu2 %4378  ;;  %4433 = vst.msk [vmem:[#allocation5 + $0x14] sm:$0xf] %vm2067_vm10, %v4343_v52  ;;  %v5330_v41 = vld [vmem:[#allocation5 + $0x50] sm:$0xff] }
 0x668   : > { %4432 = vst.msk [vmem:[#allocation5 + $0x10] sm:$0xf] %vm2067_vm10, %v4341_v3  ;;  %5290 = vmatmul.msk.bf16.gmra.mxu3 %vm2477_vm13, %v5330_v41  ;;  %v4026_v3 = vld [vmem:[#allocation4 + $0xd8] sm:$0xff]  ;;  %v4282_v41 = vpack.c.bf16 %v4250_v22, %v4250_v22 }
 0x669   : > { %v4058_v48 = vpack.c.bf16 %v4026_v3, %v4026_v3 }
 0x66b   : > { %4164 = vrot.lane.b32.xlu0 %v4072_v45, %s5420_s16 }
 0x66d   : > { %4166 = vrot.lane.b32.xlu1 %v4073_v35, %s5420_s16  ;;  %3941 = vrot.lane.b32.xlu2 %v4519_v44, %s5419_s15  ;;  %v4565_v40 = vpop.permute.xlu0 %4564  ;;  %v4474_v35 = vld [vmem:[#allocation4 + $0xda] sm:$0xff] }
 0x66e   : > { %4656 = vst.msk [vmem:[#allocation5 + $0x10] sm:$0xf] %vm2292_vm12, %v4565_v40  ;;  %v4506_v11 = vpack.c.bf16 %v4474_v35, %v4474_v35  ;;  %v5381_v35 = vld [vmem:[%s5628_s30 + $0x18] sm:$0xff] }
 0x66f   : > { %v4567_v27 = vpop.permute.xlu1 %4566  ;;  %v4121_v14 = vpop.permute.xlu2 %4120 }
 0x670   : > { %4657 = vst.msk [vmem:[#allocation5 + $0x14] sm:$0xf] %vm2292_vm12, %v4567_v27 }
 0x671   : > { %4210 = vst.msk [vmem:[#allocation5 + $0x18] sm:$0xf] %vm1842_vm9, %v4121_v14  ;;  %v4475_v14 = vld [vmem:[#allocation4 + $0xe2] sm:$0xff] }
 0x673   : > { %4390 = vrot.lane.b32.xlu0 %v4297_v53, %s5421_s17  ;;  %v7543_v53 = vld [vmem:[%s7742_s6] ss:$0 sm:$0xff] }
 0x675   : > { %4612 = vrot.lane.b32.xlu1 %v4520_v50, %s5422_s18  ;;  %4388 = vrot.lane.b32.xlu2 %v4296_v60, %s5421_s17  ;;  %v4155_v30 = vpop.permute.xlu0 %4154  ;;  %v4283_v60 = vpack.c.bf16 %v4251_v1, %v4251_v1 }
 0x676   : > { %4227 = vst.msk [vmem:[#allocation5 + $0x5c] sm:$0xf] %vm1842_vm9, %v4155_v30 }
 0x677   : > { %v4377_v0 = vpop.permute.xlu1 %4376  ;;  %v4347_v55 = vpop.permute.xlu2 %4346  ;;  %4451 = vst.msk [vmem:[#allocation5 + $0x5c] sm:$0xf] %vm2067_vm10, %v4379_v25  ;;  %v5322_v2 = vld [vmem:[#allocation5 + $0x10] sm:$0xff]  ;;  %v4059_v25 = vpack.c.bf16 %v4027_v28, %v4027_v28 }
 0x678   : > { %4450 = vst.msk [vmem:[#allocation5 + $0x58] sm:$0xf] %vm2067_vm10, %v4377_v0  ;;  %5282 = vmatmul.msk.bf16.gmra.mxu1 %vm2477_vm13, %v5322_v2  ;;  %v5374_v2 = vld [vmem:[%s5628_s30 + $0x80] sm:$0xff] }
 0x67b   : > { %4132 = vrot.lane.b32.xlu0 %v4056_v46, %s5420_s16 }
 0x67d   : > { %4134 = vrot.lane.b32.xlu1 %v4057_v59, %s5420_s16  ;;  %4614 = vrot.lane.b32.xlu2 %v4521_v47, %s5422_s18  ;;  %v4601_v16 = vpop.permute.xlu0 %4600 }
 0x67e   : > { %4674 = vst.msk [vmem:[#allocation5 + $0x58] sm:$0xf] %vm2292_vm12, %v4601_v16 }
 0x67f   : > { %v4603_v26 = vpop.permute.xlu1 %4602  ;;  %v4157_v32 = vpop.permute.xlu2 %4156 }
 0x680   : > { %4675 = vst.msk [vmem:[#allocation5 + $0x5c] sm:$0xf] %vm2292_vm12, %v4603_v26  ;;  %v5375_v26 = vld [vmem:[%s5628_s30 + $0x88] sm:$0xff] }
 0x681   : > { %4228 = vst.msk [vmem:[#allocation5 + $0x60] sm:$0xf] %vm1842_vm9, %v4157_v32 }
 0x683   : > { %4358 = vrot.lane.b32.xlu0 %v4281_v34, %s5421_s17 }
 0x685   : > { %4580 = vrot.lane.b32.xlu1 %v4504_v24, %s5422_s18  ;;  %4356 = vrot.lane.b32.xlu2 %v4280_v18, %s5421_s17  ;;  %v4123_v5 = vpop.permute.xlu0 %4122  ;;  %v5376_v24 = vld [vmem:[%s5628_s30] sm:$0xff] }
 0x686   : > { %4211 = vst.msk [vmem:[#allocation5 + $0x1c] sm:$0xf] %vm1842_vm9, %v4123_v5 }
 0x687   : > { %v4345_v38 = vpop.permute.xlu1 %4344  ;;  %v4383_v12 = vpop.permute.xlu2 %4382  ;;  %4435 = vst.msk [vmem:[#allocation5 + $0x1c] sm:$0xf] %vm2067_vm10, %v4347_v55  ;;  %v5331_v23 = vld [vmem:[#allocation5 + $0x58] sm:$0xff] }
 0x688   : > { %4434 = vst.msk [vmem:[#allocation5 + $0x18] sm:$0xf] %vm2067_vm10, %v4345_v38  ;;  %5291 = vmatmul.msk.bf16.gmra.mxu3 %vm2477_vm13, %v5331_v23 }
 0x68b   : > { %3943 = vrot.lane.b32.xlu0 %v4520_v50, %s5419_s15  ;;  %v4507_v50 = vpack.c.bf16 %v4475_v14, %v4475_v14 }
 0x68d   : > { %3945 = vrot.lane.b32.xlu1 %v4521_v47, %s5419_s15  ;;  %4582 = vrot.lane.b32.xlu2 %v4505_v15, %s5422_s18  ;;  %v4569_v61 = vpop.permute.xlu0 %4568  ;;  %v5377_v15 = vld [vmem:[%s5628_s30 + $0x8] sm:$0xff] }
 0x68e   : > { %4658 = vst.msk [vmem:[#allocation5 + $0x18] sm:$0xf] %vm2292_vm12, %v4569_v61 }
 0x68f   : > { %v4571_v44 = vpop.permute.xlu1 %4570  ;;  %v4125_v51 = vpop.permute.xlu2 %4124 }
 0x690   : > { %4659 = vst.msk [vmem:[#allocation5 + $0x1c] sm:$0xf] %vm2292_vm12, %v4571_v44 }
 0x691   : > { %4212 = vst.msk [vmem:[#allocation5 + $0x20] sm:$0xf] %vm1842_vm9, %v4125_v51 }
 0x693   : > { %4170 = vrot.lane.b32.xlu0 %v4075_v6, %s5420_s16 }
 0x695   : > { %4392 = vrot.lane.b32.xlu1 %v4298_v54, %s5421_s17  ;;  %4168 = vrot.lane.b32.xlu2 %v4074_v31, %s5420_s16  ;;  %v4159_v52 = vpop.permute.xlu0 %4158 }
 0x696   : > { %4229 = vst.msk [vmem:[#allocation5 + $0x64] sm:$0xf] %vm1842_vm9, %v4159_v52 }
 0x697   : > { %v4381_v13 = vpop.permute.xlu1 %4380  ;;  %v4351_v57 = vpop.permute.xlu2 %4350  ;;  %4453 = vst.msk [vmem:[#allocation5 + $0x64] sm:$0xf] %vm2067_vm10, %v4383_v12  ;;  %v5323_v7 = vld [vmem:[#allocation5 + $0x18] sm:$0xff] }
 0x698   : > { %4452 = vst.msk [vmem:[#allocation5 + $0x60] sm:$0xf] %vm2067_vm10, %v4381_v13  ;;  %5283 = vmatmul.msk.bf16.gmra.mxu1 %vm2477_vm13, %v5323_v7 }
 0x69b   : > { %4616 = vrot.lane.b32.xlu0 %v4522_v58, %s5422_s18 }
 0x69d   : > { %4618 = vrot.lane.b32.xlu1 %v4523_v49, %s5422_s18  ;;  %4394 = vrot.lane.b32.xlu2 %v4299_v17, %s5421_s17  ;;  %v4605_v42 = vpop.permute.xlu0 %4604  ;;  %v5379_v49 = vld [vmem:[%s5628_s30 + $0x98] sm:$0xff] }
 0x69e   : > { %4676 = vst.msk [vmem:[#allocation5 + $0x60] sm:$0xf] %vm2292_vm12, %v4605_v42 }
 0x69f   : > { %v4607_v39 = vpop.permute.xlu1 %4606  ;;  %v3936_v8 = vpop.permute.xlu2 %3935 }
 0x6a0   : > { %4677 = vst.msk [vmem:[#allocation5 + $0x64] sm:$0xf] %vm2292_vm12, %v4607_v39  ;;  %v5380_v39 = vld [vmem:[%s5628_s30 + $0x10] sm:$0xff] }
 0x6a1   : > { %4005 = vst.msk [vmem:[#allocation5 + $0x68] sm:$0xf] %vm1616_vm8, %v3936_v8 }
 0x6a3   : > { %4138 = vrot.lane.b32.xlu0 %v4059_v25, %s5420_s16 }
 0x6a5   : > { %4360 = vrot.lane.b32.xlu1 %v4282_v41, %s5421_s17  ;;  %4136 = vrot.lane.b32.xlu2 %v4058_v48, %s5420_s16  ;;  %v4127_v45 = vpop.permute.xlu0 %4126 }
 0x6a6   : > { %4213 = vst.msk [vmem:[#allocation5 + $0x24] sm:$0xf] %vm1842_vm9, %v4127_v45 }
 0x6a7   : > { %v4349_v40 = vpop.permute.xlu1 %4348  ;;  %v4163_v10 = vpop.permute.xlu2 %4162  ;;  %4437 = vst.msk [vmem:[#allocation5 + $0x24] sm:$0xf] %vm2067_vm10, %v4351_v57  ;;  %v5332_v27 = vld [vmem:[#allocation5 + $0x60] sm:$0xff] }
 0x6a8   : > { %4436 = vst.msk [vmem:[#allocation5 + $0x20] sm:$0xf] %vm2067_vm10, %v4349_v40  ;;  %5292 = vmatmul.msk.bf16.gmra.mxu3 %vm2477_vm13, %v5332_v27 }
 0x6ab   : > { %4584 = vrot.lane.b32.xlu0 %v4506_v11, %s5422_s18  ;;  %v4936_v30 = vpop.f32.mrf.mxu3 }
 0x6ac   : > { %v4937_v20 = vadd.f32 %v7543_v53, %v4936_v30  ;;  %v5382_v30 = vld [vmem:[%s5628_s30 + $0xa0] sm:$0xff] }
 0x6ad   : > { %4586 = vrot.lane.b32.xlu1 %v4507_v50, %s5422_s18  ;;  %4362 = vrot.lane.b32.xlu2 %v4283_v60, %s5421_s17  ;;  %v4573_v0 = vpop.permute.xlu0 %4572 }
 0x6ae   : > { %4660 = vst.msk [vmem:[#allocation5 + $0x20] sm:$0xf] %vm2292_vm12, %v4573_v0  ;;  %v4992_v62 = vadd.f32 %v5374_v2, %v4937_v20 }
 0x6af   : > { %v4575_v55 = vpop.permute.xlu1 %4574  ;;  %v4609_v37 = vpop.permute.xlu2 %4608 }
 0x6b0   : > { %4661 = vst.msk [vmem:[#allocation5 + $0x24] sm:$0xf] %vm2292_vm12, %v4575_v55 }
 0x6b1   : > { %5024 = vst.msk [vmem:[%s7554_s10 + $0x80] sm:$0xff] %vm348_vm0, %v4992_v62 }
 0x6b3   : > { %v4938_v46 = vpop.f32.mrf.mxu3 }
 0x6b4   : > { %v4939_v59 = vadd.f32 %v7543_v53, %v4938_v46 }
 0x6b5   : > { %v3938_v47 = vpop.permute.xlu0 %3937  ;;  %v4896_v16 = vpop.f32.mrf.mxu1 }
 0x6b6   : > { %4006 = vst.msk [vmem:[#allocation5 + $0x6c] sm:$0xf] %vm1616_vm8, %v3938_v47  ;;  %v4993_v32 = vadd.f32 %v5375_v26, %v4939_v59  ;;  %v4897_v43 = vadd.f32 %v7543_v53, %v4896_v16  ;;  %v5383_v47 = vld [vmem:[%s5628_s30 + $0xa8] sm:$0xff] }
 0x6b7   : > { %v4161_v9 = vpop.permute.xlu1 %4160  ;;  %v4131_v33 = vpop.permute.xlu2 %4130  ;;  %4231 = vst.msk [vmem:[#allocation5 + $0x6c] sm:$0xf] %vm1842_vm9, %v4163_v10  ;;  %v5324_v34 = vld [vmem:[#allocation5 + $0x20] sm:$0xff] }
 0x6b8   : > { %4230 = vst.msk [vmem:[#allocation5 + $0x68] sm:$0xf] %vm1842_vm9, %v4161_v9  ;;  %v4976_v18 = vadd.f32 %v5376_v24, %v4897_v43  ;;  %5284 = vmatmul.msk.bf16.gmra.mxu1 %vm2477_vm13, %v5324_v34 }
 0x6b9   : > { %5025 = vst.msk [vmem:[%s7554_s10 + $0x88] sm:$0xff] %vm348_vm0, %v4993_v32  ;;  %v5384_v32 = vld [vmem:[%s5628_s30 + $0x20] sm:$0xff] }
 0x6ba   : > { %4215 = vst.msk [vmem:[#allocation5 + $0x2c] sm:$0xf] %vm1842_vm9, %v4131_v33 }
 0x6bb   : > { %5008 = vst.msk [vmem:[%s7554_s10] sm:$0xff] %vm348_vm0, %v4976_v18 }
 0x6bd   : > { %v4385_v5 = vpop.permute.xlu0 %4384  ;;  %v4898_v38 = vpop.f32.mrf.mxu1 }
 0x6be   : > { %4454 = vst.msk [vmem:[#allocation5 + $0x68] sm:$0xf] %vm2067_vm10, %v4385_v5  ;;  %v4899_v36 = vadd.f32 %v7543_v53, %v4898_v38 }
 0x6bf   : > { %v4387_v12 = vpop.permute.xlu1 %4386  ;;  %v4577_v23 = vpop.permute.xlu2 %4576  ;;  %4678 = vst.msk [vmem:[#allocation5 + $0x68] sm:$0xf] %vm2292_vm12, %v4609_v37 }
 0x6c0   : > { %4455 = vst.msk [vmem:[#allocation5 + $0x6c] sm:$0xf] %vm2067_vm10, %v4387_v12  ;;  %v4977_v4 = vadd.f32 %v5377_v15, %v4899_v36  ;;  %v5385_v12 = vld [vmem:[%s5628_s30 + $0x28] sm:$0xff] }
 0x6c2   : > { %5009 = vst.msk [vmem:[%s7554_s10 + $0x8] sm:$0xff] %vm348_vm0, %v4977_v4 }
 0x6c5   : > { %v4611_v61 = vpop.permute.xlu0 %4610 }
 0x6c6   : > { %4679 = vst.msk [vmem:[#allocation5 + $0x6c] sm:$0xf] %vm2292_vm12, %v4611_v61 }
 0x6c7   : > { %v4129_v19 = vpop.permute.xlu1 %4128  ;;  %v3942_v63 = vpop.permute.xlu2 %3941 }
 0x6c8   : > { %4214 = vst.msk [vmem:[#allocation5 + $0x28] sm:$0xf] %vm1842_vm9, %v4129_v19 }
 0x6c9   : > { %4008 = vst.msk [vmem:[#allocation5 + $0x74] sm:$0xf] %vm1616_vm8, %v3942_v63 }
 0x6cb   : > { %v4941_v44 = vpop.f32.mrf.mxu3 }
 0x6cc   : > { %v4942_v51 = vadd.f32 %v7543_v53, %v4941_v44  ;;  %v5386_v44 = vld [vmem:[%s5628_s30 + $0xb0] sm:$0xff] }
 0x6cd   : > { %v4353_v6 = vpop.permute.xlu0 %4352  ;;  %v5333_v54 = vld [vmem:[#allocation5 + $0x68] sm:$0xff] }
 0x6ce   : > { %4438 = vst.msk [vmem:[#allocation5 + $0x28] sm:$0xf] %vm2067_vm10, %v4353_v6  ;;  %v4994_v52 = vadd.f32 %v5378_v21, %v4942_v51  ;;  %5293 = vmatmul.msk.bf16.gmra.mxu3 %vm2477_vm13, %v5333_v54 }
 0x6cf   : > { %v4355_v31 = vpop.permute.xlu1 %4354  ;;  %v4389_v56 = vpop.permute.xlu2 %4388  ;;  %4662 = vst.msk [vmem:[#allocation5 + $0x28] sm:$0xf] %vm2292_vm12, %v4577_v23 }
 0x6d0   : > { %4439 = vst.msk [vmem:[#allocation5 + $0x2c] sm:$0xf] %vm2067_vm10, %v4355_v31 }
 0x6d1   : > { %5026 = vst.msk [vmem:[%s7554_s10 + $0x90] sm:$0xff] %vm348_vm0, %v4994_v52 }
 0x6d3   : > { %v4943_v29 = vpop.f32.mrf.mxu3 }
 0x6d4   : > { %v4944_v13 = vadd.f32 %v7543_v53, %v4943_v29  ;;  %v5387_v29 = vld [vmem:[%s5628_s30 + $0xb8] sm:$0xff] }
 0x6d5   : > { %v4579_v57 = vpop.permute.xlu0 %4578  ;;  %v4901_v7 = vpop.f32.mrf.mxu1 }
 0x6d6   : > { %4663 = vst.msk [vmem:[#allocation5 + $0x2c] sm:$0xf] %vm2292_vm12, %v4579_v57  ;;  %v4995_v17 = vadd.f32 %v5379_v49, %v4944_v13  ;;  %v4902_v28 = vadd.f32 %v7543_v53, %v4901_v7 }
 0x6d7   : > { %v3940_v58 = vpop.permute.xlu1 %3939  ;;  %v4615_v42 = vpop.permute.xlu2 %4614 }
 0x6d8   : > { %4007 = vst.msk [vmem:[#allocation5 + $0x70] sm:$0xf] %vm1616_vm8, %v3940_v58  ;;  %v4978_v8 = vadd.f32 %v5380_v39, %v4902_v28  ;;  %v5388_v58 = vld [vmem:[%s5628_s30 + $0x30] sm:$0xff] }
 0x6d9   : > { %5027 = vst.msk [vmem:[%s7554_s10 + $0x98] sm:$0xff] %vm348_vm0, %v4995_v17 }
 0x6da   : > { %5010 = vst.msk [vmem:[%s7554_s10 + $0x10] sm:$0xff] %vm348_vm0, %v4978_v8  ;;  %v5389_v8 = vld [vmem:[%s5628_s30 + $0x38] sm:$0xff] }
 0x6dd   : > { %v4165_v22 = vpop.permute.xlu0 %4164  ;;  %v5325_v3 = vld [vmem:[#allocation5 + $0x28] sm:$0xff]  ;;  %v4903_v25 = vpop.f32.mrf.mxu1 }
 0x6de   : > { %4232 = vst.msk [vmem:[#allocation5 + $0x70] sm:$0xf] %vm1842_vm9, %v4165_v22  ;;  %v4904_v45 = vadd.f32 %v7543_v53, %v4903_v25  ;;  %5285 = vmatmul.msk.bf16.gmra.mxu1 %vm2477_vm13, %v5325_v3 }
 0x6df   : > { %v4167_v41 = vpop.permute.xlu1 %4166  ;;  %v4357_v48 = vpop.permute.xlu2 %4356  ;;  %4456 = vst.msk [vmem:[#allocation5 + $0x70] sm:$0xf] %vm2067_vm10, %v4389_v56 }
 0x6e0   : > { %4233 = vst.msk [vmem:[#allocation5 + $0x74] sm:$0xf] %vm1842_vm9, %v4167_v41  ;;  %v4979_v40 = vadd.f32 %v5381_v35, %v4904_v45 }
 0x6e2   : > { %5011 = vst.msk [vmem:[%s7554_s10 + $0x18] sm:$0xff] %vm348_vm0, %v4979_v40 }
 0x6e5   : > { %v4391_v10 = vpop.permute.xlu0 %4390 }
 0x6e6   : > { %4457 = vst.msk [vmem:[#allocation5 + $0x74] sm:$0xf] %vm2067_vm10, %v4391_v10 }
 0x6e7   : > { %v4613_v27 = vpop.permute.xlu1 %4612  ;;  %v4583_v14 = vpop.permute.xlu2 %4582  ;;  %4681 = vst.msk [vmem:[#allocation5 + $0x74] sm:$0xf] %vm2292_vm12, %v4615_v42 }
 0x6e8   : > { %4680 = vst.msk [vmem:[#allocation5 + $0x70] sm:$0xf] %vm2292_vm12, %v4613_v27  ;;  %v5391_v27 = vld [vmem:[%s5628_s30 + $0xc8] sm:$0xff] }
 0x6eb   : > { %v4946_v1 = vpop.f32.mrf.mxu3 }
 0x6ec   : > { %v4947_v11 = vadd.f32 %v7543_v53, %v4946_v1 }
 0x6ed   : > { %v4133_v50 = vpop.permute.xlu0 %4132 }
 0x6ee   : > { %4216 = vst.msk [vmem:[#allocation5 + $0x30] sm:$0xf] %vm1842_vm9, %v4133_v50  ;;  %v4996_v20 = vadd.f32 %v5382_v30, %v4947_v11  ;;  %v5392_v11 = vld [vmem:[%s5628_s30 + $0x40] sm:$0xff] }
 0x6ef   : > { %v4135_v60 = vpop.permute.xlu1 %4134  ;;  %v4169_v0 = vpop.permute.xlu2 %4168  ;;  %4440 = vst.msk [vmem:[#allocation5 + $0x30] sm:$0xf] %vm2067_vm10, %v4357_v48  ;;  %v5334_v55 = vld [vmem:[#allocation5 + $0x70] sm:$0xff]  ;;  %v5390_v48 = vld [vmem:[%s5628_s30 + $0xc0] sm:$0xff] }
 0x6f0   : > { %4217 = vst.msk [vmem:[#allocation5 + $0x34] sm:$0xf] %vm1842_vm9, %v4135_v60  ;;  %5294 = vmatmul.msk.bf16.gmra.mxu3 %vm2477_vm13, %v5334_v55 }
 0x6f1   : > { %5028 = vst.msk [vmem:[%s7554_s10 + $0xa0] sm:$0xff] %vm348_vm0, %v4996_v20  ;;  %v5393_v20 = vld [vmem:[%s5628_s30 + $0x48] sm:$0xff] }
 0x6f3   : > { %v4948_v2 = vpop.f32.mrf.mxu3 }
 0x6f4   : > { %v4949_v62 = vadd.f32 %v7543_v53, %v4948_v2 }
 0x6f5   : > { %v4359_v37 = vpop.permute.xlu0 %4358  ;;  %v4906_v46 = vpop.f32.mrf.mxu1 }
 0x6f6   : > { %4441 = vst.msk [vmem:[#allocation5 + $0x34] sm:$0xf] %vm2067_vm10, %v4359_v37  ;;  %v4997_v16 = vadd.f32 %v5383_v47, %v4949_v62  ;;  %v4907_v26 = vadd.f32 %v7543_v53, %v4906_v46  ;;  %v5394_v62 = vld [vmem:[%s5628_s30 + $0xd0] sm:$0xff] }
 0x6f7   : > { %v4581_v59 = vpop.permute.xlu1 %4580  ;;  %v4395_v9 = vpop.permute.xlu2 %4394  ;;  %4665 = vst.msk [vmem:[#allocation5 + $0x34] sm:$0xf] %vm2292_vm12, %v4583_v14 }
 0x6f8   : > { %4664 = vst.msk [vmem:[#allocation5 + $0x30] sm:$0xf] %vm2292_vm12, %v4581_v59  ;;  %v4980_v33 = vadd.f32 %v5384_v32, %v4907_v26  ;;  %v5396_v32 = vld [vmem:[%s5628_s30 + $0x50] sm:$0xff] }
 0x6f9   : > { %5029 = vst.msk [vmem:[%s7554_s10 + $0xa8] sm:$0xff] %vm348_vm0, %v4997_v16  ;;  %v5395_v16 = vld [vmem:[%s5628_s30 + $0xd8] sm:$0xff] }
 0x6fa   : > { %5012 = vst.msk [vmem:[%s7554_s10 + $0x20] sm:$0xff] %vm348_vm0, %v4980_v33 }
 0x6fd   : > { %v3944_v43 = vpop.permute.xlu0 %3943  ;;  %v4908_v34 = vpop.f32.mrf.mxu1 }
 0x6fe   : > { %4009 = vst.msk [vmem:[#allocation5 + $0x78] sm:$0xf] %vm1616_vm8, %v3944_v43  ;;  %v4909_v5 = vadd.f32 %v7543_v53, %v4908_v34 }
 0x6ff   : > { %v3946_v24 = vpop.permute.xlu1 %3945  ;;  %v4137_v18 = vpop.permute.xlu2 %4136  ;;  %4234 = vst.msk [vmem:[#allocation5 + $0x78] sm:$0xf] %vm1842_vm9, %v4169_v0  ;;  %v5326_v38 = vld [vmem:[#allocation5 + $0x30] sm:$0xff] }
 0x700   : > { %4010 = vst.msk [vmem:[#allocation5 + $0x7c] sm:$0xf] %vm1616_vm8, %v3946_v24  ;;  %v4981_v23 = vadd.f32 %v5385_v12, %v4909_v5  ;;  %5286 = vmatmul.msk.bf16.gmra.mxu1 %vm2477_vm13, %v5326_v38  ;;  %v5397_v24 = vld [vmem:[%s5628_s30 + $0x58] sm:$0xff]  ;;  %v5398_v12 = vld [vmem:[%s5628_s30 + $0xe0] sm:$0xff] }
 0x701   : > { %4218 = vst.msk [vmem:[#allocation5 + $0x38] sm:$0xf] %vm1842_vm9, %v4137_v18 }
 0x702   : > { %5013 = vst.msk [vmem:[%s7554_s10 + $0x28] sm:$0xff] %vm348_vm0, %v4981_v23 }
 0x705   : > { %v4171_v36 = vpop.permute.xlu0 %4170 }
 0x706   : > { %4235 = vst.msk [vmem:[#allocation5 + $0x7c] sm:$0xf] %vm1842_vm9, %v4171_v36 }
 0x707   : > { %v4393_v15 = vpop.permute.xlu1 %4392  ;;  %4459 = vst.msk [vmem:[#allocation5 + $0x7c] sm:$0xf] %vm2067_vm10, %v4395_v9  ;;  %v4363_v21 = vpop.permute.xlu2 %4362 }
 0x708   : > { %4458 = vst.msk [vmem:[#allocation5 + $0x78] sm:$0xf] %vm2067_vm10, %v4393_v15 }
 0x70b   : > { %v4951_v4 = vpop.f32.mrf.mxu3 }
 0x70c   : > { %v4952_v61 = vadd.f32 %v7543_v53, %v4951_v4 }
 0x70d   : > { %v4617_v19 = vpop.permute.xlu0 %4616 }
 0x70e   : > { %4682 = vst.msk [vmem:[#allocation5 + $0x78] sm:$0xf] %vm2292_vm12, %v4617_v19  ;;  %v4998_v51 = vadd.f32 %v5386_v44, %v4952_v61  ;;  %v5399_v61 = vld [vmem:[%s5628_s30 + $0xe8] sm:$0xff]  ;;  %v5400_v44 = vld [vmem:[%s5628_s30 + $0x60] sm:$0xff] }
 0x70f   : > { %v4619_v63 = vpop.permute.xlu1 %4618 }
 0x710   : > { %4683 = vst.msk [vmem:[#allocation5 + $0x7c] sm:$0xf] %vm2292_vm12, %v4619_v63 }
 0x711   : > { %5030 = vst.msk [vmem:[%s7554_s10 + $0xb0] sm:$0xff] %vm348_vm0, %v4998_v51 }
 0x713   : > { %v4953_v6 = vpop.f32.mrf.mxu3 }
 0x714   : > { %v4954_v54 = vadd.f32 %v7543_v53, %v4953_v6 }
 0x715   : > { %v4139_v31 = vpop.permute.xlu0 %4138  ;;  %v4911_v52 = vpop.f32.mrf.mxu1 }
 0x716   : > { %4219 = vst.msk [vmem:[#allocation5 + $0x3c] sm:$0xf] %vm1842_vm9, %v4139_v31  ;;  %v4999_v13 = vadd.f32 %v5387_v29, %v4954_v54  ;;  %v4912_v57 = vadd.f32 %v7543_v53, %v4911_v52  ;;  %v5401_v31 = vld [vmem:[%s5628_s30 + $0x68] sm:$0xff]  ;;  %v5402_v29 = vld [vmem:[%s5628_s30 + $0xf0] sm:$0xff] }
 0x717   : > { %v4361_v56 = vpop.permute.xlu1 %4360  ;;  %4443 = vst.msk [vmem:[#allocation5 + $0x3c] sm:$0xf] %vm2067_vm10, %v4363_v21  ;;  %v5335_v7 = vld [vmem:[#allocation5 + $0x78] sm:$0xff] }
 0x718   : > { %4442 = vst.msk [vmem:[#allocation5 + $0x38] sm:$0xf] %vm2067_vm10, %v4361_v56  ;;  %v4982_v49 = vadd.f32 %v5388_v58, %v4912_v57  ;;  %5295 = vmatmul.msk.bf16.gmra.mxu3 %vm2477_vm13, %v5335_v7 }
 0x719   : > { %5031 = vst.msk [vmem:[%s7554_s10 + $0xb8] sm:$0xff] %vm348_vm0, %v4999_v13 }
 0x71a   : > { %5014 = vst.msk [vmem:[%s7554_s10 + $0x30] sm:$0xff] %vm348_vm0, %v4982_v49  ;;  %v5403_v49 = vld [vmem:[%s5628_s30 + $0xf8] sm:$0xff] }
 0x71d   : > { %v4585_v17 = vpop.permute.xlu0 %4584  ;;  %v4913_v42 = vpop.f32.mrf.mxu1 }
 0x71e   : > { %4666 = vst.msk [vmem:[#allocation5 + $0x38] sm:$0xf] %vm2292_vm12, %v4585_v17  ;;  %v4914_v39 = vadd.f32 %v7543_v53, %v4913_v42 }
 0x71f   : > { %v4587_v28 = vpop.permute.xlu1 %4586 }
 0x720   : > { %4667 = vst.msk [vmem:[#allocation5 + $0x3c] sm:$0xf] %vm2292_vm12, %v4587_v28  ;;  %v4983_v22 = vadd.f32 %v5389_v8, %v4914_v39  ;;  %v5404_v28 = vld [vmem:[%s5628_s30 + $0x70] sm:$0xff] }
 0x722   : > { %5015 = vst.msk [vmem:[%s7554_s10 + $0x38] sm:$0xff] %vm348_vm0, %v4983_v22 }
 0x727   : > { %v5327_v3 = vld [vmem:[#allocation5 + $0x38] sm:$0xff] }
 0x728   : > { %5287 = vmatmul.msk.bf16.gmra.mxu1 %vm2477_vm13, %v5327_v3  ;;  %v5405_v3 = vld [vmem:[%s5628_s30 + $0x78] sm:$0xff] }
 0x72b   : > { %v4956_v25 = vpop.f32.mrf.mxu3 }
 0x72c   : > { %v4957_v41 = vadd.f32 %v7543_v53, %v4956_v25 }
 0x72e   : > { %v5000_v45 = vadd.f32 %v5390_v48, %v4957_v41 }
 0x730   : > { %5032 = vst.msk [vmem:[%s7554_s10 + $0xc0] sm:$0xff] %vm348_vm0, %v5000_v45 }
 0x733   : > { %v4958_v35 = vpop.f32.mrf.mxu3 }
 0x734   : > { %v4959_v40 = vadd.f32 %v7543_v53, %v4958_v35 }
 0x735   : > { %v4916_v10 = vpop.f32.mrf.mxu1 }
 0x736   : > { %v5001_v14 = vadd.f32 %v5391_v27, %v4959_v40  ;;  %v4917_v1 = vadd.f32 %v7543_v53, %v4916_v10 }
 0x738   : > { %5033 = vst.msk [vmem:[%s7554_s10 + $0xc8] sm:$0xff] %vm348_vm0, %v5001_v14  ;;  %v4984_v50 = vadd.f32 %v5392_v11, %v4917_v1 }
 0x73a   : > { %5016 = vst.msk [vmem:[%s7554_s10 + $0x40] sm:$0xff] %vm348_vm0, %v4984_v50 }
 0x73d   : > { %v4918_v60 = vpop.f32.mrf.mxu1 }
 0x73e   : > { %v4919_v30 = vadd.f32 %v7543_v53, %v4918_v60 }
 0x740   : > { %v4985_v0 = vadd.f32 %v5393_v20, %v4919_v30 }
 0x742   : > { %5017 = vst.msk [vmem:[%s7554_s10 + $0x48] sm:$0xff] %vm348_vm0, %v4985_v0 }
 0x751   : > { %v4961_v55 = vpop.f32.mrf.mxu3 }
 0x752   : > { %v4962_v2 = vadd.f32 %v7543_v53, %v4961_v55 }
 0x754   : > { %v5002_v37 = vadd.f32 %v5394_v62, %v4962_v2 }
 0x756   : > { %5034 = vst.msk [vmem:[%s7554_s10 + $0xd0] sm:$0xff] %vm348_vm0, %v5002_v37 }
 0x759   : > { %v4963_v46 = vpop.f32.mrf.mxu3 }
 0x75a   : > { %v4964_v59 = vadd.f32 %v7543_v53, %v4963_v46 }
 0x75b   : > { %v4921_v47 = vpop.f32.mrf.mxu1 }
 0x75c   : > { %v5003_v9 = vadd.f32 %v5395_v16, %v4964_v59  ;;  %v4922_v26 = vadd.f32 %v7543_v53, %v4921_v47 }
 0x75e   : > { %5035 = vst.msk [vmem:[%s7554_s10 + $0xd8] sm:$0xff] %vm348_vm0, %v5003_v9  ;;  %v4986_v33 = vadd.f32 %v5396_v32, %v4922_v26 }
 0x760   : > { %5018 = vst.msk [vmem:[%s7554_s10 + $0x50] sm:$0xff] %vm348_vm0, %v4986_v33 }
 0x763   : > { %v4923_v43 = vpop.f32.mrf.mxu1 }
 0x764   : > { %v4924_v34 = vadd.f32 %v7543_v53, %v4923_v43 }
 0x766   : > { %v4987_v18 = vadd.f32 %v5397_v24, %v4924_v34 }
 0x768   : > { %5019 = vst.msk [vmem:[%s7554_s10 + $0x58] sm:$0xff] %vm348_vm0, %v4987_v18 }
 0x773   : > { %v4966_v5 = vpop.f32.mrf.mxu3 }
 0x774   : > { %v4967_v38 = vadd.f32 %v7543_v53, %v4966_v5 }
 0x776   : > { %v5004_v23 = vadd.f32 %v5398_v12, %v4967_v38 }
 0x778   : > { %5036 = vst.msk [vmem:[%s7554_s10 + $0xe0] sm:$0xff] %vm348_vm0, %v5004_v23 }
 0x77b   : > { %v4968_v36 = vpop.f32.mrf.mxu3 }
 0x77c   : > { %v4969_v15 = vadd.f32 %v7543_v53, %v4968_v36 }
 0x77d   : > { %v4926_v4 = vpop.f32.mrf.mxu1 }
 0x77e   : > { %v5005_v19 = vadd.f32 %v5399_v61, %v4969_v15  ;;  %v4927_v63 = vadd.f32 %v7543_v53, %v4926_v4 }
 0x780   : > { %5037 = vst.msk [vmem:[%s7554_s10 + $0xe8] sm:$0xff] %vm348_vm0, %v5005_v19  ;;  %v4988_v51 = vadd.f32 %v5400_v44, %v4927_v63 }
 0x782   : > { %5020 = vst.msk [vmem:[%s7554_s10 + $0x60] sm:$0xff] %vm348_vm0, %v4988_v51 }
 0x785   : > { %v4928_v6 = vpop.f32.mrf.mxu1 }
 0x786   : > { %v4929_v54 = vadd.f32 %v7543_v53, %v4928_v6 }
 0x788   : > { %v4989_v21 = vadd.f32 %v5401_v31, %v4929_v54 }
 0x78a   : > { %5021 = vst.msk [vmem:[%s7554_s10 + $0x68] sm:$0xff] %vm348_vm0, %v4989_v21 }
 0x79b   : > { %v4971_v52 = vpop.f32.mrf.mxu3 }
 0x79c   : > { %v4972_v56 = vadd.f32 %v7543_v53, %v4971_v52 }
 0x79e   : > { %v5006_v13 = vadd.f32 %v5402_v29, %v4972_v56 }
 0x7a0   : > { %5038 = vst.msk [vmem:[%s7554_s10 + $0xf0] sm:$0xff] %vm348_vm0, %v5006_v13 }
 0x7a3   : > { %v4973_v57 = vpop.f32.mrf.mxu3 }
 0x7a4   : > { %v4974_v7 = vadd.f32 %v7543_v53, %v4973_v57 }
 0x7a5   : > { %v4931_v58 = vpop.f32.mrf.mxu1 }
 0x7a6   : > { %v5007_v17 = vadd.f32 %v5403_v49, %v4974_v7  ;;  %v4932_v42 = vadd.f32 %v7543_v53, %v4931_v58 }
 0x7a8   : > { %5039 = vst.msk [vmem:[%s7554_s10 + $0xf8] sm:$0xff] %vm348_vm0, %v5007_v17  ;;  %v4990_v39 = vadd.f32 %v5404_v28, %v4932_v42 }
 0x7aa   : > { %5022 = vst.msk [vmem:[%s7554_s10 + $0x70] sm:$0xff] %vm348_vm0, %v4990_v39 }
 0x7ad   : > { %v4933_v8 = vpop.f32.mrf.mxu1 }
 0x7ae   : > { %v4934_v22 = vadd.f32 %v7543_v53, %v4933_v8 }
 0x7b0   : > { %v4991_v25 = vadd.f32 %v5405_v3, %v4934_v22 }
 0x7b2   : > { %5023 = vst.msk [vmem:[%s7554_s10 + $0x78] sm:$0xff] %vm348_vm0, %v4991_v25 }
 0x7b3 PF: > { %s17_s24 = sadd.s32 1, %s5412_s24  }
 0x7b4   : > { %p14_p4 = scmp.ge.s32.totalorder %s17_s24, 4  }
 0x7b6   :  { %16 = sbr.rel (!%p14_p4) target bundleno = 1 (0x1), region = 84 }

</bundles_post_ra>
